<compile_context>
chip_gen: v5e
topology: v5e:2x2
jax: 0.10.0
libtpu: 0.0.40
codegen_flags: <defaults>
</compile_context>

<pallas_src>
import functools

import jax
import jax.numpy as jnp
from jax import lax
from jax.experimental import pallas as pl
from jax.experimental.pallas import tpu as pltpu

EPS_LN = 1e-5
EPS_GLN = 1e-5


# --------------------------------------------------------------------------- helpers
def _full_spec(shape):
    nd = len(shape)
    return pl.BlockSpec(tuple(shape), lambda *args, _nd=nd: (0,) * _nd)


def frame_signal(x, K, S):
    """(.., L) waveform -> (.., T, K) sliding frames with hop S (no gather for K==2S)."""
    L = x.shape[-1]
    T = (L - K) // S + 1
    if K == 2 * S:
        n_half = T + 1
        halves = x[..., : n_half * S].reshape(*x.shape[:-1], n_half, S)
        frames = jnp.concatenate([halves[..., :T, :], halves[..., 1:T + 1, :]], axis=-1)
    else:
        # TODO(synk): odd short_kernel falls back to gather framing.
        idx = jnp.arange(T)[:, None] * S + jnp.arange(K)[None, :]
        frames = x[..., idx]
    return frames, T


def _maxpool3_time(y):
    # MaxPool1d(kernel=3, stride=3) over the time axis of (B, T, C); done in XLA
    # (reference path only, runs once per utterance).
    B, T, C = y.shape
    Tp = (T // 3) * 3
    return jnp.max(y[:, :Tp].reshape(B, Tp // 3, 3, C), axis=2)


# --------------------------------------------------------------------------- speaker-encoder kernels
def _se_head_kernel(fr_ref, enc_w_ref, enc_b_ref, g_ref, b_ref, w1_ref, b1_ref, o_ref):
    # encoder (framed Conv1d + ReLU) -> channel LayerNorm -> 1x1 conv N->O
    fr = fr_ref[0]                                                       # (Tr, K)
    x = jnp.dot(fr, enc_w_ref[...], preferred_element_type=jnp.float32) + enc_b_ref[...]
    x = jnp.maximum(x, 0.0)                                              # (Tr, N)
    mu = jnp.mean(x, axis=-1, keepdims=True)
    var = jnp.mean(jnp.square(x - mu), axis=-1, keepdims=True)
    y = (x - mu) * lax.rsqrt(var + EPS_LN) * g_ref[...] + b_ref[...]
    y = jnp.dot(y, w1_ref[...], preferred_element_type=jnp.float32) + b1_ref[...]
    o_ref[0] = y.astype(o_ref.dtype)


def _resnet_kernel(y_ref, w1_ref, b1_ref, w2_ref, b2_ref, a_ref, o_ref):
    # ResNet block (BatchNorm folded): 1x1 -> PReLU -> 1x1 -> +res -> PReLU
    y = y_ref[0]                                                         # (Tc, O)
    a1 = a_ref[0, 0]
    a2 = a_ref[0, 1]
    h = jnp.dot(y, w1_ref[...], preferred_element_type=jnp.float32) + b1_ref[...]
    h = jnp.where(h >= 0, h, a1 * h)
    h = jnp.dot(h, w2_ref[...], preferred_element_type=jnp.float32) + b2_ref[...]
    h = h + y
    h = jnp.where(h >= 0, h, a2 * h)
    o_ref[0] = h.astype(o_ref.dtype)


def _se_tail_kernel(y_ref, w2_ref, b2_ref, fcw_ref, fcb_ref, v_ref, l_ref):
    # 1x1 conv O->O -> mean over time -> FC to speaker logits
    y = y_ref[0]                                                         # (T2, O)
    y = jnp.dot(y, w2_ref[...], preferred_element_type=jnp.float32) + b2_ref[...]
    v = jnp.mean(y, axis=0, keepdims=True)                               # (1, O)
    logits = jnp.dot(v, fcw_ref[...], preferred_element_type=jnp.float32) + fcb_ref[...]
    v_ref[0] = v.astype(v_ref.dtype)
    l_ref[0] = logits.astype(l_ref.dtype)


def speaker_encoder_fwd(p, cfg, ref_frames):
    B, Tr, K = ref_frames.shape
    N = cfg["n_channels"]; O = cfg["out_channels"]; nspk = cfg["n_speakers"]

    head_w = [p["enc_w"], p["enc_b"], p["se_ln_g"], p["se_ln_b"],
              p["se_conv1_w"], p["se_conv1_b"]]
    y = pl.pallas_call(
        _se_head_kernel,
        out_shape=jax.ShapeDtypeStruct((B, Tr, O), jnp.float32),
        grid=(B,),
        in_specs=[pl.BlockSpec((1, Tr, K), lambda b: (b, 0, 0))]
                 + [_full_spec(w.shape) for w in head_w],
        out_specs=pl.BlockSpec((1, Tr, O), lambda b: (b, 0, 0)),
        compiler_params=pltpu.CompilerParams(dimension_semantics=("parallel",)),
    )(ref_frames, *head_w)

    nres = p["se_res_w1"].shape[0]
    for r in range(nres):
        Tc = y.shape[1]
        blk_w = [p["se_res_w1"][r], p["se_res_b1"][r], p["se_res_w2"][r],
                 p["se_res_b2"][r], p["se_res_a"][r]]
        y = pl.pallas_call(
            _resnet_kernel,
            out_shape=jax.ShapeDtypeStruct((B, Tc, O), jnp.float32),
            grid=(B,),
            in_specs=[pl.BlockSpec((1, Tc, O), lambda b: (b, 0, 0))]
                     + [_full_spec(w.shape) for w in blk_w],
            out_specs=pl.BlockSpec((1, Tc, O), lambda b: (b, 0, 0)),
            compiler_params=pltpu.CompilerParams(dimension_semantics=("parallel",)),
        )(y, *blk_w)
        y = _maxpool3_time(y)

    T2 = y.shape[1]
    tail_w = [p["se_conv2_w"], p["se_conv2_b"], p["se_fc_w"], p["se_fc_b"]]
    v, logits = pl.pallas_call(
        _se_tail_kernel,
        out_shape=(jax.ShapeDtypeStruct((B, 1, O), jnp.float32),
                   jax.ShapeDtypeStruct((B, 1, nspk), jnp.float32)),
        grid=(B,),
        in_specs=[pl.BlockSpec((1, T2, O), lambda b: (b, 0, 0))]
                 + [_full_spec(w.shape) for w in tail_w],
        out_specs=(pl.BlockSpec((1, 1, O), lambda b: (b, 0, 0)),
                   pl.BlockSpec((1, 1, nspk), lambda b: (b, 0, 0))),
        compiler_params=pltpu.CompilerParams(dimension_semantics=("parallel",)),
    )(y, *tail_w)
    return v.reshape(B, O), logits.reshape(B, nspk)


# --------------------------------------------------------------------------- fused per-chunk kernel
def _chunk_kernel(frames_ref, refv_ref, enc_w_ref, enc_b_ref,
                  ln1_g_ref, ln1_b_ref, ex_w_ref, ex_b_ref,
                  c1_wy_ref, c1_wm_ref, c1_wr_ref, c1_b_ref, g1_ref, be1_ref,
                  dw0_ref, dw1_ref, dw2_ref, db_ref, g2_ref, be2_ref,
                  sc_wy_ref, sc_wm_ref, sc_by_ref, sc_bm_ref,
                  mask_w_ref, mask_b_ref, dec_w0_ref, dec_w1_ref, scal_ref,
                  out_ref, mem_ref,
                  *, T, K, O, nstack, ntcn, causal):
    f32 = jnp.float32
    chunk = pl.program_id(1)

    # reset the recurrent special-channel memory at the first chunk of every sample
    @pl.when(chunk == 0)
    def _init_memory():
        mem_ref[...] = jnp.zeros_like(mem_ref)

    # -------- hoisted (built once per grid step, shared by all TCN blocks) --------
    t_col = lax.broadcasted_iota(jnp.int32, (T, 1), 0)
    if causal:
        need_offsets = sorted({-2 * (2 ** j) for j in range(ntcn)}
                              | {-(2 ** j) for j in range(ntcn)})
    else:
        need_offsets = sorted({-(2 ** j) for j in range(ntcn)}
                              | {2 ** j for j in range(ntcn)})
    valid = {off: jnp.logical_and(t_col + off >= 0, t_col + off < T)
             for off in need_offsets}

    def tshift(h, off):
        # h'[t] = h[t + off] with zero padding outside [0, T).
        # Sublane rotation (XLU) + masked select (VPU); no MXU shift matmuls.
        rolled = pltpu.roll(h, (-off) % T, 0)
        return jnp.where(valid[off], rolled, 0.0)

    # decoder overlap-add selectors (O(T^2 * S) — negligible vs 1x1 convs)
    r2 = lax.broadcasted_iota(jnp.int32, (T + 1, T), 0)
    c2 = lax.broadcasted_iota(jnp.int32, (T + 1, T), 1)
    sel0 = jnp.where(c2 == r2, 1.0, 0.0).astype(f32)
    sel1 = jnp.where(c2 == r2 - 1, 1.0, 0.0).astype(f32)

    # ---- speech encoder: Conv1d(1, N, K, stride=K//2) + ReLU (framed matmul)
    fr = frames_ref[...].reshape(T, K)
    x_enc = jnp.dot(fr, enc_w_ref[...], preferred_element_type=f32) + enc_b_ref[...]
    x_enc = jnp.maximum(x_enc, 0.0)                                      # (T, N)

    # ---- speaker extractor: channel LayerNorm + 1x1 conv
    mu = jnp.mean(x_enc, axis=-1, keepdims=True)
    var = jnp.mean(jnp.square(x_enc - mu), axis=-1, keepdims=True)
    y = (x_enc - mu) * lax.rsqrt(var + EPS_LN) * ln1_g_ref[...] + ln1_b_ref[...]
    y = jnp.dot(y, ex_w_ref[...], preferred_element_type=f32) + ex_b_ref[...]  # (T, N)
    m = mem_ref[...]                                                     # (T, nsp)

    rv = refv_ref[...].reshape(1, O)                                     # speaker embedding
    blk = 0
    for s in range(nstack):
        for j in range(ntcn):
            d = 2 ** j
            # 1x1 conv over [main | special | (ref)] channels via split weights
            h = (jnp.dot(y, c1_wy_ref[blk], preferred_element_type=f32)
                 + jnp.dot(m, c1_wm_ref[blk], preferred_element_type=f32)
                 + c1_b_ref[blk])
            if j == 0:   # TCNBlockRef: speaker embedding broadcast over time
                h = h + jnp.dot(rv, c1_wr_ref[s], preferred_element_type=f32)
            a1 = scal_ref[0, 2 * blk]
            h = jnp.where(h >= 0, h, a1 * h)
            gmu = jnp.mean(h)
            gvar = jnp.mean(jnp.square(h - gmu))
            h = (h - gmu) * lax.rsqrt(gvar + EPS_GLN) * g1_ref[blk] + be1_ref[blk]

            # depthwise dilated conv (kernel 3): shift-and-mask on VPU/XLU
            if causal:
                h0 = tshift(h, -2 * d)
                h1 = tshift(h, -d)
                h2 = h
            else:
                h0 = tshift(h, -d)
                h1 = h
                h2 = tshift(h, d)
            hd = (dw0_ref[blk] * h0 + dw1_ref[blk] * h1 + dw2_ref[blk] * h2
                  + db_ref[blk])
            a2 = scal_ref[0, 2 * blk + 1]
            hd = jnp.where(hd >= 0, hd, a2 * hd)
            gmu = jnp.mean(hd)
            gvar = jnp.mean(jnp.square(hd - gmu))
            hd = (hd - gmu) * lax.rsqrt(gvar + EPS_GLN) * g2_ref[blk] + be2_ref[blk]

            # 1x1 conv back to (main, special) channels + residual
            y = y + jnp.dot(hd, sc_wy_ref[blk], preferred_element_type=f32) + sc_by_ref[blk]
            m = m + jnp.dot(hd, sc_wm_ref[blk], preferred_element_type=f32) + sc_bm_ref[blk]
            blk += 1

    # recurrent special channels carried to the next chunk via VMEM scratch
    mem_ref[...] = m

    mask = jnp.dot(y, mask_w_ref[...], preferred_element_type=f32) + mask_b_ref[...]
    mask = jnp.maximum(mask, 0.0)
    encs1 = x_enc * mask                                                 # (T, N)

    # ---- speech decoder: ConvTranspose1d(N, 1, K, stride=K//2) as overlap-add
    f0 = jnp.dot(encs1, dec_w0_ref[...], preferred_element_type=f32)     # (T, S)
    f1 = jnp.dot(encs1, dec_w1_ref[...], preferred_element_type=f32)     # (T, S)
    halves = (jnp.dot(sel0, f0, preferred_element_type=f32)
              + jnp.dot(sel1, f1, preferred_element_type=f32))           # (T+1, S)
    dec_b = scal_ref[0, 2 * nstack * ntcn]
    out_ref[...] = (halves + dec_b)[None, None].astype(out_ref.dtype)


def extractor_pipeline(p, cfg, frames, ref_vec, n_chunks, B, T):
    N = cfg["n_channels"]; O = cfg["out_channels"]
    K = cfg["short_kernel"]; S = K // 2; nsp = cfg["n_sp_channels"]
    nstack = cfg["n_stacked_tcnblocks"]; ntcn = cfg["n_tcnblocks"]

    refv = ref_vec.reshape(B, 1, O)
    weights = [p["enc_w"], p["enc_b"], p["ln1_g"], p["ln1_b"], p["ex_w"], p["ex_b"],
               p["c1_wy"], p["c1_wm"], p["c1_wr"], p["c1_b"], p["g1"], p["be1"],
               p["dw0"], p["dw1"], p["dw2"], p["db"], p["g2"], p["be2"],
               p["sc_wy"], p["sc_wm"], p["sc_by"], p["sc_bm"],
               p["mask_w"], p["mask_b"], p["dec_w0"], p["dec_w1"], p["scalars"]]

    kernel = functools.partial(_chunk_kernel, T=T, K=K, O=O,
                               nstack=nstack, ntcn=ntcn, causal=cfg["causal"])
    out = pl.pallas_call(
        kernel,
        out_shape=jax.ShapeDtypeStruct((n_chunks, B, T + 1, S), jnp.float32),
        grid=(B, n_chunks),
        in_specs=[pl.BlockSpec((1, 1, T, K), lambda b, c: (c, b, 0, 0)),
                  pl.BlockSpec((1, 1, O), lambda b, c: (b, 0, 0))]
                 + [_full_spec(w.shape) for w in weights],
        out_specs=pl.BlockSpec((1, 1, T + 1, S), lambda b, c: (c, b, 0, 0)),
        scratch_shapes=[pltpu.VMEM((T, nsp), jnp.float32)],
        compiler_params=pltpu.CompilerParams(
            dimension_semantics=("parallel", "arbitrary")),
    )(frames, refv, *weights)
    return out


# --------------------------------------------------------------------------- params
class KeyGen:
    def __init__(self, key):
        self.key = key

    def __call__(self):
        self.key, sub = jax.random.split(self.key)
        return sub


def init_params(key, cfg):
    N = cfg["n_channels"]; H = cfg["hidden_channels"]; O = cfg["out_channels"]
    K = cfg["short_kernel"]; S = K // 2; nsp = cfg["n_sp_channels"]
    nres = cfg["n_resnetblocks"]; nspk = cfg["n_speakers"]
    nstack = cfg["n_stacked_tcnblocks"]; ntcn = cfg["n_tcnblocks"]
    nblk = nstack * ntcn

    kg = KeyGen(key)

    def w(shape, scale=0.1):
        return (scale * jax.random.normal(kg(), shape)).astype(jnp.float32)

    scalars = jnp.concatenate(
        [jnp.full((2 * nblk,), 0.25, jnp.float32),          # PReLU alphas
         jnp.array([0.01], jnp.float32)]).reshape(1, 2 * nblk + 1)   # decoder bias

    return dict(
        # speech encoder: Conv1d(1, N, K, stride=K//2) + ReLU  (weights as (K, N))
        enc_w=w((K, N)), enc_b=w((1, N), 0.02),
        # speaker encoder
        se_ln_g=jnp.ones((1, N), jnp.float32), se_ln_b=jnp.zeros((1, N), jnp.float32),
        se_conv1_w=w((N, O)), se_conv1_b=w((1, O), 0.02),
        se_res_w1=w((nres, O, O)), se_res_b1=w((nres, 1, O), 0.02),
        se_res_w2=w((nres, O, O)), se_res_b2=w((nres, 1, O), 0.02),
        se_res_a=jnp.full((nres, 1, 2), 0.25, jnp.float32),
        se_conv2_w=w((O, O)), se_conv2_b=w((1, O), 0.02),
        se_fc_w=w((O, nspk)), se_fc_b=w((1, nspk), 0.02),
        # speaker extractor (SpeakerExtractorShortSpecialChannels)
        ln1_g=jnp.ones((1, N), jnp.float32), ln1_b=jnp.zeros((1, N), jnp.float32),
        ex_w=w((N, N)), ex_b=w((1, N), 0.02),
        c1_wy=w((nblk, N, H)), c1_wm=w((nblk, nsp, H)), c1_wr=w((nstack, O, H)),
        c1_b=w((nblk, 1, H), 0.02),
        g1=jnp.ones((nblk, 1, H), jnp.float32), be1=jnp.zeros((nblk, 1, H), jnp.float32),
        dw0=w((nblk, 1, H)), dw1=w((nblk, 1, H)), dw2=w((nblk, 1, H)),
        db=w((nblk, 1, H), 0.02),
        g2=jnp.ones((nblk, 1, H), jnp.float32), be2=jnp.zeros((nblk, 1, H), jnp.float32),
        sc_wy=w((nblk, H, N)), sc_wm=w((nblk, H, nsp)),
        sc_by=w((nblk, 1, N), 0.02), sc_bm=w((nblk, 1, nsp), 0.02),
        mask_w=w((N, N)), mask_b=w((1, N), 0.02),
        # speech decoder: ConvTranspose1d(N, 1, K, stride=K//2), weight split in halves
        dec_w0=w((N, S)), dec_w1=w((N, S)),
        scalars=scalars,
    )


# --------------------------------------------------------------------------- forward
def model_forward(p, cfg, x, ref, have_relevant_speakers=True):
    K = cfg["short_kernel"]; S = K // 2
    assert K == 2 * S, "short_kernel must be even"  # TODO(synk): odd K unsupported
    B = ref.shape[0]
    n_chunks = x.shape[0] // B
    Lx = x.shape[1]

    # reference path (runs once): encoder + speaker encoder
    ref_frames, _ = frame_signal(ref, K, S)
    ref_vec, speaker_logits = speaker_encoder_fwd(p, cfg, ref_frames)

    # chunked mixture path: encoder -> extractor -> decoder fused in one kernel,
    # chunk axis carried sequentially with `memory` kept in VMEM scratch.
    frames, T = frame_signal(x, K, S)                      # (n_chunks*B, T, K)
    frames = frames.reshape(n_chunks, B, T, K)
    halves = extractor_pipeline(p, cfg, frames, ref_vec, n_chunks, B, T)

    out_len = (T + 1) * S                                  # == (T - 1) * S + K
    s1 = halves.reshape(n_chunks * B, out_len)
    if out_len >= Lx:
        s1 = s1[:, :Lx]
    else:
        # TODO(synk): padded tail does not receive the decoder bias (matches prior impl).
        s1 = jnp.pad(s1, ((0, 0), (0, Lx - out_len)))

    if have_relevant_speakers:
        return s1, speaker_logits
    return s1


# --------------------------------------------------------------------------- main
if __name__ == "__main__":
    cfg = dict(
        n_channels=16,
        hidden_channels=32,
        out_channels=32,
        short_kernel=16,
        n_resnetblocks=2,
        n_speakers=10,
        n_stacked_tcnblocks=2,
        n_tcnblocks=3,
        n_sp_channels=None,
        causal=False,
    )
    if cfg["n_sp_channels"] is None:
        cfg["n_sp_channels"] = 2 ** cfg["n_tcnblocks"]

    params = init_params(jax.random.PRNGKey(0), cfg)

    key = jax.random.PRNGKey(0)
    kx, kr = jax.random.split(key)
    batch = 2
    n_chunks = 2
    Lx = 136          # -> encoder T = 16 per chunk
    Lref = 160        # -> encoder T = 19 for the reference utterance
    x = jax.random.normal(kx, (batch * n_chunks, Lx), jnp.float32)
    ref = jax.random.normal(kr, (batch, Lref), jnp.float32)

    fwd = jax.jit(functools.partial(model_forward, params, cfg))
    s1, speaker_logits = fwd(x, ref)
    jax.block_until_ready(s1)
    jax.block_until_ready(speaker_logits)

    assert s1.shape == (batch * n_chunks, Lx)
    assert speaker_logits.shape == (batch, cfg["n_speakers"])
    print("KERNEL_OK")
</pallas_src>

<mosaic_0001>
module attributes {stable_mosaic.version = 11 : i64} {
  func.func @_se_head_kernel(%arg0: i32, %arg1: memref<1x19x16xf32, #tpu.memory_space<vmem>>, %arg2: memref<16x16xf32, #tpu.memory_space<vmem>>, %arg3: memref<1x16xf32, #tpu.memory_space<vmem>>, %arg4: memref<1x16xf32, #tpu.memory_space<vmem>>, %arg5: memref<1x16xf32, #tpu.memory_space<vmem>>, %arg6: memref<16x32xf32, #tpu.memory_space<vmem>>, %arg7: memref<1x32xf32, #tpu.memory_space<vmem>>, %arg8: memref<1x19x32xf32, #tpu.memory_space<vmem>>) attributes {dimension_semantics = [#tpu.dimension_semantics<parallel>], iteration_bounds = array<i64: 2>, scalar_prefetch = 0 : i64, scratch_operands = 0 : i64, tpu.core_type = #tpu.core_type<tc>, window_params = [{transform_indices = @transform_0, window_bounds = array<i64: 1, 19, 16>}, {pipeline_mode = #tpu.pipeline_mode<synchronous>, transform_indices = @transform_1, window_bounds = array<i64: 16, 16>}, {pipeline_mode = #tpu.pipeline_mode<synchronous>, transform_indices = @transform_2, window_bounds = array<i64: 1, 16>}, {pipeline_mode = #tpu.pipeline_mode<synchronous>, transform_indices = @transform_3, window_bounds = array<i64: 1, 16>}, {pipeline_mode = #tpu.pipeline_mode<synchronous>, transform_indices = @transform_4, window_bounds = array<i64: 1, 16>}, {pipeline_mode = #tpu.pipeline_mode<synchronous>, transform_indices = @transform_5, window_bounds = array<i64: 16, 32>}, {pipeline_mode = #tpu.pipeline_mode<synchronous>, transform_indices = @transform_6, window_bounds = array<i64: 1, 32>}, {transform_indices = @transform_7, window_bounds = array<i64: 1, 19, 32>}]} {
    %c0 = arith.constant 0 : index
    %c0_0 = arith.constant 0 : index
    %c0_1 = arith.constant 0 : index
    %0 = vector.load %arg1[%c0, %c0_0, %c0_1] : memref<1x19x16xf32, #tpu.memory_space<vmem>>, vector<1x19x16xf32>
    %1 = vector.shape_cast %0 : vector<1x19x16xf32> to vector<19x16xf32>
    %c0_2 = arith.constant 0 : index
    %c0_3 = arith.constant 0 : index
    %2 = vector.load %arg2[%c0_2, %c0_3] : memref<16x16xf32, #tpu.memory_space<vmem>>, vector<16x16xf32>
    %cst = arith.constant dense<0.000000e+00> : vector<19x16xf32>
    %3 = tpu.matmul %1, %2, %cst {dimension_numbers = #tpu.dot_dimension_numbers<[1], [0], [0], [1], [0, 0, 1, 1], [], []>} : vector<19x16xf32>, vector<16x16xf32>, vector<19x16xf32> -> vector<19x16xf32>
    %c0_4 = arith.constant 0 : index
    %c0_5 = arith.constant 0 : index
    %4 = vector.load %arg3[%c0_4, %c0_5] : memref<1x16xf32, #tpu.memory_space<vmem>>, vector<1x16xf32>
    %5 = vector.broadcast %4 : vector<1x16xf32> to vector<19x16xf32>
    %6 = arith.addf %3, %5 : vector<19x16xf32>
    %cst_6 = arith.constant 0.000000e+00 : f32
    %7 = vector.broadcast %cst_6 : f32 to vector<19x16xf32>
    %8 = arith.maximumf %6, %7 : vector<19x16xf32>
    %cst_7 = arith.constant dense<0.000000e+00> : vector<19xf32>
    %9 = vector.multi_reduction <add>, %8, %cst_7 [1] : vector<19x16xf32> to vector<19xf32>
    %10 = vector.shape_cast %9 : vector<19xf32> to vector<19x1xf32>
    %cst_8 = arith.constant 1.600000e+01 : f32
    %11 = vector.broadcast %cst_8 : f32 to vector<19x1xf32>
    %12 = arith.divf %10, %11 : vector<19x1xf32>
    %13 = vector.broadcast %12 : vector<19x1xf32> to vector<19x16xf32>
    %14 = arith.subf %8, %13 : vector<19x16xf32>
    %15 = arith.mulf %14, %14 : vector<19x16xf32>
    %cst_9 = arith.constant dense<0.000000e+00> : vector<19xf32>
    %16 = vector.multi_reduction <add>, %15, %cst_9 [1] : vector<19x16xf32> to vector<19xf32>
    %17 = vector.shape_cast %16 : vector<19xf32> to vector<19x1xf32>
    %cst_10 = arith.constant 1.600000e+01 : f32
    %18 = vector.broadcast %cst_10 : f32 to vector<19x1xf32>
    %19 = arith.divf %17, %18 : vector<19x1xf32>
    %20 = vector.broadcast %12 : vector<19x1xf32> to vector<19x16xf32>
    %21 = arith.subf %8, %20 : vector<19x16xf32>
    %cst_11 = arith.constant 9.99999974E-6 : f32
    %22 = vector.broadcast %cst_11 : f32 to vector<19x1xf32>
    %23 = arith.addf %19, %22 : vector<19x1xf32>
    %24 = math.rsqrt %23 : vector<19x1xf32>
    %25 = vector.broadcast %24 : vector<19x1xf32> to vector<19x16xf32>
    %26 = arith.mulf %21, %25 : vector<19x16xf32>
    %c0_12 = arith.constant 0 : index
    %c0_13 = arith.constant 0 : index
    %27 = vector.load %arg4[%c0_12, %c0_13] : memref<1x16xf32, #tpu.memory_space<vmem>>, vector<1x16xf32>
    %28 = vector.broadcast %27 : vector<1x16xf32> to vector<19x16xf32>
    %29 = arith.mulf %26, %28 : vector<19x16xf32>
    %c0_14 = arith.constant 0 : index
    %c0_15 = arith.constant 0 : index
    %30 = vector.load %arg5[%c0_14, %c0_15] : memref<1x16xf32, #tpu.memory_space<vmem>>, vector<1x16xf32>
    %31 = vector.broadcast %30 : vector<1x16xf32> to vector<19x16xf32>
    %32 = arith.addf %29, %31 : vector<19x16xf32>
    %c0_16 = arith.constant 0 : index
    %c0_17 = arith.constant 0 : index
    %33 = vector.load %arg6[%c0_16, %c0_17] : memref<16x32xf32, #tpu.memory_space<vmem>>, vector<16x32xf32>
    %cst_18 = arith.constant dense<0.000000e+00> : vector<19x32xf32>
    %34 = tpu.matmul %32, %33, %cst_18 {dimension_numbers = #tpu.dot_dimension_numbers<[1], [0], [0], [1], [0, 0, 1, 1], [], []>} : vector<19x16xf32>, vector<16x32xf32>, vector<19x32xf32> -> vector<19x32xf32>
    %c0_19 = arith.constant 0 : index
    %c0_20 = arith.constant 0 : index
    %35 = vector.load %arg7[%c0_19, %c0_20] : memref<1x32xf32, #tpu.memory_space<vmem>>, vector<1x32xf32>
    %36 = vector.broadcast %35 : vector<1x32xf32> to vector<19x32xf32>
    %37 = arith.addf %34, %36 : vector<19x32xf32>
    %c0_21 = arith.constant 0 : index
    %c0_22 = arith.constant 0 : index
    %c0_23 = arith.constant 0 : index
    %38 = vector.load %arg8[%c0_21, %c0_22, %c0_23] : memref<1x19x32xf32, #tpu.memory_space<vmem>>, vector<1x19x32xf32>
    %39 = vector.shape_cast %38 : vector<1x19x32xf32> to vector<19x32xf32>
    %40 = vector.shape_cast %37 : vector<19x32xf32> to vector<1x19x32xf32>
    tpu.vector_store %arg8[%c0_21, %c0_22, %c0_23], %40 {strides = array<i32>} : memref<1x19x32xf32, #tpu.memory_space<vmem>>, vector<1x19x32xf32>,
    return
  }
  func.func @transform_0(%arg0: i32) -> (i32, i32, i32) {
    %c0_i32 = arith.constant 0 : i32
    %c0_i32_0 = arith.constant 0 : i32
    %c0_i32_1 = arith.constant 0 : i32
    return %arg0, %c0_i32, %c0_i32_0 : i32, i32, i32
  }
  func.func @transform_1(%arg0: i32) -> (i32, i32) {
    %c0_i32 = arith.constant 0 : i32
    %c0_i32_0 = arith.constant 0 : i32
    %c0_i32_1 = arith.constant 0 : i32
    return %c0_i32, %c0_i32_0 : i32, i32
  }
  func.func @transform_2(%arg0: i32) -> (i32, i32) {
    %c0_i32 = arith.constant 0 : i32
    %c0_i32_0 = arith.constant 0 : i32
    %c0_i32_1 = arith.constant 0 : i32
    return %c0_i32, %c0_i32_0 : i32, i32
  }
  func.func @transform_3(%arg0: i32) -> (i32, i32) {
    %c0_i32 = arith.constant 0 : i32
    %c0_i32_0 = arith.constant 0 : i32
    %c0_i32_1 = arith.constant 0 : i32
    return %c0_i32, %c0_i32_0 : i32, i32
  }
  func.func @transform_4(%arg0: i32) -> (i32, i32) {
    %c0_i32 = arith.constant 0 : i32
    %c0_i32_0 = arith.constant 0 : i32
    %c0_i32_1 = arith.constant 0 : i32
    return %c0_i32, %c0_i32_0 : i32, i32
  }
  func.func @transform_5(%arg0: i32) -> (i32, i32) {
    %c0_i32 = arith.constant 0 : i32
    %c0_i32_0 = arith.constant 0 : i32
    %c0_i32_1 = arith.constant 0 : i32
    return %c0_i32, %c0_i32_0 : i32, i32
  }
  func.func @transform_6(%arg0: i32) -> (i32, i32) {
    %c0_i32 = arith.constant 0 : i32
    %c0_i32_0 = arith.constant 0 : i32
    %c0_i32_1 = arith.constant 0 : i32
    return %c0_i32, %c0_i32_0 : i32, i32
  }
  func.func @transform_7(%arg0: i32) -> (i32, i32, i32) {
    %c0_i32 = arith.constant 0 : i32
    %c0_i32_0 = arith.constant 0 : i32
    %c0_i32_1 = arith.constant 0 : i32
    return %arg0, %c0_i32, %c0_i32_0 : i32, i32, i32
  }
}

module attributes {stable_mosaic.version = 11 : i64} {
  func.func @_resnet_kernel(%arg0: i32, %arg1: memref<1x19x32xf32, #tpu.memory_space<vmem>>, %arg2: memref<32x32xf32, #tpu.memory_space<vmem>>, %arg3: memref<1x32xf32, #tpu.memory_space<vmem>>, %arg4: memref<32x32xf32, #tpu.memory_space<vmem>>, %arg5: memref<1x32xf32, #tpu.memory_space<vmem>>, %arg6: memref<1x2xf32, #tpu.memory_space<vmem>>, %arg7: memref<1x19x32xf32, #tpu.memory_space<vmem>>) attributes {dimension_semantics = [#tpu.dimension_semantics<parallel>], iteration_bounds = array<i64: 2>, scalar_prefetch = 0 : i64, scratch_operands = 0 : i64, tpu.core_type = #tpu.core_type<tc>, window_params = [{transform_indices = @transform_0, window_bounds = array<i64: 1, 19, 32>}, {pipeline_mode = #tpu.pipeline_mode<synchronous>, transform_indices = @transform_1, window_bounds = array<i64: 32, 32>}, {pipeline_mode = #tpu.pipeline_mode<synchronous>, transform_indices = @transform_2, window_bounds = array<i64: 1, 32>}, {pipeline_mode = #tpu.pipeline_mode<synchronous>, transform_indices = @transform_3, window_bounds = array<i64: 32, 32>}, {pipeline_mode = #tpu.pipeline_mode<synchronous>, transform_indices = @transform_4, window_bounds = array<i64: 1, 32>}, {pipeline_mode = #tpu.pipeline_mode<synchronous>, transform_indices = @transform_5, window_bounds = array<i64: 1, 2>}, {transform_indices = @transform_6, window_bounds = array<i64: 1, 19, 32>}]} {
    %c0 = arith.constant 0 : index
    %c0_0 = arith.constant 0 : index
    %c0_1 = arith.constant 0 : index
    %0 = vector.load %arg1[%c0, %c0_0, %c0_1] : memref<1x19x32xf32, #tpu.memory_space<vmem>>, vector<1x19x32xf32>
    %1 = vector.shape_cast %0 : vector<1x19x32xf32> to vector<19x32xf32>
    %c0_2 = arith.constant 0 : index
    %c0_3 = arith.constant 0 : index
    %2 = vector.load %arg6[%c0_2, %c0_3] : memref<1x2xf32, #tpu.memory_space<vmem>>, vector<1x1xf32>
    %3 = vector.extract %2[0, 0] : f32 from vector<1x1xf32>
    %c0_4 = arith.constant 0 : index
    %c1 = arith.constant 1 : index
    %4 = vector.load %arg6[%c0_4, %c1] : memref<1x2xf32, #tpu.memory_space<vmem>>, vector<1x1xf32>
    %5 = vector.extract %4[0, 0] : f32 from vector<1x1xf32>
    %c0_5 = arith.constant 0 : index
    %c0_6 = arith.constant 0 : index
    %6 = vector.load %arg2[%c0_5, %c0_6] : memref<32x32xf32, #tpu.memory_space<vmem>>, vector<32x32xf32>
    %cst = arith.constant dense<0.000000e+00> : vector<19x32xf32>
    %7 = tpu.matmul %1, %6, %cst {dimension_numbers = #tpu.dot_dimension_numbers<[1], [0], [0], [1], [0, 0, 1, 1], [], []>} : vector<19x32xf32>, vector<32x32xf32>, vector<19x32xf32> -> vector<19x32xf32>
    %c0_7 = arith.constant 0 : index
    %c0_8 = arith.constant 0 : index
    %8 = vector.load %arg3[%c0_7, %c0_8] : memref<1x32xf32, #tpu.memory_space<vmem>>, vector<1x32xf32>
    %9 = vector.broadcast %8 : vector<1x32xf32> to vector<19x32xf32>
    %10 = arith.addf %7, %9 : vector<19x32xf32>
    %cst_9 = arith.constant 0.000000e+00 : f32
    %11 = vector.broadcast %cst_9 : f32 to vector<19x32xf32>
    %12 = arith.cmpf oge, %10, %11 : vector<19x32xf32>
    %13 = vector.broadcast %3 : f32 to vector<19x32xf32>
    %14 = arith.mulf %13, %10 : vector<19x32xf32>
    %15 = arith.select %12, %10, %14 : vector<19x32xi1>, vector<19x32xf32>
    %c0_10 = arith.constant 0 : index
    %c0_11 = arith.constant 0 : index
    %16 = vector.load %arg4[%c0_10, %c0_11] : memref<32x32xf32, #tpu.memory_space<vmem>>, vector<32x32xf32>
    %cst_12 = arith.constant dense<0.000000e+00> : vector<19x32xf32>
    %17 = tpu.matmul %15, %16, %cst_12 {dimension_numbers = #tpu.dot_dimension_numbers<[1], [0], [0], [1], [0, 0, 1, 1], [], []>} : vector<19x32xf32>, vector<32x32xf32>, vector<19x32xf32> -> vector<19x32xf32>
    %c0_13 = arith.constant 0 : index
    %c0_14 = arith.constant 0 : index
    %18 = vector.load %arg5[%c0_13, %c0_14] : memref<1x32xf32, #tpu.memory_space<vmem>>, vector<1x32xf32>
    %19 = vector.broadcast %18 : vector<1x32xf32> to vector<19x32xf32>
    %20 = arith.addf %17, %19 : vector<19x32xf32>
    %21 = arith.addf %20, %1 : vector<19x32xf32>
    %cst_15 = arith.constant 0.000000e+00 : f32
    %22 = vector.broadcast %cst_15 : f32 to vector<19x32xf32>
    %23 = arith.cmpf oge, %21, %22 : vector<19x32xf32>
    %24 = vector.broadcast %5 : f32 to vector<19x32xf32>
    %25 = arith.mulf %24, %21 : vector<19x32xf32>
    %26 = arith.select %23, %21, %25 : vector<19x32xi1>, vector<19x32xf32>
    %c0_16 = arith.constant 0 : index
    %c0_17 = arith.constant 0 : index
    %c0_18 = arith.constant 0 : index
    %27 = vector.load %arg7[%c0_16, %c0_17, %c0_18] : memref<1x19x32xf32, #tpu.memory_space<vmem>>, vector<1x19x32xf32>
    %28 = vector.shape_cast %27 : vector<1x19x32xf32> to vector<19x32xf32>
    %29 = vector.shape_cast %26 : vector<19x32xf32> to vector<1x19x32xf32>
    tpu.vector_store %arg7[%c0_16, %c0_17, %c0_18], %29 {strides = array<i32>} : memref<1x19x32xf32, #tpu.memory_space<vmem>>, vector<1x19x32xf32>,
    return
  }
  func.func @transform_0(%arg0: i32) -> (i32, i32, i32) {
    %c0_i32 = arith.constant 0 : i32
    %c0_i32_0 = arith.constant 0 : i32
    %c0_i32_1 = arith.constant 0 : i32
    return %arg0, %c0_i32, %c0_i32_0 : i32, i32, i32
  }
  func.func @transform_1(%arg0: i32) -> (i32, i32) {
    %c0_i32 = arith.constant 0 : i32
    %c0_i32_0 = arith.constant 0 : i32
    %c0_i32_1 = arith.constant 0 : i32
    return %c0_i32, %c0_i32_0 : i32, i32
  }
  func.func @transform_2(%arg0: i32) -> (i32, i32) {
    %c0_i32 = arith.constant 0 : i32
    %c0_i32_0 = arith.constant 0 : i32
    %c0_i32_1 = arith.constant 0 : i32
    return %c0_i32, %c0_i32_0 : i32, i32
  }
  func.func @transform_3(%arg0: i32) -> (i32, i32) {
    %c0_i32 = arith.constant 0 : i32
    %c0_i32_0 = arith.constant 0 : i32
    %c0_i32_1 = arith.constant 0 : i32
    return %c0_i32, %c0_i32_0 : i32, i32
  }
  func.func @transform_4(%arg0: i32) -> (i32, i32) {
    %c0_i32 = arith.constant 0 : i32
    %c0_i32_0 = arith.constant 0 : i32
    %c0_i32_1 = arith.constant 0 : i32
    return %c0_i32, %c0_i32_0 : i32, i32
  }
  func.func @transform_5(%arg0: i32) -> (i32, i32) {
    %c0_i32 = arith.constant 0 : i32
    %c0_i32_0 = arith.constant 0 : i32
    %c0_i32_1 = arith.constant 0 : i32
    return %c0_i32, %c0_i32_0 : i32, i32
  }
  func.func @transform_6(%arg0: i32) -> (i32, i32, i32) {
    %c0_i32 = arith.constant 0 : i32
    %c0_i32_0 = arith.constant 0 : i32
    %c0_i32_1 = arith.constant 0 : i32
    return %arg0, %c0_i32, %c0_i32_0 : i32, i32, i32
  }
}

module attributes {stable_mosaic.version = 11 : i64} {
  func.func @_resnet_kernel(%arg0: i32, %arg1: memref<1x6x32xf32, #tpu.memory_space<vmem>>, %arg2: memref<32x32xf32, #tpu.memory_space<vmem>>, %arg3: memref<1x32xf32, #tpu.memory_space<vmem>>, %arg4: memref<32x32xf32, #tpu.memory_space<vmem>>, %arg5: memref<1x32xf32, #tpu.memory_space<vmem>>, %arg6: memref<1x2xf32, #tpu.memory_space<vmem>>, %arg7: memref<1x6x32xf32, #tpu.memory_space<vmem>>) attributes {dimension_semantics = [#tpu.dimension_semantics<parallel>], iteration_bounds = array<i64: 2>, scalar_prefetch = 0 : i64, scratch_operands = 0 : i64, tpu.core_type = #tpu.core_type<tc>, window_params = [{transform_indices = @transform_0, window_bounds = array<i64: 1, 6, 32>}, {pipeline_mode = #tpu.pipeline_mode<synchronous>, transform_indices = @transform_1, window_bounds = array<i64: 32, 32>}, {pipeline_mode = #tpu.pipeline_mode<synchronous>, transform_indices = @transform_2, window_bounds = array<i64: 1, 32>}, {pipeline_mode = #tpu.pipeline_mode<synchronous>, transform_indices = @transform_3, window_bounds = array<i64: 32, 32>}, {pipeline_mode = #tpu.pipeline_mode<synchronous>, transform_indices = @transform_4, window_bounds = array<i64: 1, 32>}, {pipeline_mode = #tpu.pipeline_mode<synchronous>, transform_indices = @transform_5, window_bounds = array<i64: 1, 2>}, {transform_indices = @transform_6, window_bounds = array<i64: 1, 6, 32>}]} {
    %c0 = arith.constant 0 : index
    %c0_0 = arith.constant 0 : index
    %c0_1 = arith.constant 0 : index
    %0 = vector.load %arg1[%c0, %c0_0, %c0_1] : memref<1x6x32xf32, #tpu.memory_space<vmem>>, vector<1x6x32xf32>
    %1 = vector.shape_cast %0 : vector<1x6x32xf32> to vector<6x32xf32>
    %c0_2 = arith.constant 0 : index
    %c0_3 = arith.constant 0 : index
    %2 = vector.load %arg6[%c0_2, %c0_3] : memref<1x2xf32, #tpu.memory_space<vmem>>, vector<1x1xf32>
    %3 = vector.extract %2[0, 0] : f32 from vector<1x1xf32>
    %c0_4 = arith.constant 0 : index
    %c1 = arith.constant 1 : index
    %4 = vector.load %arg6[%c0_4, %c1] : memref<1x2xf32, #tpu.memory_space<vmem>>, vector<1x1xf32>
    %5 = vector.extract %4[0, 0] : f32 from vector<1x1xf32>
    %c0_5 = arith.constant 0 : index
    %c0_6 = arith.constant 0 : index
    %6 = vector.load %arg2[%c0_5, %c0_6] : memref<32x32xf32, #tpu.memory_space<vmem>>, vector<32x32xf32>
    %cst = arith.constant dense<0.000000e+00> : vector<6x32xf32>
    %7 = tpu.matmul %1, %6, %cst {dimension_numbers = #tpu.dot_dimension_numbers<[1], [0], [0], [1], [0, 0, 1, 1], [], []>} : vector<6x32xf32>, vector<32x32xf32>, vector<6x32xf32> -> vector<6x32xf32>
    %c0_7 = arith.constant 0 : index
    %c0_8 = arith.constant 0 : index
    %8 = vector.load %arg3[%c0_7, %c0_8] : memref<1x32xf32, #tpu.memory_space<vmem>>, vector<1x32xf32>
    %9 = vector.broadcast %8 : vector<1x32xf32> to vector<6x32xf32>
    %10 = arith.addf %7, %9 : vector<6x32xf32>
    %cst_9 = arith.constant 0.000000e+00 : f32
    %11 = vector.broadcast %cst_9 : f32 to vector<6x32xf32>
    %12 = arith.cmpf oge, %10, %11 : vector<6x32xf32>
    %13 = vector.broadcast %3 : f32 to vector<6x32xf32>
    %14 = arith.mulf %13, %10 : vector<6x32xf32>
    %15 = arith.select %12, %10, %14 : vector<6x32xi1>, vector<6x32xf32>
    %c0_10 = arith.constant 0 : index
    %c0_11 = arith.constant 0 : index
    %16 = vector.load %arg4[%c0_10, %c0_11] : memref<32x32xf32, #tpu.memory_space<vmem>>, vector<32x32xf32>
    %cst_12 = arith.constant dense<0.000000e+00> : vector<6x32xf32>
    %17 = tpu.matmul %15, %16, %cst_12 {dimension_numbers = #tpu.dot_dimension_numbers<[1], [0], [0], [1], [0, 0, 1, 1], [], []>} : vector<6x32xf32>, vector<32x32xf32>, vector<6x32xf32> -> vector<6x32xf32>
    %c0_13 = arith.constant 0 : index
    %c0_14 = arith.constant 0 : index
    %18 = vector.load %arg5[%c0_13, %c0_14] : memref<1x32xf32, #tpu.memory_space<vmem>>, vector<1x32xf32>
    %19 = vector.broadcast %18 : vector<1x32xf32> to vector<6x32xf32>
    %20 = arith.addf %17, %19 : vector<6x32xf32>
    %21 = arith.addf %20, %1 : vector<6x32xf32>
    %cst_15 = arith.constant 0.000000e+00 : f32
    %22 = vector.broadcast %cst_15 : f32 to vector<6x32xf32>
    %23 = arith.cmpf oge, %21, %22 : vector<6x32xf32>
    %24 = vector.broadcast %5 : f32 to vector<6x32xf32>
    %25 = arith.mulf %24, %21 : vector<6x32xf32>
    %26 = arith.select %23, %21, %25 : vector<6x32xi1>, vector<6x32xf32>
    %c0_16 = arith.constant 0 : index
    %c0_17 = arith.constant 0 : index
    %c0_18 = arith.constant 0 : index
    %27 = vector.load %arg7[%c0_16, %c0_17, %c0_18] : memref<1x6x32xf32, #tpu.memory_space<vmem>>, vector<1x6x32xf32>
    %28 = vector.shape_cast %27 : vector<1x6x32xf32> to vector<6x32xf32>
    %29 = vector.shape_cast %26 : vector<6x32xf32> to vector<1x6x32xf32>
    tpu.vector_store %arg7[%c0_16, %c0_17, %c0_18], %29 {strides = array<i32>} : memref<1x6x32xf32, #tpu.memory_space<vmem>>, vector<1x6x32xf32>,
    return
  }
  func.func @transform_0(%arg0: i32) -> (i32, i32, i32) {
    %c0_i32 = arith.constant 0 : i32
    %c0_i32_0 = arith.constant 0 : i32
    %c0_i32_1 = arith.constant 0 : i32
    return %arg0, %c0_i32, %c0_i32_0 : i32, i32, i32
  }
  func.func @transform_1(%arg0: i32) -> (i32, i32) {
    %c0_i32 = arith.constant 0 : i32
    %c0_i32_0 = arith.constant 0 : i32
    %c0_i32_1 = arith.constant 0 : i32
    return %c0_i32, %c0_i32_0 : i32, i32
  }
  func.func @transform_2(%arg0: i32) -> (i32, i32) {
    %c0_i32 = arith.constant 0 : i32
    %c0_i32_0 = arith.constant 0 : i32
    %c0_i32_1 = arith.constant 0 : i32
    return %c0_i32, %c0_i32_0 : i32, i32
  }
  func.func @transform_3(%arg0: i32) -> (i32, i32) {
    %c0_i32 = arith.constant 0 : i32
    %c0_i32_0 = arith.constant 0 : i32
    %c0_i32_1 = arith.constant 0 : i32
    return %c0_i32, %c0_i32_0 : i32, i32
  }
  func.func @transform_4(%arg0: i32) -> (i32, i32) {
    %c0_i32 = arith.constant 0 : i32
    %c0_i32_0 = arith.constant 0 : i32
    %c0_i32_1 = arith.constant 0 : i32
    return %c0_i32, %c0_i32_0 : i32, i32
  }
  func.func @transform_5(%arg0: i32) -> (i32, i32) {
    %c0_i32 = arith.constant 0 : i32
    %c0_i32_0 = arith.constant 0 : i32
    %c0_i32_1 = arith.constant 0 : i32
    return %c0_i32, %c0_i32_0 : i32, i32
  }
  func.func @transform_6(%arg0: i32) -> (i32, i32, i32) {
    %c0_i32 = arith.constant 0 : i32
    %c0_i32_0 = arith.constant 0 : i32
    %c0_i32_1 = arith.constant 0 : i32
    return %arg0, %c0_i32, %c0_i32_0 : i32, i32, i32
  }
}

module attributes {stable_mosaic.version = 11 : i64} {
  func.func @_se_tail_kernel(%arg0: i32, %arg1: memref<1x2x32xf32, #tpu.memory_space<vmem>>, %arg2: memref<32x32xf32, #tpu.memory_space<vmem>>, %arg3: memref<1x32xf32, #tpu.memory_space<vmem>>, %arg4: memref<32x10xf32, #tpu.memory_space<vmem>>, %arg5: memref<1x10xf32, #tpu.memory_space<vmem>>, %arg6: memref<1x1x32xf32, #tpu.memory_space<vmem>>, %arg7: memref<1x1x10xf32, #tpu.memory_space<vmem>>) attributes {dimension_semantics = [#tpu.dimension_semantics<parallel>], iteration_bounds = array<i64: 2>, scalar_prefetch = 0 : i64, scratch_operands = 0 : i64, tpu.core_type = #tpu.core_type<tc>, window_params = [{transform_indices = @transform_0, window_bounds = array<i64: 1, 2, 32>}, {pipeline_mode = #tpu.pipeline_mode<synchronous>, transform_indices = @transform_1, window_bounds = array<i64: 32, 32>}, {pipeline_mode = #tpu.pipeline_mode<synchronous>, transform_indices = @transform_2, window_bounds = array<i64: 1, 32>}, {pipeline_mode = #tpu.pipeline_mode<synchronous>, transform_indices = @transform_3, window_bounds = array<i64: 32, 10>}, {pipeline_mode = #tpu.pipeline_mode<synchronous>, transform_indices = @transform_4, window_bounds = array<i64: 1, 10>}, {transform_indices = @transform_5, window_bounds = array<i64: 1, 1, 32>}, {transform_indices = @transform_6, window_bounds = array<i64: 1, 1, 10>}]} {
    %c0 = arith.constant 0 : index
    %c0_0 = arith.constant 0 : index
    %c0_1 = arith.constant 0 : index
    %0 = vector.load %arg1[%c0, %c0_0, %c0_1] : memref<1x2x32xf32, #tpu.memory_space<vmem>>, vector<1x2x32xf32>
    %1 = vector.shape_cast %0 : vector<1x2x32xf32> to vector<2x32xf32>
    %c0_2 = arith.constant 0 : index
    %c0_3 = arith.constant 0 : index
    %2 = vector.load %arg2[%c0_2, %c0_3] : memref<32x32xf32, #tpu.memory_space<vmem>>, vector<32x32xf32>
    %cst = arith.constant dense<0.000000e+00> : vector<2x32xf32>
    %3 = tpu.matmul %1, %2, %cst {dimension_numbers = #tpu.dot_dimension_numbers<[1], [0], [0], [1], [0, 0, 1, 1], [], []>} : vector<2x32xf32>, vector<32x32xf32>, vector<2x32xf32> -> vector<2x32xf32>
    %c0_4 = arith.constant 0 : index
    %c0_5 = arith.constant 0 : index
    %4 = vector.load %arg3[%c0_4, %c0_5] : memref<1x32xf32, #tpu.memory_space<vmem>>, vector<1x32xf32>
    %5 = vector.broadcast %4 : vector<1x32xf32> to vector<2x32xf32>
    %6 = arith.addf %3, %5 : vector<2x32xf32>
    %cst_6 = arith.constant dense<0.000000e+00> : vector<32xf32>
    %7 = vector.multi_reduction <add>, %6, %cst_6 [0] : vector<2x32xf32> to vector<32xf32>
    %8 = vector.shape_cast %7 : vector<32xf32> to vector<1x32xf32>
    %cst_7 = arith.constant 2.000000e+00 : f32
    %9 = vector.broadcast %cst_7 : f32 to vector<1x32xf32>
    %10 = arith.divf %8, %9 : vector<1x32xf32>
    %c0_8 = arith.constant 0 : index
    %c0_9 = arith.constant 0 : index
    %11 = vector.load %arg4[%c0_8, %c0_9] : memref<32x10xf32, #tpu.memory_space<vmem>>, vector<32x10xf32>
    %cst_10 = arith.constant dense<0.000000e+00> : vector<1x10xf32>
    %12 = tpu.matmul %10, %11, %cst_10 {dimension_numbers = #tpu.dot_dimension_numbers<[1], [0], [0], [1], [0, 0, 1, 1], [], []>} : vector<1x32xf32>, vector<32x10xf32>, vector<1x10xf32> -> vector<1x10xf32>
    %c0_11 = arith.constant 0 : index
    %c0_12 = arith.constant 0 : index
    %13 = vector.load %arg5[%c0_11, %c0_12] : memref<1x10xf32, #tpu.memory_space<vmem>>, vector<1x10xf32>
    %14 = arith.addf %12, %13 : vector<1x10xf32>
    %c0_13 = arith.constant 0 : index
    %c0_14 = arith.constant 0 : index
    %c0_15 = arith.constant 0 : index
    %15 = vector.load %arg6[%c0_13, %c0_14, %c0_15] : memref<1x1x32xf32, #tpu.memory_space<vmem>>, vector<1x1x32xf32>
    %16 = vector.shape_cast %15 : vector<1x1x32xf32> to vector<1x32xf32>
    %17 = vector.shape_cast %10 : vector<1x32xf32> to vector<1x1x32xf32>
    tpu.vector_store %arg6[%c0_13, %c0_14, %c0_15], %17 {strides = array<i32>} : memref<1x1x32xf32, #tpu.memory_space<vmem>>, vector<1x1x32xf32>,
    %c0_16 = arith.constant 0 : index
    %c0_17 = arith.constant 0 : index
    %c0_18 = arith.constant 0 : index
    %18 = vector.load %arg7[%c0_16, %c0_17, %c0_18] : memref<1x1x10xf32, #tpu.memory_space<vmem>>, vector<1x1x10xf32>
    %19 = vector.shape_cast %18 : vector<1x1x10xf32> to vector<1x10xf32>
    %20 = vector.shape_cast %14 : vector<1x10xf32> to vector<1x1x10xf32>
    tpu.vector_store %arg7[%c0_16, %c0_17, %c0_18], %20 {strides = array<i32>} : memref<1x1x10xf32, #tpu.memory_space<vmem>>, vector<1x1x10xf32>,
    return
  }
  func.func @transform_0(%arg0: i32) -> (i32, i32, i32) {
    %c0_i32 = arith.constant 0 : i32
    %c0_i32_0 = arith.constant 0 : i32
    %c0_i32_1 = arith.constant 0 : i32
    return %arg0, %c0_i32, %c0_i32_0 : i32, i32, i32
  }
  func.func @transform_1(%arg0: i32) -> (i32, i32) {
    %c0_i32 = arith.constant 0 : i32
    %c0_i32_0 = arith.constant 0 : i32
    %c0_i32_1 = arith.constant 0 : i32
    return %c0_i32, %c0_i32_0 : i32, i32
  }
  func.func @transform_2(%arg0: i32) -> (i32, i32) {
    %c0_i32 = arith.constant 0 : i32
    %c0_i32_0 = arith.constant 0 : i32
    %c0_i32_1 = arith.constant 0 : i32
    return %c0_i32, %c0_i32_0 : i32, i32
  }
  func.func @transform_3(%arg0: i32) -> (i32, i32) {
    %c0_i32 = arith.constant 0 : i32
    %c0_i32_0 = arith.constant 0 : i32
    %c0_i32_1 = arith.constant 0 : i32
    return %c0_i32, %c0_i32_0 : i32, i32
  }
  func.func @transform_4(%arg0: i32) -> (i32, i32) {
    %c0_i32 = arith.constant 0 : i32
    %c0_i32_0 = arith.constant 0 : i32
    %c0_i32_1 = arith.constant 0 : i32
    return %c0_i32, %c0_i32_0 : i32, i32
  }
  func.func @transform_5(%arg0: i32) -> (i32, i32, i32) {
    %c0_i32 = arith.constant 0 : i32
    %c0_i32_0 = arith.constant 0 : i32
    %c0_i32_1 = arith.constant 0 : i32
    return %arg0, %c0_i32, %c0_i32_0 : i32, i32, i32
  }
  func.func @transform_6(%arg0: i32) -> (i32, i32, i32) {
    %c0_i32 = arith.constant 0 : i32
    %c0_i32_0 = arith.constant 0 : i32
    %c0_i32_1 = arith.constant 0 : i32
    return %arg0, %c0_i32, %c0_i32_0 : i32, i32, i32
  }
}

module attributes {stable_mosaic.version = 11 : i64} {
  func.func @_chunk_kernel(%arg0: i32, %arg1: i32, %arg2: memref<1x1x16x16xf32, #tpu.memory_space<vmem>>, %arg3: memref<1x1x32xf32, #tpu.memory_space<vmem>>, %arg4: memref<16x16xf32, #tpu.memory_space<vmem>>, %arg5: memref<1x16xf32, #tpu.memory_space<vmem>>, %arg6: memref<1x16xf32, #tpu.memory_space<vmem>>, %arg7: memref<1x16xf32, #tpu.memory_space<vmem>>, %arg8: memref<16x16xf32, #tpu.memory_space<vmem>>, %arg9: memref<1x16xf32, #tpu.memory_space<vmem>>, %arg10: memref<6x16x32xf32, #tpu.memory_space<vmem>>, %arg11: memref<6x8x32xf32, #tpu.memory_space<vmem>>, %arg12: memref<2x32x32xf32, #tpu.memory_space<vmem>>, %arg13: memref<6x1x32xf32, #tpu.memory_space<vmem>>, %arg14: memref<6x1x32xf32, #tpu.memory_space<vmem>>, %arg15: memref<6x1x32xf32, #tpu.memory_space<vmem>>, %arg16: memref<6x1x32xf32, #tpu.memory_space<vmem>>, %arg17: memref<6x1x32xf32, #tpu.memory_space<vmem>>, %arg18: memref<6x1x32xf32, #tpu.memory_space<vmem>>, %arg19: memref<6x1x32xf32, #tpu.memory_space<vmem>>, %arg20: memref<6x1x32xf32, #tpu.memory_space<vmem>>, %arg21: memref<6x1x32xf32, #tpu.memory_space<vmem>>, %arg22: memref<6x32x16xf32, #tpu.memory_space<vmem>>, %arg23: memref<6x32x8xf32, #tpu.memory_space<vmem>>, %arg24: memref<6x1x16xf32, #tpu.memory_space<vmem>>, %arg25: memref<6x1x8xf32, #tpu.memory_space<vmem>>, %arg26: memref<16x16xf32, #tpu.memory_space<vmem>>, %arg27: memref<1x16xf32, #tpu.memory_space<vmem>>, %arg28: memref<16x8xf32, #tpu.memory_space<vmem>>, %arg29: memref<16x8xf32, #tpu.memory_space<vmem>>, %arg30: memref<1x13xf32, #tpu.memory_space<vmem>>, %arg31: memref<1x1x17x8xf32, #tpu.memory_space<vmem>>, %arg32: memref<16x8xf32, #tpu.memory_space<vmem>>) attributes {dimension_semantics = [#tpu.dimension_semantics<parallel>, #tpu.dimension_semantics<arbitrary>], iteration_bounds = array<i64: 2, 2>, scalar_prefetch = 0 : i64, scratch_operands = 1 : i64, tpu.core_type = #tpu.core_type<tc>, window_params = [{transform_indices = @transform_0, window_bounds = array<i64: 1, 1, 16, 16>}, {transform_indices = @transform_1, window_bounds = array<i64: 1, 1, 32>}, {pipeline_mode = #tpu.pipeline_mode<synchronous>, transform_indices = @transform_2, window_bounds = array<i64: 16, 16>}, {pipeline_mode = #tpu.pipeline_mode<synchronous>, transform_indices = @transform_3, window_bounds = array<i64: 1, 16>}, {pipeline_mode = #tpu.pipeline_mode<synchronous>, transform_indices = @transform_4, window_bounds = array<i64: 1, 16>}, {pipeline_mode = #tpu.pipeline_mode<synchronous>, transform_indices = @transform_5, window_bounds = array<i64: 1, 16>}, {pipeline_mode = #tpu.pipeline_mode<synchronous>, transform_indices = @transform_6, window_bounds = array<i64: 16, 16>}, {pipeline_mode = #tpu.pipeline_mode<synchronous>, transform_indices = @transform_7, window_bounds = array<i64: 1, 16>}, {pipeline_mode = #tpu.pipeline_mode<synchronous>, transform_indices = @transform_8, window_bounds = array<i64: 6, 16, 32>}, {pipeline_mode = #tpu.pipeline_mode<synchronous>, transform_indices = @transform_9, window_bounds = array<i64: 6, 8, 32>}, {pipeline_mode = #tpu.pipeline_mode<synchronous>, transform_indices = @transform_10, window_bounds = array<i64: 2, 32, 32>}, {pipeline_mode = #tpu.pipeline_mode<synchronous>, transform_indices = @transform_11, window_bounds = array<i64: 6, 1, 32>}, {pipeline_mode = #tpu.pipeline_mode<synchronous>, transform_indices = @transform_12, window_bounds = array<i64: 6, 1, 32>}, {pipeline_mode = #tpu.pipeline_mode<synchronous>, transform_indices = @transform_13, window_bounds = array<i64: 6, 1, 32>}, {pipeline_mode = #tpu.pipeline_mode<synchronous>, transform_indices = @transform_14, window_bounds = array<i64: 6, 1, 32>}, {pipeline_mode = #tpu.pipeline_mode<synchronous>, transform_indices = @transform_15, window_bounds = array<i64: 6, 1, 32>}, {pipeline_mode = #tpu.pipeline_mode<synchronous>, transform_indices = @transform_16, window_bounds = array<i64: 6, 1, 32>}, {pipeline_mode = #tpu.pipeline_mode<synchronous>, transform_indices = @transform_17, window_bounds = array<i64: 6, 1, 32>}, {pipeline_mode = #tpu.pipeline_mode<synchronous>, transform_indices = @transform_18, window_bounds = array<i64: 6, 1, 32>}, {pipeline_mode = #tpu.pipeline_mode<synchronous>, transform_indices = @transform_19, window_bounds = array<i64: 6, 1, 32>}, {pipeline_mode = #tpu.pipeline_mode<synchronous>, transform_indices = @transform_20, window_bounds = array<i64: 6, 32, 16>}, {pipeline_mode = #tpu.pipeline_mode<synchronous>, transform_indices = @transform_21, window_bounds = array<i64: 6, 32, 8>}, {pipeline_mode = #tpu.pipeline_mode<synchronous>, transform_indices = @transform_22, window_bounds = array<i64: 6, 1, 16>}, {pipeline_mode = #tpu.pipeline_mode<synchronous>, transform_indices = @transform_23, window_bounds = array<i64: 6, 1, 8>}, {pipeline_mode = #tpu.pipeline_mode<synchronous>, transform_indices = @transform_24, window_bounds = array<i64: 16, 16>}, {pipeline_mode = #tpu.pipeline_mode<synchronous>, transform_indices = @transform_25, window_bounds = array<i64: 1, 16>}, {pipeline_mode = #tpu.pipeline_mode<synchronous>, transform_indices = @transform_26, window_bounds = array<i64: 16, 8>}, {pipeline_mode = #tpu.pipeline_mode<synchronous>, transform_indices = @transform_27, window_bounds = array<i64: 16, 8>}, {pipeline_mode = #tpu.pipeline_mode<synchronous>, transform_indices = @transform_28, window_bounds = array<i64: 1, 13>}, {transform_indices = @transform_29, window_bounds = array<i64: 1, 1, 17, 8>}]} {
    %c0_i32 = arith.constant 0 : i32
    %0 = arith.cmpi eq, %arg1, %c0_i32 : i32
    %1 = arith.extui %0 : i1 to i32
    %c0_i32_0 = arith.constant 0 : i32
    %2 = arith.cmpi ne, %1, %c0_i32_0 : i32
    scf.if %2 {
      %cst_479 = arith.constant 0.000000e+00 : f32
      %881 = vector.broadcast %cst_479 : f32 to vector<16x8xf32>
      %c0_480 = arith.constant 0 : index
      %c0_481 = arith.constant 0 : index
      %882 = vector.load %arg32[%c0_480, %c0_481] : memref<16x8xf32, #tpu.memory_space<vmem>>, vector<16x8xf32>
      tpu.vector_store %arg32[%c0_480, %c0_481], %881 {strides = array<i32>} : memref<16x8xf32, #tpu.memory_space<vmem>>, vector<16x8xf32>,
    } else {
    }
    %3 = tpu.iota {dimensions = array<i32: 0>} : vector<16x1xi32>
    %c-4_i32 = arith.constant -4 : i32
    %4 = vector.broadcast %c-4_i32 : i32 to vector<16x1xi32>
    %5 = arith.addi %3, %4 : vector<16x1xi32>
    %c0_i32_1 = arith.constant 0 : i32
    %6 = vector.broadcast %c0_i32_1 : i32 to vector<16x1xi32>
    %7 = arith.cmpi sge, %5, %6 : vector<16x1xi32>
    %c-4_i32_2 = arith.constant -4 : i32
    %8 = vector.broadcast %c-4_i32_2 : i32 to vector<16x1xi32>
    %9 = arith.addi %3, %8 : vector<16x1xi32>
    %c16_i32 = arith.constant 16 : i32
    %10 = vector.broadcast %c16_i32 : i32 to vector<16x1xi32>
    %11 = arith.cmpi slt, %9, %10 : vector<16x1xi32>
    %12 = arith.andi %7, %11 : vector<16x1xi1>
    %c-2_i32 = arith.constant -2 : i32
    %13 = vector.broadcast %c-2_i32 : i32 to vector<16x1xi32>
    %14 = arith.addi %3, %13 : vector<16x1xi32>
    %c0_i32_3 = arith.constant 0 : i32
    %15 = vector.broadcast %c0_i32_3 : i32 to vector<16x1xi32>
    %16 = arith.cmpi sge, %14, %15 : vector<16x1xi32>
    %c-2_i32_4 = arith.constant -2 : i32
    %17 = vector.broadcast %c-2_i32_4 : i32 to vector<16x1xi32>
    %18 = arith.addi %3, %17 : vector<16x1xi32>
    %c16_i32_5 = arith.constant 16 : i32
    %19 = vector.broadcast %c16_i32_5 : i32 to vector<16x1xi32>
    %20 = arith.cmpi slt, %18, %19 : vector<16x1xi32>
    %21 = arith.andi %16, %20 : vector<16x1xi1>
    %c-1_i32 = arith.constant -1 : i32
    %22 = vector.broadcast %c-1_i32 : i32 to vector<16x1xi32>
    %23 = arith.addi %3, %22 : vector<16x1xi32>
    %c0_i32_6 = arith.constant 0 : i32
    %24 = vector.broadcast %c0_i32_6 : i32 to vector<16x1xi32>
    %25 = arith.cmpi sge, %23, %24 : vector<16x1xi32>
    %c-1_i32_7 = arith.constant -1 : i32
    %26 = vector.broadcast %c-1_i32_7 : i32 to vector<16x1xi32>
    %27 = arith.addi %3, %26 : vector<16x1xi32>
    %c16_i32_8 = arith.constant 16 : i32
    %28 = vector.broadcast %c16_i32_8 : i32 to vector<16x1xi32>
    %29 = arith.cmpi slt, %27, %28 : vector<16x1xi32>
    %30 = arith.andi %25, %29 : vector<16x1xi1>
    %c1_i32 = arith.constant 1 : i32
    %31 = vector.broadcast %c1_i32 : i32 to vector<16x1xi32>
    %32 = arith.addi %3, %31 : vector<16x1xi32>
    %c0_i32_9 = arith.constant 0 : i32
    %33 = vector.broadcast %c0_i32_9 : i32 to vector<16x1xi32>
    %34 = arith.cmpi sge, %32, %33 : vector<16x1xi32>
    %c1_i32_10 = arith.constant 1 : i32
    %35 = vector.broadcast %c1_i32_10 : i32 to vector<16x1xi32>
    %36 = arith.addi %3, %35 : vector<16x1xi32>
    %c16_i32_11 = arith.constant 16 : i32
    %37 = vector.broadcast %c16_i32_11 : i32 to vector<16x1xi32>
    %38 = arith.cmpi slt, %36, %37 : vector<16x1xi32>
    %39 = arith.andi %34, %38 : vector<16x1xi1>
    %c2_i32 = arith.constant 2 : i32
    %40 = vector.broadcast %c2_i32 : i32 to vector<16x1xi32>
    %41 = arith.addi %3, %40 : vector<16x1xi32>
    %c0_i32_12 = arith.constant 0 : i32
    %42 = vector.broadcast %c0_i32_12 : i32 to vector<16x1xi32>
    %43 = arith.cmpi sge, %41, %42 : vector<16x1xi32>
    %c2_i32_13 = arith.constant 2 : i32
    %44 = vector.broadcast %c2_i32_13 : i32 to vector<16x1xi32>
    %45 = arith.addi %3, %44 : vector<16x1xi32>
    %c16_i32_14 = arith.constant 16 : i32
    %46 = vector.broadcast %c16_i32_14 : i32 to vector<16x1xi32>
    %47 = arith.cmpi slt, %45, %46 : vector<16x1xi32>
    %48 = arith.andi %43, %47 : vector<16x1xi1>
    %c4_i32 = arith.constant 4 : i32
    %49 = vector.broadcast %c4_i32 : i32 to vector<16x1xi32>
    %50 = arith.addi %3, %49 : vector<16x1xi32>
    %c0_i32_15 = arith.constant 0 : i32
    %51 = vector.broadcast %c0_i32_15 : i32 to vector<16x1xi32>
    %52 = arith.cmpi sge, %50, %51 : vector<16x1xi32>
    %c4_i32_16 = arith.constant 4 : i32
    %53 = vector.broadcast %c4_i32_16 : i32 to vector<16x1xi32>
    %54 = arith.addi %3, %53 : vector<16x1xi32>
    %c16_i32_17 = arith.constant 16 : i32
    %55 = vector.broadcast %c16_i32_17 : i32 to vector<16x1xi32>
    %56 = arith.cmpi slt, %54, %55 : vector<16x1xi32>
    %57 = arith.andi %52, %56 : vector<16x1xi1>
    %58 = tpu.iota {dimensions = array<i32: 0>} : vector<17x16xi32>
    %59 = tpu.iota {dimensions = array<i32: 1>} : vector<17x16xi32>
    %60 = arith.cmpi eq, %59, %58 : vector<17x16xi32>
    %cst = arith.constant 1.000000e+00 : f32
    %cst_18 = arith.constant 0.000000e+00 : f32
    %61 = vector.broadcast %cst : f32 to vector<17x16xf32>
    %62 = vector.broadcast %cst_18 : f32 to vector<17x16xf32>
    %63 = arith.select %60, %61, %62 : vector<17x16xi1>, vector<17x16xf32>
    %c1_i32_19 = arith.constant 1 : i32
    %64 = vector.broadcast %c1_i32_19 : i32 to vector<17x16xi32>
    %65 = arith.subi %58, %64 : vector<17x16xi32>
    %66 = arith.cmpi eq, %59, %65 : vector<17x16xi32>
    %cst_20 = arith.constant 1.000000e+00 : f32
    %cst_21 = arith.constant 0.000000e+00 : f32
    %67 = vector.broadcast %cst_20 : f32 to vector<17x16xf32>
    %68 = vector.broadcast %cst_21 : f32 to vector<17x16xf32>
    %69 = arith.select %66, %67, %68 : vector<17x16xi1>, vector<17x16xf32>
    %c0 = arith.constant 0 : index
    %c0_22 = arith.constant 0 : index
    %c0_23 = arith.constant 0 : index
    %c0_24 = arith.constant 0 : index
    %70 = vector.load %arg2[%c0, %c0_22, %c0_23, %c0_24] : memref<1x1x16x16xf32, #tpu.memory_space<vmem>>, vector<1x1x16x16xf32>
    %71 = vector.shape_cast %70 : vector<1x1x16x16xf32> to vector<16x16xf32>
    %c0_25 = arith.constant 0 : index
    %c0_26 = arith.constant 0 : index
    %72 = vector.load %arg4[%c0_25, %c0_26] : memref<16x16xf32, #tpu.memory_space<vmem>>, vector<16x16xf32>
    %cst_27 = arith.constant dense<0.000000e+00> : vector<16x16xf32>
    %73 = tpu.matmul %71, %72, %cst_27 {dimension_numbers = #tpu.dot_dimension_numbers<[1], [0], [0], [1], [0, 0, 1, 1], [], []>} : vector<16x16xf32>, vector<16x16xf32>, vector<16x16xf32> -> vector<16x16xf32>
    %c0_28 = arith.constant 0 : index
    %c0_29 = arith.constant 0 : index
    %74 = vector.load %arg5[%c0_28, %c0_29] : memref<1x16xf32, #tpu.memory_space<vmem>>, vector<1x16xf32>
    %75 = vector.broadcast %74 : vector<1x16xf32> to vector<16x16xf32>
    %76 = arith.addf %73, %75 : vector<16x16xf32>
    %cst_30 = arith.constant 0.000000e+00 : f32
    %77 = vector.broadcast %cst_30 : f32 to vector<16x16xf32>
    %78 = arith.maximumf %76, %77 : vector<16x16xf32>
    %cst_31 = arith.constant dense<0.000000e+00> : vector<16xf32>
    %79 = vector.multi_reduction <add>, %78, %cst_31 [1] : vector<16x16xf32> to vector<16xf32>
    %80 = vector.shape_cast %79 : vector<16xf32> to vector<16x1xf32>
    %cst_32 = arith.constant 1.600000e+01 : f32
    %81 = vector.broadcast %cst_32 : f32 to vector<16x1xf32>
    %82 = arith.divf %80, %81 : vector<16x1xf32>
    %83 = vector.broadcast %82 : vector<16x1xf32> to vector<16x16xf32>
    %84 = arith.subf %78, %83 : vector<16x16xf32>
    %85 = arith.mulf %84, %84 : vector<16x16xf32>
    %cst_33 = arith.constant dense<0.000000e+00> : vector<16xf32>
    %86 = vector.multi_reduction <add>, %85, %cst_33 [1] : vector<16x16xf32> to vector<16xf32>
    %87 = vector.shape_cast %86 : vector<16xf32> to vector<16x1xf32>
    %cst_34 = arith.constant 1.600000e+01 : f32
    %88 = vector.broadcast %cst_34 : f32 to vector<16x1xf32>
    %89 = arith.divf %87, %88 : vector<16x1xf32>
    %90 = vector.broadcast %82 : vector<16x1xf32> to vector<16x16xf32>
    %91 = arith.subf %78, %90 : vector<16x16xf32>
    %cst_35 = arith.constant 9.99999974E-6 : f32
    %92 = vector.broadcast %cst_35 : f32 to vector<16x1xf32>
    %93 = arith.addf %89, %92 : vector<16x1xf32>
    %94 = math.rsqrt %93 : vector<16x1xf32>
    %95 = vector.broadcast %94 : vector<16x1xf32> to vector<16x16xf32>
    %96 = arith.mulf %91, %95 : vector<16x16xf32>
    %c0_36 = arith.constant 0 : index
    %c0_37 = arith.constant 0 : index
    %97 = vector.load %arg6[%c0_36, %c0_37] : memref<1x16xf32, #tpu.memory_space<vmem>>, vector<1x16xf32>
    %98 = vector.broadcast %97 : vector<1x16xf32> to vector<16x16xf32>
    %99 = arith.mulf %96, %98 : vector<16x16xf32>
    %c0_38 = arith.constant 0 : index
    %c0_39 = arith.constant 0 : index
    %100 = vector.load %arg7[%c0_38, %c0_39] : memref<1x16xf32, #tpu.memory_space<vmem>>, vector<1x16xf32>
    %101 = vector.broadcast %100 : vector<1x16xf32> to vector<16x16xf32>
    %102 = arith.addf %99, %101 : vector<16x16xf32>
    %c0_40 = arith.constant 0 : index
    %c0_41 = arith.constant 0 : index
    %103 = vector.load %arg8[%c0_40, %c0_41] : memref<16x16xf32, #tpu.memory_space<vmem>>, vector<16x16xf32>
    %cst_42 = arith.constant dense<0.000000e+00> : vector<16x16xf32>
    %104 = tpu.matmul %102, %103, %cst_42 {dimension_numbers = #tpu.dot_dimension_numbers<[1], [0], [0], [1], [0, 0, 1, 1], [], []>} : vector<16x16xf32>, vector<16x16xf32>, vector<16x16xf32> -> vector<16x16xf32>
    %c0_43 = arith.constant 0 : index
    %c0_44 = arith.constant 0 : index
    %105 = vector.load %arg9[%c0_43, %c0_44] : memref<1x16xf32, #tpu.memory_space<vmem>>, vector<1x16xf32>
    %106 = vector.broadcast %105 : vector<1x16xf32> to vector<16x16xf32>
    %107 = arith.addf %104, %106 : vector<16x16xf32>
    %c0_45 = arith.constant 0 : index
    %c0_46 = arith.constant 0 : index
    %108 = vector.load %arg32[%c0_45, %c0_46] : memref<16x8xf32, #tpu.memory_space<vmem>>, vector<16x8xf32>
    %c0_47 = arith.constant 0 : index
    %c0_48 = arith.constant 0 : index
    %c0_49 = arith.constant 0 : index
    %109 = vector.load %arg3[%c0_47, %c0_48, %c0_49] : memref<1x1x32xf32, #tpu.memory_space<vmem>>, vector<1x1x32xf32>
    %110 = vector.shape_cast %109 : vector<1x1x32xf32> to vector<1x32xf32>
    %c0_50 = arith.constant 0 : index
    %c0_51 = arith.constant 0 : index
    %c0_52 = arith.constant 0 : index
    %111 = vector.load %arg10[%c0_50, %c0_51, %c0_52] : memref<6x16x32xf32, #tpu.memory_space<vmem>>, vector<1x16x32xf32>
    %112 = vector.shape_cast %111 : vector<1x16x32xf32> to vector<16x32xf32>
    %cst_53 = arith.constant dense<0.000000e+00> : vector<16x32xf32>
    %113 = tpu.matmul %107, %112, %cst_53 {dimension_numbers = #tpu.dot_dimension_numbers<[1], [0], [0], [1], [0, 0, 1, 1], [], []>} : vector<16x16xf32>, vector<16x32xf32>, vector<16x32xf32> -> vector<16x32xf32>
    %c0_54 = arith.constant 0 : index
    %c0_55 = arith.constant 0 : index
    %c0_56 = arith.constant 0 : index
    %114 = vector.load %arg11[%c0_54, %c0_55, %c0_56] : memref<6x8x32xf32, #tpu.memory_space<vmem>>, vector<1x8x32xf32>
    %115 = vector.shape_cast %114 : vector<1x8x32xf32> to vector<8x32xf32>
    %cst_57 = arith.constant dense<0.000000e+00> : vector<16x32xf32>
    %116 = tpu.matmul %108, %115, %cst_57 {dimension_numbers = #tpu.dot_dimension_numbers<[1], [0], [0], [1], [0, 0, 1, 1], [], []>} : vector<16x8xf32>, vector<8x32xf32>, vector<16x32xf32> -> vector<16x32xf32>
    %117 = arith.addf %113, %116 : vector<16x32xf32>
    %c0_58 = arith.constant 0 : index
    %c0_59 = arith.constant 0 : index
    %c0_60 = arith.constant 0 : index
    %118 = vector.load %arg13[%c0_58, %c0_59, %c0_60] : memref<6x1x32xf32, #tpu.memory_space<vmem>>, vector<1x1x32xf32>
    %119 = vector.shape_cast %118 : vector<1x1x32xf32> to vector<1x32xf32>
    %120 = vector.broadcast %119 : vector<1x32xf32> to vector<16x32xf32>
    %121 = arith.addf %117, %120 : vector<16x32xf32>
    %c0_61 = arith.constant 0 : index
    %c0_62 = arith.constant 0 : index
    %c0_63 = arith.constant 0 : index
    %122 = vector.load %arg12[%c0_61, %c0_62, %c0_63] : memref<2x32x32xf32, #tpu.memory_space<vmem>>, vector<1x32x32xf32>
    %123 = vector.shape_cast %122 : vector<1x32x32xf32> to vector<32x32xf32>
    %cst_64 = arith.constant dense<0.000000e+00> : vector<1x32xf32>
    %124 = tpu.matmul %110, %123, %cst_64 {dimension_numbers = #tpu.dot_dimension_numbers<[1], [0], [0], [1], [0, 0, 1, 1], [], []>} : vector<1x32xf32>, vector<32x32xf32>, vector<1x32xf32> -> vector<1x32xf32>
    %125 = vector.broadcast %124 : vector<1x32xf32> to vector<16x32xf32>
    %126 = arith.addf %121, %125 : vector<16x32xf32>
    %c0_65 = arith.constant 0 : index
    %c0_66 = arith.constant 0 : index
    %127 = vector.load %arg30[%c0_65, %c0_66] : memref<1x13xf32, #tpu.memory_space<vmem>>, vector<1x1xf32>
    %128 = vector.extract %127[0, 0] : f32 from vector<1x1xf32>
    %cst_67 = arith.constant 0.000000e+00 : f32
    %129 = vector.broadcast %cst_67 : f32 to vector<16x32xf32>
    %130 = arith.cmpf oge, %126, %129 : vector<16x32xf32>
    %131 = vector.broadcast %128 : f32 to vector<16x32xf32>
    %132 = arith.mulf %131, %126 : vector<16x32xf32>
    %133 = arith.select %130, %126, %132 : vector<16x32xi1>, vector<16x32xf32>
    %134 = vector.shape_cast %133 : vector<16x32xf32> to vector<1x16x32xf32>
    %cst_68 = arith.constant dense<0.000000e+00> : vector<1xf32>
    %135 = vector.multi_reduction <add>, %134, %cst_68 [1, 2] : vector<1x16x32xf32> to vector<1xf32>
    %136 = vector.shape_cast %135 : vector<1xf32> to vector<1x1x1xf32>
    %137 = vector.extract %136[0, 0, 0] : f32 from vector<1x1x1xf32>
    %cst_69 = arith.constant 5.120000e+02 : f32
    %138 = arith.divf %137, %cst_69 : f32
    %139 = vector.broadcast %138 : f32 to vector<16x32xf32>
    %140 = arith.subf %133, %139 : vector<16x32xf32>
    %141 = arith.mulf %140, %140 : vector<16x32xf32>
    %142 = vector.shape_cast %141 : vector<16x32xf32> to vector<1x16x32xf32>
    %cst_70 = arith.constant dense<0.000000e+00> : vector<1xf32>
    %143 = vector.multi_reduction <add>, %142, %cst_70 [1, 2] : vector<1x16x32xf32> to vector<1xf32>
    %144 = vector.shape_cast %143 : vector<1xf32> to vector<1x1x1xf32>
    %145 = vector.extract %144[0, 0, 0] : f32 from vector<1x1x1xf32>
    %cst_71 = arith.constant 5.120000e+02 : f32
    %146 = arith.divf %145, %cst_71 : f32
    %147 = vector.broadcast %138 : f32 to vector<16x32xf32>
    %148 = arith.subf %133, %147 : vector<16x32xf32>
    %cst_72 = arith.constant 9.99999974E-6 : f32
    %149 = arith.addf %146, %cst_72 : f32
    %150 = math.rsqrt %149 : f32
    %151 = vector.broadcast %150 : f32 to vector<16x32xf32>
    %152 = arith.mulf %148, %151 : vector<16x32xf32>
    %c0_73 = arith.constant 0 : index
    %c0_74 = arith.constant 0 : index
    %c0_75 = arith.constant 0 : index
    %153 = vector.load %arg14[%c0_73, %c0_74, %c0_75] : memref<6x1x32xf32, #tpu.memory_space<vmem>>, vector<1x1x32xf32>
    %154 = vector.shape_cast %153 : vector<1x1x32xf32> to vector<1x32xf32>
    %155 = vector.broadcast %154 : vector<1x32xf32> to vector<16x32xf32>
    %156 = arith.mulf %152, %155 : vector<16x32xf32>
    %c0_76 = arith.constant 0 : index
    %c0_77 = arith.constant 0 : index
    %c0_78 = arith.constant 0 : index
    %157 = vector.load %arg15[%c0_76, %c0_77, %c0_78] : memref<6x1x32xf32, #tpu.memory_space<vmem>>, vector<1x1x32xf32>
    %158 = vector.shape_cast %157 : vector<1x1x32xf32> to vector<1x32xf32>
    %159 = vector.broadcast %158 : vector<1x32xf32> to vector<16x32xf32>
    %160 = arith.addf %156, %159 : vector<16x32xf32>
    %c1_i32_79 = arith.constant 1 : i32
    %161 = tpu.dynamic_rotate %160 by %c1_i32_79 dim 0 : vector<16x32xf32>, i32 -> vector<16x32xf32>
    %cst_80 = arith.constant 0.000000e+00 : f32
    %162 = vector.shape_cast %30 : vector<16x1xi1> to vector<16x1xi1>
    %163 = vector.broadcast %162 : vector<16x1xi1> to vector<16x32xi1>
    %164 = vector.broadcast %cst_80 : f32 to vector<16x32xf32>
    %165 = arith.select %163, %161, %164 : vector<16x32xi1>, vector<16x32xf32>
    %c15_i32 = arith.constant 15 : i32
    %166 = tpu.dynamic_rotate %160 by %c15_i32 dim 0 : vector<16x32xf32>, i32 -> vector<16x32xf32>
    %cst_81 = arith.constant 0.000000e+00 : f32
    %167 = vector.shape_cast %39 : vector<16x1xi1> to vector<16x1xi1>
    %168 = vector.broadcast %167 : vector<16x1xi1> to vector<16x32xi1>
    %169 = vector.broadcast %cst_81 : f32 to vector<16x32xf32>
    %170 = arith.select %168, %166, %169 : vector<16x32xi1>, vector<16x32xf32>
    %c0_82 = arith.constant 0 : index
    %c0_83 = arith.constant 0 : index
    %c0_84 = arith.constant 0 : index
    %171 = vector.load %arg16[%c0_82, %c0_83, %c0_84] : memref<6x1x32xf32, #tpu.memory_space<vmem>>, vector<1x1x32xf32>
    %172 = vector.shape_cast %171 : vector<1x1x32xf32> to vector<1x32xf32>
    %173 = vector.broadcast %172 : vector<1x32xf32> to vector<16x32xf32>
    %174 = arith.mulf %173, %165 : vector<16x32xf32>
    %c0_85 = arith.constant 0 : index
    %c0_86 = arith.constant 0 : index
    %c0_87 = arith.constant 0 : index
    %175 = vector.load %arg17[%c0_85, %c0_86, %c0_87] : memref<6x1x32xf32, #tpu.memory_space<vmem>>, vector<1x1x32xf32>
    %176 = vector.shape_cast %175 : vector<1x1x32xf32> to vector<1x32xf32>
    %177 = vector.broadcast %176 : vector<1x32xf32> to vector<16x32xf32>
    %178 = arith.mulf %177, %160 : vector<16x32xf32>
    %179 = arith.addf %174, %178 : vector<16x32xf32>
    %c0_88 = arith.constant 0 : index
    %c0_89 = arith.constant 0 : index
    %c0_90 = arith.constant 0 : index
    %180 = vector.load %arg18[%c0_88, %c0_89, %c0_90] : memref<6x1x32xf32, #tpu.memory_space<vmem>>, vector<1x1x32xf32>
    %181 = vector.shape_cast %180 : vector<1x1x32xf32> to vector<1x32xf32>
    %182 = vector.broadcast %181 : vector<1x32xf32> to vector<16x32xf32>
    %183 = arith.mulf %182, %170 : vector<16x32xf32>
    %184 = arith.addf %179, %183 : vector<16x32xf32>
    %c0_91 = arith.constant 0 : index
    %c0_92 = arith.constant 0 : index
    %c0_93 = arith.constant 0 : index
    %185 = vector.load %arg19[%c0_91, %c0_92, %c0_93] : memref<6x1x32xf32, #tpu.memory_space<vmem>>, vector<1x1x32xf32>
    %186 = vector.shape_cast %185 : vector<1x1x32xf32> to vector<1x32xf32>
    %187 = vector.broadcast %186 : vector<1x32xf32> to vector<16x32xf32>
    %188 = arith.addf %184, %187 : vector<16x32xf32>
    %c0_94 = arith.constant 0 : index
    %c1 = arith.constant 1 : index
    %189 = vector.load %arg30[%c0_94, %c1] : memref<1x13xf32, #tpu.memory_space<vmem>>, vector<1x1xf32>
    %190 = vector.extract %189[0, 0] : f32 from vector<1x1xf32>
    %cst_95 = arith.constant 0.000000e+00 : f32
    %191 = vector.broadcast %cst_95 : f32 to vector<16x32xf32>
    %192 = arith.cmpf oge, %188, %191 : vector<16x32xf32>
    %193 = vector.broadcast %190 : f32 to vector<16x32xf32>
    %194 = arith.mulf %193, %188 : vector<16x32xf32>
    %195 = arith.select %192, %188, %194 : vector<16x32xi1>, vector<16x32xf32>
    %196 = vector.shape_cast %195 : vector<16x32xf32> to vector<1x16x32xf32>
    %cst_96 = arith.constant dense<0.000000e+00> : vector<1xf32>
    %197 = vector.multi_reduction <add>, %196, %cst_96 [1, 2] : vector<1x16x32xf32> to vector<1xf32>
    %198 = vector.shape_cast %197 : vector<1xf32> to vector<1x1x1xf32>
    %199 = vector.extract %198[0, 0, 0] : f32 from vector<1x1x1xf32>
    %cst_97 = arith.constant 5.120000e+02 : f32
    %200 = arith.divf %199, %cst_97 : f32
    %201 = vector.broadcast %200 : f32 to vector<16x32xf32>
    %202 = arith.subf %195, %201 : vector<16x32xf32>
    %203 = arith.mulf %202, %202 : vector<16x32xf32>
    %204 = vector.shape_cast %203 : vector<16x32xf32> to vector<1x16x32xf32>
    %cst_98 = arith.constant dense<0.000000e+00> : vector<1xf32>
    %205 = vector.multi_reduction <add>, %204, %cst_98 [1, 2] : vector<1x16x32xf32> to vector<1xf32>
    %206 = vector.shape_cast %205 : vector<1xf32> to vector<1x1x1xf32>
    %207 = vector.extract %206[0, 0, 0] : f32 from vector<1x1x1xf32>
    %cst_99 = arith.constant 5.120000e+02 : f32
    %208 = arith.divf %207, %cst_99 : f32
    %209 = vector.broadcast %200 : f32 to vector<16x32xf32>
    %210 = arith.subf %195, %209 : vector<16x32xf32>
    %cst_100 = arith.constant 9.99999974E-6 : f32
    %211 = arith.addf %208, %cst_100 : f32
    %212 = math.rsqrt %211 : f32
    %213 = vector.broadcast %212 : f32 to vector<16x32xf32>
    %214 = arith.mulf %210, %213 : vector<16x32xf32>
    %c0_101 = arith.constant 0 : index
    %c0_102 = arith.constant 0 : index
    %c0_103 = arith.constant 0 : index
    %215 = vector.load %arg20[%c0_101, %c0_102, %c0_103] : memref<6x1x32xf32, #tpu.memory_space<vmem>>, vector<1x1x32xf32>
    %216 = vector.shape_cast %215 : vector<1x1x32xf32> to vector<1x32xf32>
    %217 = vector.broadcast %216 : vector<1x32xf32> to vector<16x32xf32>
    %218 = arith.mulf %214, %217 : vector<16x32xf32>
    %c0_104 = arith.constant 0 : index
    %c0_105 = arith.constant 0 : index
    %c0_106 = arith.constant 0 : index
    %219 = vector.load %arg21[%c0_104, %c0_105, %c0_106] : memref<6x1x32xf32, #tpu.memory_space<vmem>>, vector<1x1x32xf32>
    %220 = vector.shape_cast %219 : vector<1x1x32xf32> to vector<1x32xf32>
    %221 = vector.broadcast %220 : vector<1x32xf32> to vector<16x32xf32>
    %222 = arith.addf %218, %221 : vector<16x32xf32>
    %c0_107 = arith.constant 0 : index
    %c0_108 = arith.constant 0 : index
    %c0_109 = arith.constant 0 : index
    %223 = vector.load %arg22[%c0_107, %c0_108, %c0_109] : memref<6x32x16xf32, #tpu.memory_space<vmem>>, vector<1x32x16xf32>
    %224 = vector.shape_cast %223 : vector<1x32x16xf32> to vector<32x16xf32>
    %cst_110 = arith.constant dense<0.000000e+00> : vector<16x16xf32>
    %225 = tpu.matmul %222, %224, %cst_110 {dimension_numbers = #tpu.dot_dimension_numbers<[1], [0], [0], [1], [0, 0, 1, 1], [], []>} : vector<16x32xf32>, vector<32x16xf32>, vector<16x16xf32> -> vector<16x16xf32>
    %226 = arith.addf %107, %225 : vector<16x16xf32>
    %c0_111 = arith.constant 0 : index
    %c0_112 = arith.constant 0 : index
    %c0_113 = arith.constant 0 : index
    %227 = vector.load %arg24[%c0_111, %c0_112, %c0_113] : memref<6x1x16xf32, #tpu.memory_space<vmem>>, vector<1x1x16xf32>
    %228 = vector.shape_cast %227 : vector<1x1x16xf32> to vector<1x16xf32>
    %229 = vector.broadcast %228 : vector<1x16xf32> to vector<16x16xf32>
    %230 = arith.addf %226, %229 : vector<16x16xf32>
    %c0_114 = arith.constant 0 : index
    %c0_115 = arith.constant 0 : index
    %c0_116 = arith.constant 0 : index
    %231 = vector.load %arg23[%c0_114, %c0_115, %c0_116] : memref<6x32x8xf32, #tpu.memory_space<vmem>>, vector<1x32x8xf32>
    %232 = vector.shape_cast %231 : vector<1x32x8xf32> to vector<32x8xf32>
    %cst_117 = arith.constant dense<0.000000e+00> : vector<16x8xf32>
    %233 = tpu.matmul %222, %232, %cst_117 {dimension_numbers = #tpu.dot_dimension_numbers<[1], [0], [0], [1], [0, 0, 1, 1], [], []>} : vector<16x32xf32>, vector<32x8xf32>, vector<16x8xf32> -> vector<16x8xf32>
    %234 = arith.addf %108, %233 : vector<16x8xf32>
    %c0_118 = arith.constant 0 : index
    %c0_119 = arith.constant 0 : index
    %c0_120 = arith.constant 0 : index
    %235 = vector.load %arg25[%c0_118, %c0_119, %c0_120] : memref<6x1x8xf32, #tpu.memory_space<vmem>>, vector<1x1x8xf32>
    %236 = vector.shape_cast %235 : vector<1x1x8xf32> to vector<1x8xf32>
    %237 = vector.broadcast %236 : vector<1x8xf32> to vector<16x8xf32>
    %238 = arith.addf %234, %237 : vector<16x8xf32>
    %c1_121 = arith.constant 1 : index
    %c0_122 = arith.constant 0 : index
    %c0_123 = arith.constant 0 : index
    %239 = vector.load %arg10[%c1_121, %c0_122, %c0_123] : memref<6x16x32xf32, #tpu.memory_space<vmem>>, vector<1x16x32xf32>
    %240 = vector.shape_cast %239 : vector<1x16x32xf32> to vector<16x32xf32>
    %cst_124 = arith.constant dense<0.000000e+00> : vector<16x32xf32>
    %241 = tpu.matmul %230, %240, %cst_124 {dimension_numbers = #tpu.dot_dimension_numbers<[1], [0], [0], [1], [0, 0, 1, 1], [], []>} : vector<16x16xf32>, vector<16x32xf32>, vector<16x32xf32> -> vector<16x32xf32>
    %c1_125 = arith.constant 1 : index
    %c0_126 = arith.constant 0 : index
    %c0_127 = arith.constant 0 : index
    %242 = vector.load %arg11[%c1_125, %c0_126, %c0_127] : memref<6x8x32xf32, #tpu.memory_space<vmem>>, vector<1x8x32xf32>
    %243 = vector.shape_cast %242 : vector<1x8x32xf32> to vector<8x32xf32>
    %cst_128 = arith.constant dense<0.000000e+00> : vector<16x32xf32>
    %244 = tpu.matmul %238, %243, %cst_128 {dimension_numbers = #tpu.dot_dimension_numbers<[1], [0], [0], [1], [0, 0, 1, 1], [], []>} : vector<16x8xf32>, vector<8x32xf32>, vector<16x32xf32> -> vector<16x32xf32>
    %245 = arith.addf %241, %244 : vector<16x32xf32>
    %c1_129 = arith.constant 1 : index
    %c0_130 = arith.constant 0 : index
    %c0_131 = arith.constant 0 : index
    %246 = vector.load %arg13[%c1_129, %c0_130, %c0_131] : memref<6x1x32xf32, #tpu.memory_space<vmem>>, vector<1x1x32xf32>
    %247 = vector.shape_cast %246 : vector<1x1x32xf32> to vector<1x32xf32>
    %248 = vector.broadcast %247 : vector<1x32xf32> to vector<16x32xf32>
    %249 = arith.addf %245, %248 : vector<16x32xf32>
    %c0_132 = arith.constant 0 : index
    %c2 = arith.constant 2 : index
    %250 = vector.load %arg30[%c0_132, %c2] : memref<1x13xf32, #tpu.memory_space<vmem>>, vector<1x1xf32>
    %251 = vector.extract %250[0, 0] : f32 from vector<1x1xf32>
    %cst_133 = arith.constant 0.000000e+00 : f32
    %252 = vector.broadcast %cst_133 : f32 to vector<16x32xf32>
    %253 = arith.cmpf oge, %249, %252 : vector<16x32xf32>
    %254 = vector.broadcast %251 : f32 to vector<16x32xf32>
    %255 = arith.mulf %254, %249 : vector<16x32xf32>
    %256 = arith.select %253, %249, %255 : vector<16x32xi1>, vector<16x32xf32>
    %257 = vector.shape_cast %256 : vector<16x32xf32> to vector<1x16x32xf32>
    %cst_134 = arith.constant dense<0.000000e+00> : vector<1xf32>
    %258 = vector.multi_reduction <add>, %257, %cst_134 [1, 2] : vector<1x16x32xf32> to vector<1xf32>
    %259 = vector.shape_cast %258 : vector<1xf32> to vector<1x1x1xf32>
    %260 = vector.extract %259[0, 0, 0] : f32 from vector<1x1x1xf32>
    %cst_135 = arith.constant 5.120000e+02 : f32
    %261 = arith.divf %260, %cst_135 : f32
    %262 = vector.broadcast %261 : f32 to vector<16x32xf32>
    %263 = arith.subf %256, %262 : vector<16x32xf32>
    %264 = arith.mulf %263, %263 : vector<16x32xf32>
    %265 = vector.shape_cast %264 : vector<16x32xf32> to vector<1x16x32xf32>
    %cst_136 = arith.constant dense<0.000000e+00> : vector<1xf32>
    %266 = vector.multi_reduction <add>, %265, %cst_136 [1, 2] : vector<1x16x32xf32> to vector<1xf32>
    %267 = vector.shape_cast %266 : vector<1xf32> to vector<1x1x1xf32>
    %268 = vector.extract %267[0, 0, 0] : f32 from vector<1x1x1xf32>
    %cst_137 = arith.constant 5.120000e+02 : f32
    %269 = arith.divf %268, %cst_137 : f32
    %270 = vector.broadcast %261 : f32 to vector<16x32xf32>
    %271 = arith.subf %256, %270 : vector<16x32xf32>
    %cst_138 = arith.constant 9.99999974E-6 : f32
    %272 = arith.addf %269, %cst_138 : f32
    %273 = math.rsqrt %272 : f32
    %274 = vector.broadcast %273 : f32 to vector<16x32xf32>
    %275 = arith.mulf %271, %274 : vector<16x32xf32>
    %c1_139 = arith.constant 1 : index
    %c0_140 = arith.constant 0 : index
    %c0_141 = arith.constant 0 : index
    %276 = vector.load %arg14[%c1_139, %c0_140, %c0_141] : memref<6x1x32xf32, #tpu.memory_space<vmem>>, vector<1x1x32xf32>
    %277 = vector.shape_cast %276 : vector<1x1x32xf32> to vector<1x32xf32>
    %278 = vector.broadcast %277 : vector<1x32xf32> to vector<16x32xf32>
    %279 = arith.mulf %275, %278 : vector<16x32xf32>
    %c1_142 = arith.constant 1 : index
    %c0_143 = arith.constant 0 : index
    %c0_144 = arith.constant 0 : index
    %280 = vector.load %arg15[%c1_142, %c0_143, %c0_144] : memref<6x1x32xf32, #tpu.memory_space<vmem>>, vector<1x1x32xf32>
    %281 = vector.shape_cast %280 : vector<1x1x32xf32> to vector<1x32xf32>
    %282 = vector.broadcast %281 : vector<1x32xf32> to vector<16x32xf32>
    %283 = arith.addf %279, %282 : vector<16x32xf32>
    %c2_i32_145 = arith.constant 2 : i32
    %284 = tpu.dynamic_rotate %283 by %c2_i32_145 dim 0 : vector<16x32xf32>, i32 -> vector<16x32xf32>
    %cst_146 = arith.constant 0.000000e+00 : f32
    %285 = vector.shape_cast %21 : vector<16x1xi1> to vector<16x1xi1>
    %286 = vector.broadcast %285 : vector<16x1xi1> to vector<16x32xi1>
    %287 = vector.broadcast %cst_146 : f32 to vector<16x32xf32>
    %288 = arith.select %286, %284, %287 : vector<16x32xi1>, vector<16x32xf32>
    %c14_i32 = arith.constant 14 : i32
    %289 = tpu.dynamic_rotate %283 by %c14_i32 dim 0 : vector<16x32xf32>, i32 -> vector<16x32xf32>
    %cst_147 = arith.constant 0.000000e+00 : f32
    %290 = vector.shape_cast %48 : vector<16x1xi1> to vector<16x1xi1>
    %291 = vector.broadcast %290 : vector<16x1xi1> to vector<16x32xi1>
    %292 = vector.broadcast %cst_147 : f32 to vector<16x32xf32>
    %293 = arith.select %291, %289, %292 : vector<16x32xi1>, vector<16x32xf32>
    %c1_148 = arith.constant 1 : index
    %c0_149 = arith.constant 0 : index
    %c0_150 = arith.constant 0 : index
    %294 = vector.load %arg16[%c1_148, %c0_149, %c0_150] : memref<6x1x32xf32, #tpu.memory_space<vmem>>, vector<1x1x32xf32>
    %295 = vector.shape_cast %294 : vector<1x1x32xf32> to vector<1x32xf32>
    %296 = vector.broadcast %295 : vector<1x32xf32> to vector<16x32xf32>
    %297 = arith.mulf %296, %288 : vector<16x32xf32>
    %c1_151 = arith.constant 1 : index
    %c0_152 = arith.constant 0 : index
    %c0_153 = arith.constant 0 : index
    %298 = vector.load %arg17[%c1_151, %c0_152, %c0_153] : memref<6x1x32xf32, #tpu.memory_space<vmem>>, vector<1x1x32xf32>
    %299 = vector.shape_cast %298 : vector<1x1x32xf32> to vector<1x32xf32>
    %300 = vector.broadcast %299 : vector<1x32xf32> to vector<16x32xf32>
    %301 = arith.mulf %300, %283 : vector<16x32xf32>
    %302 = arith.addf %297, %301 : vector<16x32xf32>
    %c1_154 = arith.constant 1 : index
    %c0_155 = arith.constant 0 : index
    %c0_156 = arith.constant 0 : index
    %303 = vector.load %arg18[%c1_154, %c0_155, %c0_156] : memref<6x1x32xf32, #tpu.memory_space<vmem>>, vector<1x1x32xf32>
    %304 = vector.shape_cast %303 : vector<1x1x32xf32> to vector<1x32xf32>
    %305 = vector.broadcast %304 : vector<1x32xf32> to vector<16x32xf32>
    %306 = arith.mulf %305, %293 : vector<16x32xf32>
    %307 = arith.addf %302, %306 : vector<16x32xf32>
    %c1_157 = arith.constant 1 : index
    %c0_158 = arith.constant 0 : index
    %c0_159 = arith.constant 0 : index
    %308 = vector.load %arg19[%c1_157, %c0_158, %c0_159] : memref<6x1x32xf32, #tpu.memory_space<vmem>>, vector<1x1x32xf32>
    %309 = vector.shape_cast %308 : vector<1x1x32xf32> to vector<1x32xf32>
    %310 = vector.broadcast %309 : vector<1x32xf32> to vector<16x32xf32>
    %311 = arith.addf %307, %310 : vector<16x32xf32>
    %c0_160 = arith.constant 0 : index
    %c3 = arith.constant 3 : index
    %312 = vector.load %arg30[%c0_160, %c3] : memref<1x13xf32, #tpu.memory_space<vmem>>, vector<1x1xf32>
    %313 = vector.extract %312[0, 0] : f32 from vector<1x1xf32>
    %cst_161 = arith.constant 0.000000e+00 : f32
    %314 = vector.broadcast %cst_161 : f32 to vector<16x32xf32>
    %315 = arith.cmpf oge, %311, %314 : vector<16x32xf32>
    %316 = vector.broadcast %313 : f32 to vector<16x32xf32>
    %317 = arith.mulf %316, %311 : vector<16x32xf32>
    %318 = arith.select %315, %311, %317 : vector<16x32xi1>, vector<16x32xf32>
    %319 = vector.shape_cast %318 : vector<16x32xf32> to vector<1x16x32xf32>
    %cst_162 = arith.constant dense<0.000000e+00> : vector<1xf32>
    %320 = vector.multi_reduction <add>, %319, %cst_162 [1, 2] : vector<1x16x32xf32> to vector<1xf32>
    %321 = vector.shape_cast %320 : vector<1xf32> to vector<1x1x1xf32>
    %322 = vector.extract %321[0, 0, 0] : f32 from vector<1x1x1xf32>
    %cst_163 = arith.constant 5.120000e+02 : f32
    %323 = arith.divf %322, %cst_163 : f32
    %324 = vector.broadcast %323 : f32 to vector<16x32xf32>
    %325 = arith.subf %318, %324 : vector<16x32xf32>
    %326 = arith.mulf %325, %325 : vector<16x32xf32>
    %327 = vector.shape_cast %326 : vector<16x32xf32> to vector<1x16x32xf32>
    %cst_164 = arith.constant dense<0.000000e+00> : vector<1xf32>
    %328 = vector.multi_reduction <add>, %327, %cst_164 [1, 2] : vector<1x16x32xf32> to vector<1xf32>
    %329 = vector.shape_cast %328 : vector<1xf32> to vector<1x1x1xf32>
    %330 = vector.extract %329[0, 0, 0] : f32 from vector<1x1x1xf32>
    %cst_165 = arith.constant 5.120000e+02 : f32
    %331 = arith.divf %330, %cst_165 : f32
    %332 = vector.broadcast %323 : f32 to vector<16x32xf32>
    %333 = arith.subf %318, %332 : vector<16x32xf32>
    %cst_166 = arith.constant 9.99999974E-6 : f32
    %334 = arith.addf %331, %cst_166 : f32
    %335 = math.rsqrt %334 : f32
    %336 = vector.broadcast %335 : f32 to vector<16x32xf32>
    %337 = arith.mulf %333, %336 : vector<16x32xf32>
    %c1_167 = arith.constant 1 : index
    %c0_168 = arith.constant 0 : index
    %c0_169 = arith.constant 0 : index
    %338 = vector.load %arg20[%c1_167, %c0_168, %c0_169] : memref<6x1x32xf32, #tpu.memory_space<vmem>>, vector<1x1x32xf32>
    %339 = vector.shape_cast %338 : vector<1x1x32xf32> to vector<1x32xf32>
    %340 = vector.broadcast %339 : vector<1x32xf32> to vector<16x32xf32>
    %341 = arith.mulf %337, %340 : vector<16x32xf32>
    %c1_170 = arith.constant 1 : index
    %c0_171 = arith.constant 0 : index
    %c0_172 = arith.constant 0 : index
    %342 = vector.load %arg21[%c1_170, %c0_171, %c0_172] : memref<6x1x32xf32, #tpu.memory_space<vmem>>, vector<1x1x32xf32>
    %343 = vector.shape_cast %342 : vector<1x1x32xf32> to vector<1x32xf32>
    %344 = vector.broadcast %343 : vector<1x32xf32> to vector<16x32xf32>
    %345 = arith.addf %341, %344 : vector<16x32xf32>
    %c1_173 = arith.constant 1 : index
    %c0_174 = arith.constant 0 : index
    %c0_175 = arith.constant 0 : index
    %346 = vector.load %arg22[%c1_173, %c0_174, %c0_175] : memref<6x32x16xf32, #tpu.memory_space<vmem>>, vector<1x32x16xf32>
    %347 = vector.shape_cast %346 : vector<1x32x16xf32> to vector<32x16xf32>
    %cst_176 = arith.constant dense<0.000000e+00> : vector<16x16xf32>
    %348 = tpu.matmul %345, %347, %cst_176 {dimension_numbers = #tpu.dot_dimension_numbers<[1], [0], [0], [1], [0, 0, 1, 1], [], []>} : vector<16x32xf32>, vector<32x16xf32>, vector<16x16xf32> -> vector<16x16xf32>
    %349 = arith.addf %230, %348 : vector<16x16xf32>
    %c1_177 = arith.constant 1 : index
    %c0_178 = arith.constant 0 : index
    %c0_179 = arith.constant 0 : index
    %350 = vector.load %arg24[%c1_177, %c0_178, %c0_179] : memref<6x1x16xf32, #tpu.memory_space<vmem>>, vector<1x1x16xf32>
    %351 = vector.shape_cast %350 : vector<1x1x16xf32> to vector<1x16xf32>
    %352 = vector.broadcast %351 : vector<1x16xf32> to vector<16x16xf32>
    %353 = arith.addf %349, %352 : vector<16x16xf32>
    %c1_180 = arith.constant 1 : index
    %c0_181 = arith.constant 0 : index
    %c0_182 = arith.constant 0 : index
    %354 = vector.load %arg23[%c1_180, %c0_181, %c0_182] : memref<6x32x8xf32, #tpu.memory_space<vmem>>, vector<1x32x8xf32>
    %355 = vector.shape_cast %354 : vector<1x32x8xf32> to vector<32x8xf32>
    %cst_183 = arith.constant dense<0.000000e+00> : vector<16x8xf32>
    %356 = tpu.matmul %345, %355, %cst_183 {dimension_numbers = #tpu.dot_dimension_numbers<[1], [0], [0], [1], [0, 0, 1, 1], [], []>} : vector<16x32xf32>, vector<32x8xf32>, vector<16x8xf32> -> vector<16x8xf32>
    %357 = arith.addf %238, %356 : vector<16x8xf32>
    %c1_184 = arith.constant 1 : index
    %c0_185 = arith.constant 0 : index
    %c0_186 = arith.constant 0 : index
    %358 = vector.load %arg25[%c1_184, %c0_185, %c0_186] : memref<6x1x8xf32, #tpu.memory_space<vmem>>, vector<1x1x8xf32>
    %359 = vector.shape_cast %358 : vector<1x1x8xf32> to vector<1x8xf32>
    %360 = vector.broadcast %359 : vector<1x8xf32> to vector<16x8xf32>
    %361 = arith.addf %357, %360 : vector<16x8xf32>
    %c2_187 = arith.constant 2 : index
    %c0_188 = arith.constant 0 : index
    %c0_189 = arith.constant 0 : index
    %362 = vector.load %arg10[%c2_187, %c0_188, %c0_189] : memref<6x16x32xf32, #tpu.memory_space<vmem>>, vector<1x16x32xf32>
    %363 = vector.shape_cast %362 : vector<1x16x32xf32> to vector<16x32xf32>
    %cst_190 = arith.constant dense<0.000000e+00> : vector<16x32xf32>
    %364 = tpu.matmul %353, %363, %cst_190 {dimension_numbers = #tpu.dot_dimension_numbers<[1], [0], [0], [1], [0, 0, 1, 1], [], []>} : vector<16x16xf32>, vector<16x32xf32>, vector<16x32xf32> -> vector<16x32xf32>
    %c2_191 = arith.constant 2 : index
    %c0_192 = arith.constant 0 : index
    %c0_193 = arith.constant 0 : index
    %365 = vector.load %arg11[%c2_191, %c0_192, %c0_193] : memref<6x8x32xf32, #tpu.memory_space<vmem>>, vector<1x8x32xf32>
    %366 = vector.shape_cast %365 : vector<1x8x32xf32> to vector<8x32xf32>
    %cst_194 = arith.constant dense<0.000000e+00> : vector<16x32xf32>
    %367 = tpu.matmul %361, %366, %cst_194 {dimension_numbers = #tpu.dot_dimension_numbers<[1], [0], [0], [1], [0, 0, 1, 1], [], []>} : vector<16x8xf32>, vector<8x32xf32>, vector<16x32xf32> -> vector<16x32xf32>
    %368 = arith.addf %364, %367 : vector<16x32xf32>
    %c2_195 = arith.constant 2 : index
    %c0_196 = arith.constant 0 : index
    %c0_197 = arith.constant 0 : index
    %369 = vector.load %arg13[%c2_195, %c0_196, %c0_197] : memref<6x1x32xf32, #tpu.memory_space<vmem>>, vector<1x1x32xf32>
    %370 = vector.shape_cast %369 : vector<1x1x32xf32> to vector<1x32xf32>
    %371 = vector.broadcast %370 : vector<1x32xf32> to vector<16x32xf32>
    %372 = arith.addf %368, %371 : vector<16x32xf32>
    %c0_198 = arith.constant 0 : index
    %c4 = arith.constant 4 : index
    %373 = vector.load %arg30[%c0_198, %c4] : memref<1x13xf32, #tpu.memory_space<vmem>>, vector<1x1xf32>
    %374 = vector.extract %373[0, 0] : f32 from vector<1x1xf32>
    %cst_199 = arith.constant 0.000000e+00 : f32
    %375 = vector.broadcast %cst_199 : f32 to vector<16x32xf32>
    %376 = arith.cmpf oge, %372, %375 : vector<16x32xf32>
    %377 = vector.broadcast %374 : f32 to vector<16x32xf32>
    %378 = arith.mulf %377, %372 : vector<16x32xf32>
    %379 = arith.select %376, %372, %378 : vector<16x32xi1>, vector<16x32xf32>
    %380 = vector.shape_cast %379 : vector<16x32xf32> to vector<1x16x32xf32>
    %cst_200 = arith.constant dense<0.000000e+00> : vector<1xf32>
    %381 = vector.multi_reduction <add>, %380, %cst_200 [1, 2] : vector<1x16x32xf32> to vector<1xf32>
    %382 = vector.shape_cast %381 : vector<1xf32> to vector<1x1x1xf32>
    %383 = vector.extract %382[0, 0, 0] : f32 from vector<1x1x1xf32>
    %cst_201 = arith.constant 5.120000e+02 : f32
    %384 = arith.divf %383, %cst_201 : f32
    %385 = vector.broadcast %384 : f32 to vector<16x32xf32>
    %386 = arith.subf %379, %385 : vector<16x32xf32>
    %387 = arith.mulf %386, %386 : vector<16x32xf32>
    %388 = vector.shape_cast %387 : vector<16x32xf32> to vector<1x16x32xf32>
    %cst_202 = arith.constant dense<0.000000e+00> : vector<1xf32>
    %389 = vector.multi_reduction <add>, %388, %cst_202 [1, 2] : vector<1x16x32xf32> to vector<1xf32>
    %390 = vector.shape_cast %389 : vector<1xf32> to vector<1x1x1xf32>
    %391 = vector.extract %390[0, 0, 0] : f32 from vector<1x1x1xf32>
    %cst_203 = arith.constant 5.120000e+02 : f32
    %392 = arith.divf %391, %cst_203 : f32
    %393 = vector.broadcast %384 : f32 to vector<16x32xf32>
    %394 = arith.subf %379, %393 : vector<16x32xf32>
    %cst_204 = arith.constant 9.99999974E-6 : f32
    %395 = arith.addf %392, %cst_204 : f32
    %396 = math.rsqrt %395 : f32
    %397 = vector.broadcast %396 : f32 to vector<16x32xf32>
    %398 = arith.mulf %394, %397 : vector<16x32xf32>
    %c2_205 = arith.constant 2 : index
    %c0_206 = arith.constant 0 : index
    %c0_207 = arith.constant 0 : index
    %399 = vector.load %arg14[%c2_205, %c0_206, %c0_207] : memref<6x1x32xf32, #tpu.memory_space<vmem>>, vector<1x1x32xf32>
    %400 = vector.shape_cast %399 : vector<1x1x32xf32> to vector<1x32xf32>
    %401 = vector.broadcast %400 : vector<1x32xf32> to vector<16x32xf32>
    %402 = arith.mulf %398, %401 : vector<16x32xf32>
    %c2_208 = arith.constant 2 : index
    %c0_209 = arith.constant 0 : index
    %c0_210 = arith.constant 0 : index
    %403 = vector.load %arg15[%c2_208, %c0_209, %c0_210] : memref<6x1x32xf32, #tpu.memory_space<vmem>>, vector<1x1x32xf32>
    %404 = vector.shape_cast %403 : vector<1x1x32xf32> to vector<1x32xf32>
    %405 = vector.broadcast %404 : vector<1x32xf32> to vector<16x32xf32>
    %406 = arith.addf %402, %405 : vector<16x32xf32>
    %c4_i32_211 = arith.constant 4 : i32
    %407 = tpu.dynamic_rotate %406 by %c4_i32_211 dim 0 : vector<16x32xf32>, i32 -> vector<16x32xf32>
    %cst_212 = arith.constant 0.000000e+00 : f32
    %408 = vector.shape_cast %12 : vector<16x1xi1> to vector<16x1xi1>
    %409 = vector.broadcast %408 : vector<16x1xi1> to vector<16x32xi1>
    %410 = vector.broadcast %cst_212 : f32 to vector<16x32xf32>
    %411 = arith.select %409, %407, %410 : vector<16x32xi1>, vector<16x32xf32>
    %c12_i32 = arith.constant 12 : i32
    %412 = tpu.dynamic_rotate %406 by %c12_i32 dim 0 : vector<16x32xf32>, i32 -> vector<16x32xf32>
    %cst_213 = arith.constant 0.000000e+00 : f32
    %413 = vector.shape_cast %57 : vector<16x1xi1> to vector<16x1xi1>
    %414 = vector.broadcast %413 : vector<16x1xi1> to vector<16x32xi1>
    %415 = vector.broadcast %cst_213 : f32 to vector<16x32xf32>
    %416 = arith.select %414, %412, %415 : vector<16x32xi1>, vector<16x32xf32>
    %c2_214 = arith.constant 2 : index
    %c0_215 = arith.constant 0 : index
    %c0_216 = arith.constant 0 : index
    %417 = vector.load %arg16[%c2_214, %c0_215, %c0_216] : memref<6x1x32xf32, #tpu.memory_space<vmem>>, vector<1x1x32xf32>
    %418 = vector.shape_cast %417 : vector<1x1x32xf32> to vector<1x32xf32>
    %419 = vector.broadcast %418 : vector<1x32xf32> to vector<16x32xf32>
    %420 = arith.mulf %419, %411 : vector<16x32xf32>
    %c2_217 = arith.constant 2 : index
    %c0_218 = arith.constant 0 : index
    %c0_219 = arith.constant 0 : index
    %421 = vector.load %arg17[%c2_217, %c0_218, %c0_219] : memref<6x1x32xf32, #tpu.memory_space<vmem>>, vector<1x1x32xf32>
    %422 = vector.shape_cast %421 : vector<1x1x32xf32> to vector<1x32xf32>
    %423 = vector.broadcast %422 : vector<1x32xf32> to vector<16x32xf32>
    %424 = arith.mulf %423, %406 : vector<16x32xf32>
    %425 = arith.addf %420, %424 : vector<16x32xf32>
    %c2_220 = arith.constant 2 : index
    %c0_221 = arith.constant 0 : index
    %c0_222 = arith.constant 0 : index
    %426 = vector.load %arg18[%c2_220, %c0_221, %c0_222] : memref<6x1x32xf32, #tpu.memory_space<vmem>>, vector<1x1x32xf32>
    %427 = vector.shape_cast %426 : vector<1x1x32xf32> to vector<1x32xf32>
    %428 = vector.broadcast %427 : vector<1x32xf32> to vector<16x32xf32>
    %429 = arith.mulf %428, %416 : vector<16x32xf32>
    %430 = arith.addf %425, %429 : vector<16x32xf32>
    %c2_223 = arith.constant 2 : index
    %c0_224 = arith.constant 0 : index
    %c0_225 = arith.constant 0 : index
    %431 = vector.load %arg19[%c2_223, %c0_224, %c0_225] : memref<6x1x32xf32, #tpu.memory_space<vmem>>, vector<1x1x32xf32>
    %432 = vector.shape_cast %431 : vector<1x1x32xf32> to vector<1x32xf32>
    %433 = vector.broadcast %432 : vector<1x32xf32> to vector<16x32xf32>
    %434 = arith.addf %430, %433 : vector<16x32xf32>
    %c0_226 = arith.constant 0 : index
    %c5 = arith.constant 5 : index
    %435 = vector.load %arg30[%c0_226, %c5] : memref<1x13xf32, #tpu.memory_space<vmem>>, vector<1x1xf32>
    %436 = vector.extract %435[0, 0] : f32 from vector<1x1xf32>
    %cst_227 = arith.constant 0.000000e+00 : f32
    %437 = vector.broadcast %cst_227 : f32 to vector<16x32xf32>
    %438 = arith.cmpf oge, %434, %437 : vector<16x32xf32>
    %439 = vector.broadcast %436 : f32 to vector<16x32xf32>
    %440 = arith.mulf %439, %434 : vector<16x32xf32>
    %441 = arith.select %438, %434, %440 : vector<16x32xi1>, vector<16x32xf32>
    %442 = vector.shape_cast %441 : vector<16x32xf32> to vector<1x16x32xf32>
    %cst_228 = arith.constant dense<0.000000e+00> : vector<1xf32>
    %443 = vector.multi_reduction <add>, %442, %cst_228 [1, 2] : vector<1x16x32xf32> to vector<1xf32>
    %444 = vector.shape_cast %443 : vector<1xf32> to vector<1x1x1xf32>
    %445 = vector.extract %444[0, 0, 0] : f32 from vector<1x1x1xf32>
    %cst_229 = arith.constant 5.120000e+02 : f32
    %446 = arith.divf %445, %cst_229 : f32
    %447 = vector.broadcast %446 : f32 to vector<16x32xf32>
    %448 = arith.subf %441, %447 : vector<16x32xf32>
    %449 = arith.mulf %448, %448 : vector<16x32xf32>
    %450 = vector.shape_cast %449 : vector<16x32xf32> to vector<1x16x32xf32>
    %cst_230 = arith.constant dense<0.000000e+00> : vector<1xf32>
    %451 = vector.multi_reduction <add>, %450, %cst_230 [1, 2] : vector<1x16x32xf32> to vector<1xf32>
    %452 = vector.shape_cast %451 : vector<1xf32> to vector<1x1x1xf32>
    %453 = vector.extract %452[0, 0, 0] : f32 from vector<1x1x1xf32>
    %cst_231 = arith.constant 5.120000e+02 : f32
    %454 = arith.divf %453, %cst_231 : f32
    %455 = vector.broadcast %446 : f32 to vector<16x32xf32>
    %456 = arith.subf %441, %455 : vector<16x32xf32>
    %cst_232 = arith.constant 9.99999974E-6 : f32
    %457 = arith.addf %454, %cst_232 : f32
    %458 = math.rsqrt %457 : f32
    %459 = vector.broadcast %458 : f32 to vector<16x32xf32>
    %460 = arith.mulf %456, %459 : vector<16x32xf32>
    %c2_233 = arith.constant 2 : index
    %c0_234 = arith.constant 0 : index
    %c0_235 = arith.constant 0 : index
    %461 = vector.load %arg20[%c2_233, %c0_234, %c0_235] : memref<6x1x32xf32, #tpu.memory_space<vmem>>, vector<1x1x32xf32>
    %462 = vector.shape_cast %461 : vector<1x1x32xf32> to vector<1x32xf32>
    %463 = vector.broadcast %462 : vector<1x32xf32> to vector<16x32xf32>
    %464 = arith.mulf %460, %463 : vector<16x32xf32>
    %c2_236 = arith.constant 2 : index
    %c0_237 = arith.constant 0 : index
    %c0_238 = arith.constant 0 : index
    %465 = vector.load %arg21[%c2_236, %c0_237, %c0_238] : memref<6x1x32xf32, #tpu.memory_space<vmem>>, vector<1x1x32xf32>
    %466 = vector.shape_cast %465 : vector<1x1x32xf32> to vector<1x32xf32>
    %467 = vector.broadcast %466 : vector<1x32xf32> to vector<16x32xf32>
    %468 = arith.addf %464, %467 : vector<16x32xf32>
    %c2_239 = arith.constant 2 : index
    %c0_240 = arith.constant 0 : index
    %c0_241 = arith.constant 0 : index
    %469 = vector.load %arg22[%c2_239, %c0_240, %c0_241] : memref<6x32x16xf32, #tpu.memory_space<vmem>>, vector<1x32x16xf32>
    %470 = vector.shape_cast %469 : vector<1x32x16xf32> to vector<32x16xf32>
    %cst_242 = arith.constant dense<0.000000e+00> : vector<16x16xf32>
    %471 = tpu.matmul %468, %470, %cst_242 {dimension_numbers = #tpu.dot_dimension_numbers<[1], [0], [0], [1], [0, 0, 1, 1], [], []>} : vector<16x32xf32>, vector<32x16xf32>, vector<16x16xf32> -> vector<16x16xf32>
    %472 = arith.addf %353, %471 : vector<16x16xf32>
    %c2_243 = arith.constant 2 : index
    %c0_244 = arith.constant 0 : index
    %c0_245 = arith.constant 0 : index
    %473 = vector.load %arg24[%c2_243, %c0_244, %c0_245] : memref<6x1x16xf32, #tpu.memory_space<vmem>>, vector<1x1x16xf32>
    %474 = vector.shape_cast %473 : vector<1x1x16xf32> to vector<1x16xf32>
    %475 = vector.broadcast %474 : vector<1x16xf32> to vector<16x16xf32>
    %476 = arith.addf %472, %475 : vector<16x16xf32>
    %c2_246 = arith.constant 2 : index
    %c0_247 = arith.constant 0 : index
    %c0_248 = arith.constant 0 : index
    %477 = vector.load %arg23[%c2_246, %c0_247, %c0_248] : memref<6x32x8xf32, #tpu.memory_space<vmem>>, vector<1x32x8xf32>
    %478 = vector.shape_cast %477 : vector<1x32x8xf32> to vector<32x8xf32>
    %cst_249 = arith.constant dense<0.000000e+00> : vector<16x8xf32>
    %479 = tpu.matmul %468, %478, %cst_249 {dimension_numbers = #tpu.dot_dimension_numbers<[1], [0], [0], [1], [0, 0, 1, 1], [], []>} : vector<16x32xf32>, vector<32x8xf32>, vector<16x8xf32> -> vector<16x8xf32>
    %480 = arith.addf %361, %479 : vector<16x8xf32>
    %c2_250 = arith.constant 2 : index
    %c0_251 = arith.constant 0 : index
    %c0_252 = arith.constant 0 : index
    %481 = vector.load %arg25[%c2_250, %c0_251, %c0_252] : memref<6x1x8xf32, #tpu.memory_space<vmem>>, vector<1x1x8xf32>
    %482 = vector.shape_cast %481 : vector<1x1x8xf32> to vector<1x8xf32>
    %483 = vector.broadcast %482 : vector<1x8xf32> to vector<16x8xf32>
    %484 = arith.addf %480, %483 : vector<16x8xf32>
    %c3_253 = arith.constant 3 : index
    %c0_254 = arith.constant 0 : index
    %c0_255 = arith.constant 0 : index
    %485 = vector.load %arg10[%c3_253, %c0_254, %c0_255] : memref<6x16x32xf32, #tpu.memory_space<vmem>>, vector<1x16x32xf32>
    %486 = vector.shape_cast %485 : vector<1x16x32xf32> to vector<16x32xf32>
    %cst_256 = arith.constant dense<0.000000e+00> : vector<16x32xf32>
    %487 = tpu.matmul %476, %486, %cst_256 {dimension_numbers = #tpu.dot_dimension_numbers<[1], [0], [0], [1], [0, 0, 1, 1], [], []>} : vector<16x16xf32>, vector<16x32xf32>, vector<16x32xf32> -> vector<16x32xf32>
    %c3_257 = arith.constant 3 : index
    %c0_258 = arith.constant 0 : index
    %c0_259 = arith.constant 0 : index
    %488 = vector.load %arg11[%c3_257, %c0_258, %c0_259] : memref<6x8x32xf32, #tpu.memory_space<vmem>>, vector<1x8x32xf32>
    %489 = vector.shape_cast %488 : vector<1x8x32xf32> to vector<8x32xf32>
    %cst_260 = arith.constant dense<0.000000e+00> : vector<16x32xf32>
    %490 = tpu.matmul %484, %489, %cst_260 {dimension_numbers = #tpu.dot_dimension_numbers<[1], [0], [0], [1], [0, 0, 1, 1], [], []>} : vector<16x8xf32>, vector<8x32xf32>, vector<16x32xf32> -> vector<16x32xf32>
    %491 = arith.addf %487, %490 : vector<16x32xf32>
    %c3_261 = arith.constant 3 : index
    %c0_262 = arith.constant 0 : index
    %c0_263 = arith.constant 0 : index
    %492 = vector.load %arg13[%c3_261, %c0_262, %c0_263] : memref<6x1x32xf32, #tpu.memory_space<vmem>>, vector<1x1x32xf32>
    %493 = vector.shape_cast %492 : vector<1x1x32xf32> to vector<1x32xf32>
    %494 = vector.broadcast %493 : vector<1x32xf32> to vector<16x32xf32>
    %495 = arith.addf %491, %494 : vector<16x32xf32>
    %c1_264 = arith.constant 1 : index
    %c0_265 = arith.constant 0 : index
    %c0_266 = arith.constant 0 : index
    %496 = vector.load %arg12[%c1_264, %c0_265, %c0_266] : memref<2x32x32xf32, #tpu.memory_space<vmem>>, vector<1x32x32xf32>
    %497 = vector.shape_cast %496 : vector<1x32x32xf32> to vector<32x32xf32>
    %cst_267 = arith.constant dense<0.000000e+00> : vector<1x32xf32>
    %498 = tpu.matmul %110, %497, %cst_267 {dimension_numbers = #tpu.dot_dimension_numbers<[1], [0], [0], [1], [0, 0, 1, 1], [], []>} : vector<1x32xf32>, vector<32x32xf32>, vector<1x32xf32> -> vector<1x32xf32>
    %499 = vector.broadcast %498 : vector<1x32xf32> to vector<16x32xf32>
    %500 = arith.addf %495, %499 : vector<16x32xf32>
    %c0_268 = arith.constant 0 : index
    %c6 = arith.constant 6 : index
    %501 = vector.load %arg30[%c0_268, %c6] : memref<1x13xf32, #tpu.memory_space<vmem>>, vector<1x1xf32>
    %502 = vector.extract %501[0, 0] : f32 from vector<1x1xf32>
    %cst_269 = arith.constant 0.000000e+00 : f32
    %503 = vector.broadcast %cst_269 : f32 to vector<16x32xf32>
    %504 = arith.cmpf oge, %500, %503 : vector<16x32xf32>
    %505 = vector.broadcast %502 : f32 to vector<16x32xf32>
    %506 = arith.mulf %505, %500 : vector<16x32xf32>
    %507 = arith.select %504, %500, %506 : vector<16x32xi1>, vector<16x32xf32>
    %508 = vector.shape_cast %507 : vector<16x32xf32> to vector<1x16x32xf32>
    %cst_270 = arith.constant dense<0.000000e+00> : vector<1xf32>
    %509 = vector.multi_reduction <add>, %508, %cst_270 [1, 2] : vector<1x16x32xf32> to vector<1xf32>
    %510 = vector.shape_cast %509 : vector<1xf32> to vector<1x1x1xf32>
    %511 = vector.extract %510[0, 0, 0] : f32 from vector<1x1x1xf32>
    %cst_271 = arith.constant 5.120000e+02 : f32
    %512 = arith.divf %511, %cst_271 : f32
    %513 = vector.broadcast %512 : f32 to vector<16x32xf32>
    %514 = arith.subf %507, %513 : vector<16x32xf32>
    %515 = arith.mulf %514, %514 : vector<16x32xf32>
    %516 = vector.shape_cast %515 : vector<16x32xf32> to vector<1x16x32xf32>
    %cst_272 = arith.constant dense<0.000000e+00> : vector<1xf32>
    %517 = vector.multi_reduction <add>, %516, %cst_272 [1, 2] : vector<1x16x32xf32> to vector<1xf32>
    %518 = vector.shape_cast %517 : vector<1xf32> to vector<1x1x1xf32>
    %519 = vector.extract %518[0, 0, 0] : f32 from vector<1x1x1xf32>
    %cst_273 = arith.constant 5.120000e+02 : f32
    %520 = arith.divf %519, %cst_273 : f32
    %521 = vector.broadcast %512 : f32 to vector<16x32xf32>
    %522 = arith.subf %507, %521 : vector<16x32xf32>
    %cst_274 = arith.constant 9.99999974E-6 : f32
    %523 = arith.addf %520, %cst_274 : f32
    %524 = math.rsqrt %523 : f32
    %525 = vector.broadcast %524 : f32 to vector<16x32xf32>
    %526 = arith.mulf %522, %525 : vector<16x32xf32>
    %c3_275 = arith.constant 3 : index
    %c0_276 = arith.constant 0 : index
    %c0_277 = arith.constant 0 : index
    %527 = vector.load %arg14[%c3_275, %c0_276, %c0_277] : memref<6x1x32xf32, #tpu.memory_space<vmem>>, vector<1x1x32xf32>
    %528 = vector.shape_cast %527 : vector<1x1x32xf32> to vector<1x32xf32>
    %529 = vector.broadcast %528 : vector<1x32xf32> to vector<16x32xf32>
    %530 = arith.mulf %526, %529 : vector<16x32xf32>
    %c3_278 = arith.constant 3 : index
    %c0_279 = arith.constant 0 : index
    %c0_280 = arith.constant 0 : index
    %531 = vector.load %arg15[%c3_278, %c0_279, %c0_280] : memref<6x1x32xf32, #tpu.memory_space<vmem>>, vector<1x1x32xf32>
    %532 = vector.shape_cast %531 : vector<1x1x32xf32> to vector<1x32xf32>
    %533 = vector.broadcast %532 : vector<1x32xf32> to vector<16x32xf32>
    %534 = arith.addf %530, %533 : vector<16x32xf32>
    %c1_i32_281 = arith.constant 1 : i32
    %535 = tpu.dynamic_rotate %534 by %c1_i32_281 dim 0 : vector<16x32xf32>, i32 -> vector<16x32xf32>
    %cst_282 = arith.constant 0.000000e+00 : f32
    %536 = vector.shape_cast %30 : vector<16x1xi1> to vector<16x1xi1>
    %537 = vector.broadcast %536 : vector<16x1xi1> to vector<16x32xi1>
    %538 = vector.broadcast %cst_282 : f32 to vector<16x32xf32>
    %539 = arith.select %537, %535, %538 : vector<16x32xi1>, vector<16x32xf32>
    %c15_i32_283 = arith.constant 15 : i32
    %540 = tpu.dynamic_rotate %534 by %c15_i32_283 dim 0 : vector<16x32xf32>, i32 -> vector<16x32xf32>
    %cst_284 = arith.constant 0.000000e+00 : f32
    %541 = vector.shape_cast %39 : vector<16x1xi1> to vector<16x1xi1>
    %542 = vector.broadcast %541 : vector<16x1xi1> to vector<16x32xi1>
    %543 = vector.broadcast %cst_284 : f32 to vector<16x32xf32>
    %544 = arith.select %542, %540, %543 : vector<16x32xi1>, vector<16x32xf32>
    %c3_285 = arith.constant 3 : index
    %c0_286 = arith.constant 0 : index
    %c0_287 = arith.constant 0 : index
    %545 = vector.load %arg16[%c3_285, %c0_286, %c0_287] : memref<6x1x32xf32, #tpu.memory_space<vmem>>, vector<1x1x32xf32>
    %546 = vector.shape_cast %545 : vector<1x1x32xf32> to vector<1x32xf32>
    %547 = vector.broadcast %546 : vector<1x32xf32> to vector<16x32xf32>
    %548 = arith.mulf %547, %539 : vector<16x32xf32>
    %c3_288 = arith.constant 3 : index
    %c0_289 = arith.constant 0 : index
    %c0_290 = arith.constant 0 : index
    %549 = vector.load %arg17[%c3_288, %c0_289, %c0_290] : memref<6x1x32xf32, #tpu.memory_space<vmem>>, vector<1x1x32xf32>
    %550 = vector.shape_cast %549 : vector<1x1x32xf32> to vector<1x32xf32>
    %551 = vector.broadcast %550 : vector<1x32xf32> to vector<16x32xf32>
    %552 = arith.mulf %551, %534 : vector<16x32xf32>
    %553 = arith.addf %548, %552 : vector<16x32xf32>
    %c3_291 = arith.constant 3 : index
    %c0_292 = arith.constant 0 : index
    %c0_293 = arith.constant 0 : index
    %554 = vector.load %arg18[%c3_291, %c0_292, %c0_293] : memref<6x1x32xf32, #tpu.memory_space<vmem>>, vector<1x1x32xf32>
    %555 = vector.shape_cast %554 : vector<1x1x32xf32> to vector<1x32xf32>
    %556 = vector.broadcast %555 : vector<1x32xf32> to vector<16x32xf32>
    %557 = arith.mulf %556, %544 : vector<16x32xf32>
    %558 = arith.addf %553, %557 : vector<16x32xf32>
    %c3_294 = arith.constant 3 : index
    %c0_295 = arith.constant 0 : index
    %c0_296 = arith.constant 0 : index
    %559 = vector.load %arg19[%c3_294, %c0_295, %c0_296] : memref<6x1x32xf32, #tpu.memory_space<vmem>>, vector<1x1x32xf32>
    %560 = vector.shape_cast %559 : vector<1x1x32xf32> to vector<1x32xf32>
    %561 = vector.broadcast %560 : vector<1x32xf32> to vector<16x32xf32>
    %562 = arith.addf %558, %561 : vector<16x32xf32>
    %c0_297 = arith.constant 0 : index
    %c7 = arith.constant 7 : index
    %563 = vector.load %arg30[%c0_297, %c7] : memref<1x13xf32, #tpu.memory_space<vmem>>, vector<1x1xf32>
    %564 = vector.extract %563[0, 0] : f32 from vector<1x1xf32>
    %cst_298 = arith.constant 0.000000e+00 : f32
    %565 = vector.broadcast %cst_298 : f32 to vector<16x32xf32>
    %566 = arith.cmpf oge, %562, %565 : vector<16x32xf32>
    %567 = vector.broadcast %564 : f32 to vector<16x32xf32>
    %568 = arith.mulf %567, %562 : vector<16x32xf32>
    %569 = arith.select %566, %562, %568 : vector<16x32xi1>, vector<16x32xf32>
    %570 = vector.shape_cast %569 : vector<16x32xf32> to vector<1x16x32xf32>
    %cst_299 = arith.constant dense<0.000000e+00> : vector<1xf32>
    %571 = vector.multi_reduction <add>, %570, %cst_299 [1, 2] : vector<1x16x32xf32> to vector<1xf32>
    %572 = vector.shape_cast %571 : vector<1xf32> to vector<1x1x1xf32>
    %573 = vector.extract %572[0, 0, 0] : f32 from vector<1x1x1xf32>
    %cst_300 = arith.constant 5.120000e+02 : f32
    %574 = arith.divf %573, %cst_300 : f32
    %575 = vector.broadcast %574 : f32 to vector<16x32xf32>
    %576 = arith.subf %569, %575 : vector<16x32xf32>
    %577 = arith.mulf %576, %576 : vector<16x32xf32>
    %578 = vector.shape_cast %577 : vector<16x32xf32> to vector<1x16x32xf32>
    %cst_301 = arith.constant dense<0.000000e+00> : vector<1xf32>
    %579 = vector.multi_reduction <add>, %578, %cst_301 [1, 2] : vector<1x16x32xf32> to vector<1xf32>
    %580 = vector.shape_cast %579 : vector<1xf32> to vector<1x1x1xf32>
    %581 = vector.extract %580[0, 0, 0] : f32 from vector<1x1x1xf32>
    %cst_302 = arith.constant 5.120000e+02 : f32
    %582 = arith.divf %581, %cst_302 : f32
    %583 = vector.broadcast %574 : f32 to vector<16x32xf32>
    %584 = arith.subf %569, %583 : vector<16x32xf32>
    %cst_303 = arith.constant 9.99999974E-6 : f32
    %585 = arith.addf %582, %cst_303 : f32
    %586 = math.rsqrt %585 : f32
    %587 = vector.broadcast %586 : f32 to vector<16x32xf32>
    %588 = arith.mulf %584, %587 : vector<16x32xf32>
    %c3_304 = arith.constant 3 : index
    %c0_305 = arith.constant 0 : index
    %c0_306 = arith.constant 0 : index
    %589 = vector.load %arg20[%c3_304, %c0_305, %c0_306] : memref<6x1x32xf32, #tpu.memory_space<vmem>>, vector<1x1x32xf32>
    %590 = vector.shape_cast %589 : vector<1x1x32xf32> to vector<1x32xf32>
    %591 = vector.broadcast %590 : vector<1x32xf32> to vector<16x32xf32>
    %592 = arith.mulf %588, %591 : vector<16x32xf32>
    %c3_307 = arith.constant 3 : index
    %c0_308 = arith.constant 0 : index
    %c0_309 = arith.constant 0 : index
    %593 = vector.load %arg21[%c3_307, %c0_308, %c0_309] : memref<6x1x32xf32, #tpu.memory_space<vmem>>, vector<1x1x32xf32>
    %594 = vector.shape_cast %593 : vector<1x1x32xf32> to vector<1x32xf32>
    %595 = vector.broadcast %594 : vector<1x32xf32> to vector<16x32xf32>
    %596 = arith.addf %592, %595 : vector<16x32xf32>
    %c3_310 = arith.constant 3 : index
    %c0_311 = arith.constant 0 : index
    %c0_312 = arith.constant 0 : index
    %597 = vector.load %arg22[%c3_310, %c0_311, %c0_312] : memref<6x32x16xf32, #tpu.memory_space<vmem>>, vector<1x32x16xf32>
    %598 = vector.shape_cast %597 : vector<1x32x16xf32> to vector<32x16xf32>
    %cst_313 = arith.constant dense<0.000000e+00> : vector<16x16xf32>
    %599 = tpu.matmul %596, %598, %cst_313 {dimension_numbers = #tpu.dot_dimension_numbers<[1], [0], [0], [1], [0, 0, 1, 1], [], []>} : vector<16x32xf32>, vector<32x16xf32>, vector<16x16xf32> -> vector<16x16xf32>
    %600 = arith.addf %476, %599 : vector<16x16xf32>
    %c3_314 = arith.constant 3 : index
    %c0_315 = arith.constant 0 : index
    %c0_316 = arith.constant 0 : index
    %601 = vector.load %arg24[%c3_314, %c0_315, %c0_316] : memref<6x1x16xf32, #tpu.memory_space<vmem>>, vector<1x1x16xf32>
    %602 = vector.shape_cast %601 : vector<1x1x16xf32> to vector<1x16xf32>
    %603 = vector.broadcast %602 : vector<1x16xf32> to vector<16x16xf32>
    %604 = arith.addf %600, %603 : vector<16x16xf32>
    %c3_317 = arith.constant 3 : index
    %c0_318 = arith.constant 0 : index
    %c0_319 = arith.constant 0 : index
    %605 = vector.load %arg23[%c3_317, %c0_318, %c0_319] : memref<6x32x8xf32, #tpu.memory_space<vmem>>, vector<1x32x8xf32>
    %606 = vector.shape_cast %605 : vector<1x32x8xf32> to vector<32x8xf32>
    %cst_320 = arith.constant dense<0.000000e+00> : vector<16x8xf32>
    %607 = tpu.matmul %596, %606, %cst_320 {dimension_numbers = #tpu.dot_dimension_numbers<[1], [0], [0], [1], [0, 0, 1, 1], [], []>} : vector<16x32xf32>, vector<32x8xf32>, vector<16x8xf32> -> vector<16x8xf32>
    %608 = arith.addf %484, %607 : vector<16x8xf32>
    %c3_321 = arith.constant 3 : index
    %c0_322 = arith.constant 0 : index
    %c0_323 = arith.constant 0 : index
    %609 = vector.load %arg25[%c3_321, %c0_322, %c0_323] : memref<6x1x8xf32, #tpu.memory_space<vmem>>, vector<1x1x8xf32>
    %610 = vector.shape_cast %609 : vector<1x1x8xf32> to vector<1x8xf32>
    %611 = vector.broadcast %610 : vector<1x8xf32> to vector<16x8xf32>
    %612 = arith.addf %608, %611 : vector<16x8xf32>
    %c4_324 = arith.constant 4 : index
    %c0_325 = arith.constant 0 : index
    %c0_326 = arith.constant 0 : index
    %613 = vector.load %arg10[%c4_324, %c0_325, %c0_326] : memref<6x16x32xf32, #tpu.memory_space<vmem>>, vector<1x16x32xf32>
    %614 = vector.shape_cast %613 : vector<1x16x32xf32> to vector<16x32xf32>
    %cst_327 = arith.constant dense<0.000000e+00> : vector<16x32xf32>
    %615 = tpu.matmul %604, %614, %cst_327 {dimension_numbers = #tpu.dot_dimension_numbers<[1], [0], [0], [1], [0, 0, 1, 1], [], []>} : vector<16x16xf32>, vector<16x32xf32>, vector<16x32xf32> -> vector<16x32xf32>
    %c4_328 = arith.constant 4 : index
    %c0_329 = arith.constant 0 : index
    %c0_330 = arith.constant 0 : index
    %616 = vector.load %arg11[%c4_328, %c0_329, %c0_330] : memref<6x8x32xf32, #tpu.memory_space<vmem>>, vector<1x8x32xf32>
    %617 = vector.shape_cast %616 : vector<1x8x32xf32> to vector<8x32xf32>
    %cst_331 = arith.constant dense<0.000000e+00> : vector<16x32xf32>
    %618 = tpu.matmul %612, %617, %cst_331 {dimension_numbers = #tpu.dot_dimension_numbers<[1], [0], [0], [1], [0, 0, 1, 1], [], []>} : vector<16x8xf32>, vector<8x32xf32>, vector<16x32xf32> -> vector<16x32xf32>
    %619 = arith.addf %615, %618 : vector<16x32xf32>
    %c4_332 = arith.constant 4 : index
    %c0_333 = arith.constant 0 : index
    %c0_334 = arith.constant 0 : index
    %620 = vector.load %arg13[%c4_332, %c0_333, %c0_334] : memref<6x1x32xf32, #tpu.memory_space<vmem>>, vector<1x1x32xf32>
    %621 = vector.shape_cast %620 : vector<1x1x32xf32> to vector<1x32xf32>
    %622 = vector.broadcast %621 : vector<1x32xf32> to vector<16x32xf32>
    %623 = arith.addf %619, %622 : vector<16x32xf32>
    %c0_335 = arith.constant 0 : index
    %c8 = arith.constant 8 : index
    %624 = vector.load %arg30[%c0_335, %c8] : memref<1x13xf32, #tpu.memory_space<vmem>>, vector<1x1xf32>
    %625 = vector.extract %624[0, 0] : f32 from vector<1x1xf32>
    %cst_336 = arith.constant 0.000000e+00 : f32
    %626 = vector.broadcast %cst_336 : f32 to vector<16x32xf32>
    %627 = arith.cmpf oge, %623, %626 : vector<16x32xf32>
    %628 = vector.broadcast %625 : f32 to vector<16x32xf32>
    %629 = arith.mulf %628, %623 : vector<16x32xf32>
    %630 = arith.select %627, %623, %629 : vector<16x32xi1>, vector<16x32xf32>
    %631 = vector.shape_cast %630 : vector<16x32xf32> to vector<1x16x32xf32>
    %cst_337 = arith.constant dense<0.000000e+00> : vector<1xf32>
    %632 = vector.multi_reduction <add>, %631, %cst_337 [1, 2] : vector<1x16x32xf32> to vector<1xf32>
    %633 = vector.shape_cast %632 : vector<1xf32> to vector<1x1x1xf32>
    %634 = vector.extract %633[0, 0, 0] : f32 from vector<1x1x1xf32>
    %cst_338 = arith.constant 5.120000e+02 : f32
    %635 = arith.divf %634, %cst_338 : f32
    %636 = vector.broadcast %635 : f32 to vector<16x32xf32>
    %637 = arith.subf %630, %636 : vector<16x32xf32>
    %638 = arith.mulf %637, %637 : vector<16x32xf32>
    %639 = vector.shape_cast %638 : vector<16x32xf32> to vector<1x16x32xf32>
    %cst_339 = arith.constant dense<0.000000e+00> : vector<1xf32>
    %640 = vector.multi_reduction <add>, %639, %cst_339 [1, 2] : vector<1x16x32xf32> to vector<1xf32>
    %641 = vector.shape_cast %640 : vector<1xf32> to vector<1x1x1xf32>
    %642 = vector.extract %641[0, 0, 0] : f32 from vector<1x1x1xf32>
    %cst_340 = arith.constant 5.120000e+02 : f32
    %643 = arith.divf %642, %cst_340 : f32
    %644 = vector.broadcast %635 : f32 to vector<16x32xf32>
    %645 = arith.subf %630, %644 : vector<16x32xf32>
    %cst_341 = arith.constant 9.99999974E-6 : f32
    %646 = arith.addf %643, %cst_341 : f32
    %647 = math.rsqrt %646 : f32
    %648 = vector.broadcast %647 : f32 to vector<16x32xf32>
    %649 = arith.mulf %645, %648 : vector<16x32xf32>
    %c4_342 = arith.constant 4 : index
    %c0_343 = arith.constant 0 : index
    %c0_344 = arith.constant 0 : index
    %650 = vector.load %arg14[%c4_342, %c0_343, %c0_344] : memref<6x1x32xf32, #tpu.memory_space<vmem>>, vector<1x1x32xf32>
    %651 = vector.shape_cast %650 : vector<1x1x32xf32> to vector<1x32xf32>
    %652 = vector.broadcast %651 : vector<1x32xf32> to vector<16x32xf32>
    %653 = arith.mulf %649, %652 : vector<16x32xf32>
    %c4_345 = arith.constant 4 : index
    %c0_346 = arith.constant 0 : index
    %c0_347 = arith.constant 0 : index
    %654 = vector.load %arg15[%c4_345, %c0_346, %c0_347] : memref<6x1x32xf32, #tpu.memory_space<vmem>>, vector<1x1x32xf32>
    %655 = vector.shape_cast %654 : vector<1x1x32xf32> to vector<1x32xf32>
    %656 = vector.broadcast %655 : vector<1x32xf32> to vector<16x32xf32>
    %657 = arith.addf %653, %656 : vector<16x32xf32>
    %c2_i32_348 = arith.constant 2 : i32
    %658 = tpu.dynamic_rotate %657 by %c2_i32_348 dim 0 : vector<16x32xf32>, i32 -> vector<16x32xf32>
    %cst_349 = arith.constant 0.000000e+00 : f32
    %659 = vector.shape_cast %21 : vector<16x1xi1> to vector<16x1xi1>
    %660 = vector.broadcast %659 : vector<16x1xi1> to vector<16x32xi1>
    %661 = vector.broadcast %cst_349 : f32 to vector<16x32xf32>
    %662 = arith.select %660, %658, %661 : vector<16x32xi1>, vector<16x32xf32>
    %c14_i32_350 = arith.constant 14 : i32
    %663 = tpu.dynamic_rotate %657 by %c14_i32_350 dim 0 : vector<16x32xf32>, i32 -> vector<16x32xf32>
    %cst_351 = arith.constant 0.000000e+00 : f32
    %664 = vector.shape_cast %48 : vector<16x1xi1> to vector<16x1xi1>
    %665 = vector.broadcast %664 : vector<16x1xi1> to vector<16x32xi1>
    %666 = vector.broadcast %cst_351 : f32 to vector<16x32xf32>
    %667 = arith.select %665, %663, %666 : vector<16x32xi1>, vector<16x32xf32>
    %c4_352 = arith.constant 4 : index
    %c0_353 = arith.constant 0 : index
    %c0_354 = arith.constant 0 : index
    %668 = vector.load %arg16[%c4_352, %c0_353, %c0_354] : memref<6x1x32xf32, #tpu.memory_space<vmem>>, vector<1x1x32xf32>
    %669 = vector.shape_cast %668 : vector<1x1x32xf32> to vector<1x32xf32>
    %670 = vector.broadcast %669 : vector<1x32xf32> to vector<16x32xf32>
    %671 = arith.mulf %670, %662 : vector<16x32xf32>
    %c4_355 = arith.constant 4 : index
    %c0_356 = arith.constant 0 : index
    %c0_357 = arith.constant 0 : index
    %672 = vector.load %arg17[%c4_355, %c0_356, %c0_357] : memref<6x1x32xf32, #tpu.memory_space<vmem>>, vector<1x1x32xf32>
    %673 = vector.shape_cast %672 : vector<1x1x32xf32> to vector<1x32xf32>
    %674 = vector.broadcast %673 : vector<1x32xf32> to vector<16x32xf32>
    %675 = arith.mulf %674, %657 : vector<16x32xf32>
    %676 = arith.addf %671, %675 : vector<16x32xf32>
    %c4_358 = arith.constant 4 : index
    %c0_359 = arith.constant 0 : index
    %c0_360 = arith.constant 0 : index
    %677 = vector.load %arg18[%c4_358, %c0_359, %c0_360] : memref<6x1x32xf32, #tpu.memory_space<vmem>>, vector<1x1x32xf32>
    %678 = vector.shape_cast %677 : vector<1x1x32xf32> to vector<1x32xf32>
    %679 = vector.broadcast %678 : vector<1x32xf32> to vector<16x32xf32>
    %680 = arith.mulf %679, %667 : vector<16x32xf32>
    %681 = arith.addf %676, %680 : vector<16x32xf32>
    %c4_361 = arith.constant 4 : index
    %c0_362 = arith.constant 0 : index
    %c0_363 = arith.constant 0 : index
    %682 = vector.load %arg19[%c4_361, %c0_362, %c0_363] : memref<6x1x32xf32, #tpu.memory_space<vmem>>, vector<1x1x32xf32>
    %683 = vector.shape_cast %682 : vector<1x1x32xf32> to vector<1x32xf32>
    %684 = vector.broadcast %683 : vector<1x32xf32> to vector<16x32xf32>
    %685 = arith.addf %681, %684 : vector<16x32xf32>
    %c0_364 = arith.constant 0 : index
    %c9 = arith.constant 9 : index
    %686 = vector.load %arg30[%c0_364, %c9] : memref<1x13xf32, #tpu.memory_space<vmem>>, vector<1x1xf32>
    %687 = vector.extract %686[0, 0] : f32 from vector<1x1xf32>
    %cst_365 = arith.constant 0.000000e+00 : f32
    %688 = vector.broadcast %cst_365 : f32 to vector<16x32xf32>
    %689 = arith.cmpf oge, %685, %688 : vector<16x32xf32>
    %690 = vector.broadcast %687 : f32 to vector<16x32xf32>
    %691 = arith.mulf %690, %685 : vector<16x32xf32>
    %692 = arith.select %689, %685, %691 : vector<16x32xi1>, vector<16x32xf32>
    %693 = vector.shape_cast %692 : vector<16x32xf32> to vector<1x16x32xf32>
    %cst_366 = arith.constant dense<0.000000e+00> : vector<1xf32>
    %694 = vector.multi_reduction <add>, %693, %cst_366 [1, 2] : vector<1x16x32xf32> to vector<1xf32>
    %695 = vector.shape_cast %694 : vector<1xf32> to vector<1x1x1xf32>
    %696 = vector.extract %695[0, 0, 0] : f32 from vector<1x1x1xf32>
    %cst_367 = arith.constant 5.120000e+02 : f32
    %697 = arith.divf %696, %cst_367 : f32
    %698 = vector.broadcast %697 : f32 to vector<16x32xf32>
    %699 = arith.subf %692, %698 : vector<16x32xf32>
    %700 = arith.mulf %699, %699 : vector<16x32xf32>
    %701 = vector.shape_cast %700 : vector<16x32xf32> to vector<1x16x32xf32>
    %cst_368 = arith.constant dense<0.000000e+00> : vector<1xf32>
    %702 = vector.multi_reduction <add>, %701, %cst_368 [1, 2] : vector<1x16x32xf32> to vector<1xf32>
    %703 = vector.shape_cast %702 : vector<1xf32> to vector<1x1x1xf32>
    %704 = vector.extract %703[0, 0, 0] : f32 from vector<1x1x1xf32>
    %cst_369 = arith.constant 5.120000e+02 : f32
    %705 = arith.divf %704, %cst_369 : f32
    %706 = vector.broadcast %697 : f32 to vector<16x32xf32>
    %707 = arith.subf %692, %706 : vector<16x32xf32>
    %cst_370 = arith.constant 9.99999974E-6 : f32
    %708 = arith.addf %705, %cst_370 : f32
    %709 = math.rsqrt %708 : f32
    %710 = vector.broadcast %709 : f32 to vector<16x32xf32>
    %711 = arith.mulf %707, %710 : vector<16x32xf32>
    %c4_371 = arith.constant 4 : index
    %c0_372 = arith.constant 0 : index
    %c0_373 = arith.constant 0 : index
    %712 = vector.load %arg20[%c4_371, %c0_372, %c0_373] : memref<6x1x32xf32, #tpu.memory_space<vmem>>, vector<1x1x32xf32>
    %713 = vector.shape_cast %712 : vector<1x1x32xf32> to vector<1x32xf32>
    %714 = vector.broadcast %713 : vector<1x32xf32> to vector<16x32xf32>
    %715 = arith.mulf %711, %714 : vector<16x32xf32>
    %c4_374 = arith.constant 4 : index
    %c0_375 = arith.constant 0 : index
    %c0_376 = arith.constant 0 : index
    %716 = vector.load %arg21[%c4_374, %c0_375, %c0_376] : memref<6x1x32xf32, #tpu.memory_space<vmem>>, vector<1x1x32xf32>
    %717 = vector.shape_cast %716 : vector<1x1x32xf32> to vector<1x32xf32>
    %718 = vector.broadcast %717 : vector<1x32xf32> to vector<16x32xf32>
    %719 = arith.addf %715, %718 : vector<16x32xf32>
    %c4_377 = arith.constant 4 : index
    %c0_378 = arith.constant 0 : index
    %c0_379 = arith.constant 0 : index
    %720 = vector.load %arg22[%c4_377, %c0_378, %c0_379] : memref<6x32x16xf32, #tpu.memory_space<vmem>>, vector<1x32x16xf32>
    %721 = vector.shape_cast %720 : vector<1x32x16xf32> to vector<32x16xf32>
    %cst_380 = arith.constant dense<0.000000e+00> : vector<16x16xf32>
    %722 = tpu.matmul %719, %721, %cst_380 {dimension_numbers = #tpu.dot_dimension_numbers<[1], [0], [0], [1], [0, 0, 1, 1], [], []>} : vector<16x32xf32>, vector<32x16xf32>, vector<16x16xf32> -> vector<16x16xf32>
    %723 = arith.addf %604, %722 : vector<16x16xf32>
    %c4_381 = arith.constant 4 : index
    %c0_382 = arith.constant 0 : index
    %c0_383 = arith.constant 0 : index
    %724 = vector.load %arg24[%c4_381, %c0_382, %c0_383] : memref<6x1x16xf32, #tpu.memory_space<vmem>>, vector<1x1x16xf32>
    %725 = vector.shape_cast %724 : vector<1x1x16xf32> to vector<1x16xf32>
    %726 = vector.broadcast %725 : vector<1x16xf32> to vector<16x16xf32>
    %727 = arith.addf %723, %726 : vector<16x16xf32>
    %c4_384 = arith.constant 4 : index
    %c0_385 = arith.constant 0 : index
    %c0_386 = arith.constant 0 : index
    %728 = vector.load %arg23[%c4_384, %c0_385, %c0_386] : memref<6x32x8xf32, #tpu.memory_space<vmem>>, vector<1x32x8xf32>
    %729 = vector.shape_cast %728 : vector<1x32x8xf32> to vector<32x8xf32>
    %cst_387 = arith.constant dense<0.000000e+00> : vector<16x8xf32>
    %730 = tpu.matmul %719, %729, %cst_387 {dimension_numbers = #tpu.dot_dimension_numbers<[1], [0], [0], [1], [0, 0, 1, 1], [], []>} : vector<16x32xf32>, vector<32x8xf32>, vector<16x8xf32> -> vector<16x8xf32>
    %731 = arith.addf %612, %730 : vector<16x8xf32>
    %c4_388 = arith.constant 4 : index
    %c0_389 = arith.constant 0 : index
    %c0_390 = arith.constant 0 : index
    %732 = vector.load %arg25[%c4_388, %c0_389, %c0_390] : memref<6x1x8xf32, #tpu.memory_space<vmem>>, vector<1x1x8xf32>
    %733 = vector.shape_cast %732 : vector<1x1x8xf32> to vector<1x8xf32>
    %734 = vector.broadcast %733 : vector<1x8xf32> to vector<16x8xf32>
    %735 = arith.addf %731, %734 : vector<16x8xf32>
    %c5_391 = arith.constant 5 : index
    %c0_392 = arith.constant 0 : index
    %c0_393 = arith.constant 0 : index
    %736 = vector.load %arg10[%c5_391, %c0_392, %c0_393] : memref<6x16x32xf32, #tpu.memory_space<vmem>>, vector<1x16x32xf32>
    %737 = vector.shape_cast %736 : vector<1x16x32xf32> to vector<16x32xf32>
    %cst_394 = arith.constant dense<0.000000e+00> : vector<16x32xf32>
    %738 = tpu.matmul %727, %737, %cst_394 {dimension_numbers = #tpu.dot_dimension_numbers<[1], [0], [0], [1], [0, 0, 1, 1], [], []>} : vector<16x16xf32>, vector<16x32xf32>, vector<16x32xf32> -> vector<16x32xf32>
    %c5_395 = arith.constant 5 : index
    %c0_396 = arith.constant 0 : index
    %c0_397 = arith.constant 0 : index
    %739 = vector.load %arg11[%c5_395, %c0_396, %c0_397] : memref<6x8x32xf32, #tpu.memory_space<vmem>>, vector<1x8x32xf32>
    %740 = vector.shape_cast %739 : vector<1x8x32xf32> to vector<8x32xf32>
    %cst_398 = arith.constant dense<0.000000e+00> : vector<16x32xf32>
    %741 = tpu.matmul %735, %740, %cst_398 {dimension_numbers = #tpu.dot_dimension_numbers<[1], [0], [0], [1], [0, 0, 1, 1], [], []>} : vector<16x8xf32>, vector<8x32xf32>, vector<16x32xf32> -> vector<16x32xf32>
    %742 = arith.addf %738, %741 : vector<16x32xf32>
    %c5_399 = arith.constant 5 : index
    %c0_400 = arith.constant 0 : index
    %c0_401 = arith.constant 0 : index
    %743 = vector.load %arg13[%c5_399, %c0_400, %c0_401] : memref<6x1x32xf32, #tpu.memory_space<vmem>>, vector<1x1x32xf32>
    %744 = vector.shape_cast %743 : vector<1x1x32xf32> to vector<1x32xf32>
    %745 = vector.broadcast %744 : vector<1x32xf32> to vector<16x32xf32>
    %746 = arith.addf %742, %745 : vector<16x32xf32>
    %c0_402 = arith.constant 0 : index
    %c10 = arith.constant 10 : index
    %747 = vector.load %arg30[%c0_402, %c10] : memref<1x13xf32, #tpu.memory_space<vmem>>, vector<1x1xf32>
    %748 = vector.extract %747[0, 0] : f32 from vector<1x1xf32>
    %cst_403 = arith.constant 0.000000e+00 : f32
    %749 = vector.broadcast %cst_403 : f32 to vector<16x32xf32>
    %750 = arith.cmpf oge, %746, %749 : vector<16x32xf32>
    %751 = vector.broadcast %748 : f32 to vector<16x32xf32>
    %752 = arith.mulf %751, %746 : vector<16x32xf32>
    %753 = arith.select %750, %746, %752 : vector<16x32xi1>, vector<16x32xf32>
    %754 = vector.shape_cast %753 : vector<16x32xf32> to vector<1x16x32xf32>
    %cst_404 = arith.constant dense<0.000000e+00> : vector<1xf32>
    %755 = vector.multi_reduction <add>, %754, %cst_404 [1, 2] : vector<1x16x32xf32> to vector<1xf32>
    %756 = vector.shape_cast %755 : vector<1xf32> to vector<1x1x1xf32>
    %757 = vector.extract %756[0, 0, 0] : f32 from vector<1x1x1xf32>
    %cst_405 = arith.constant 5.120000e+02 : f32
    %758 = arith.divf %757, %cst_405 : f32
    %759 = vector.broadcast %758 : f32 to vector<16x32xf32>
    %760 = arith.subf %753, %759 : vector<16x32xf32>
    %761 = arith.mulf %760, %760 : vector<16x32xf32>
    %762 = vector.shape_cast %761 : vector<16x32xf32> to vector<1x16x32xf32>
    %cst_406 = arith.constant dense<0.000000e+00> : vector<1xf32>
    %763 = vector.multi_reduction <add>, %762, %cst_406 [1, 2] : vector<1x16x32xf32> to vector<1xf32>
    %764 = vector.shape_cast %763 : vector<1xf32> to vector<1x1x1xf32>
    %765 = vector.extract %764[0, 0, 0] : f32 from vector<1x1x1xf32>
    %cst_407 = arith.constant 5.120000e+02 : f32
    %766 = arith.divf %765, %cst_407 : f32
    %767 = vector.broadcast %758 : f32 to vector<16x32xf32>
    %768 = arith.subf %753, %767 : vector<16x32xf32>
    %cst_408 = arith.constant 9.99999974E-6 : f32
    %769 = arith.addf %766, %cst_408 : f32
    %770 = math.rsqrt %769 : f32
    %771 = vector.broadcast %770 : f32 to vector<16x32xf32>
    %772 = arith.mulf %768, %771 : vector<16x32xf32>
    %c5_409 = arith.constant 5 : index
    %c0_410 = arith.constant 0 : index
    %c0_411 = arith.constant 0 : index
    %773 = vector.load %arg14[%c5_409, %c0_410, %c0_411] : memref<6x1x32xf32, #tpu.memory_space<vmem>>, vector<1x1x32xf32>
    %774 = vector.shape_cast %773 : vector<1x1x32xf32> to vector<1x32xf32>
    %775 = vector.broadcast %774 : vector<1x32xf32> to vector<16x32xf32>
    %776 = arith.mulf %772, %775 : vector<16x32xf32>
    %c5_412 = arith.constant 5 : index
    %c0_413 = arith.constant 0 : index
    %c0_414 = arith.constant 0 : index
    %777 = vector.load %arg15[%c5_412, %c0_413, %c0_414] : memref<6x1x32xf32, #tpu.memory_space<vmem>>, vector<1x1x32xf32>
    %778 = vector.shape_cast %777 : vector<1x1x32xf32> to vector<1x32xf32>
    %779 = vector.broadcast %778 : vector<1x32xf32> to vector<16x32xf32>
    %780 = arith.addf %776, %779 : vector<16x32xf32>
    %c4_i32_415 = arith.constant 4 : i32
    %781 = tpu.dynamic_rotate %780 by %c4_i32_415 dim 0 : vector<16x32xf32>, i32 -> vector<16x32xf32>
    %cst_416 = arith.constant 0.000000e+00 : f32
    %782 = vector.shape_cast %12 : vector<16x1xi1> to vector<16x1xi1>
    %783 = vector.broadcast %782 : vector<16x1xi1> to vector<16x32xi1>
    %784 = vector.broadcast %cst_416 : f32 to vector<16x32xf32>
    %785 = arith.select %783, %781, %784 : vector<16x32xi1>, vector<16x32xf32>
    %c12_i32_417 = arith.constant 12 : i32
    %786 = tpu.dynamic_rotate %780 by %c12_i32_417 dim 0 : vector<16x32xf32>, i32 -> vector<16x32xf32>
    %cst_418 = arith.constant 0.000000e+00 : f32
    %787 = vector.shape_cast %57 : vector<16x1xi1> to vector<16x1xi1>
    %788 = vector.broadcast %787 : vector<16x1xi1> to vector<16x32xi1>
    %789 = vector.broadcast %cst_418 : f32 to vector<16x32xf32>
    %790 = arith.select %788, %786, %789 : vector<16x32xi1>, vector<16x32xf32>
    %c5_419 = arith.constant 5 : index
    %c0_420 = arith.constant 0 : index
    %c0_421 = arith.constant 0 : index
    %791 = vector.load %arg16[%c5_419, %c0_420, %c0_421] : memref<6x1x32xf32, #tpu.memory_space<vmem>>, vector<1x1x32xf32>
    %792 = vector.shape_cast %791 : vector<1x1x32xf32> to vector<1x32xf32>
    %793 = vector.broadcast %792 : vector<1x32xf32> to vector<16x32xf32>
    %794 = arith.mulf %793, %785 : vector<16x32xf32>
    %c5_422 = arith.constant 5 : index
    %c0_423 = arith.constant 0 : index
    %c0_424 = arith.constant 0 : index
    %795 = vector.load %arg17[%c5_422, %c0_423, %c0_424] : memref<6x1x32xf32, #tpu.memory_space<vmem>>, vector<1x1x32xf32>
    %796 = vector.shape_cast %795 : vector<1x1x32xf32> to vector<1x32xf32>
    %797 = vector.broadcast %796 : vector<1x32xf32> to vector<16x32xf32>
    %798 = arith.mulf %797, %780 : vector<16x32xf32>
    %799 = arith.addf %794, %798 : vector<16x32xf32>
    %c5_425 = arith.constant 5 : index
    %c0_426 = arith.constant 0 : index
    %c0_427 = arith.constant 0 : index
    %800 = vector.load %arg18[%c5_425, %c0_426, %c0_427] : memref<6x1x32xf32, #tpu.memory_space<vmem>>, vector<1x1x32xf32>
    %801 = vector.shape_cast %800 : vector<1x1x32xf32> to vector<1x32xf32>
    %802 = vector.broadcast %801 : vector<1x32xf32> to vector<16x32xf32>
    %803 = arith.mulf %802, %790 : vector<16x32xf32>
    %804 = arith.addf %799, %803 : vector<16x32xf32>
    %c5_428 = arith.constant 5 : index
    %c0_429 = arith.constant 0 : index
    %c0_430 = arith.constant 0 : index
    %805 = vector.load %arg19[%c5_428, %c0_429, %c0_430] : memref<6x1x32xf32, #tpu.memory_space<vmem>>, vector<1x1x32xf32>
    %806 = vector.shape_cast %805 : vector<1x1x32xf32> to vector<1x32xf32>
    %807 = vector.broadcast %806 : vector<1x32xf32> to vector<16x32xf32>
    %808 = arith.addf %804, %807 : vector<16x32xf32>
    %c0_431 = arith.constant 0 : index
    %c11 = arith.constant 11 : index
    %809 = vector.load %arg30[%c0_431, %c11] : memref<1x13xf32, #tpu.memory_space<vmem>>, vector<1x1xf32>
    %810 = vector.extract %809[0, 0] : f32 from vector<1x1xf32>
    %cst_432 = arith.constant 0.000000e+00 : f32
    %811 = vector.broadcast %cst_432 : f32 to vector<16x32xf32>
    %812 = arith.cmpf oge, %808, %811 : vector<16x32xf32>
    %813 = vector.broadcast %810 : f32 to vector<16x32xf32>
    %814 = arith.mulf %813, %808 : vector<16x32xf32>
    %815 = arith.select %812, %808, %814 : vector<16x32xi1>, vector<16x32xf32>
    %816 = vector.shape_cast %815 : vector<16x32xf32> to vector<1x16x32xf32>
    %cst_433 = arith.constant dense<0.000000e+00> : vector<1xf32>
    %817 = vector.multi_reduction <add>, %816, %cst_433 [1, 2] : vector<1x16x32xf32> to vector<1xf32>
    %818 = vector.shape_cast %817 : vector<1xf32> to vector<1x1x1xf32>
    %819 = vector.extract %818[0, 0, 0] : f32 from vector<1x1x1xf32>
    %cst_434 = arith.constant 5.120000e+02 : f32
    %820 = arith.divf %819, %cst_434 : f32
    %821 = vector.broadcast %820 : f32 to vector<16x32xf32>
    %822 = arith.subf %815, %821 : vector<16x32xf32>
    %823 = arith.mulf %822, %822 : vector<16x32xf32>
    %824 = vector.shape_cast %823 : vector<16x32xf32> to vector<1x16x32xf32>
    %cst_435 = arith.constant dense<0.000000e+00> : vector<1xf32>
    %825 = vector.multi_reduction <add>, %824, %cst_435 [1, 2] : vector<1x16x32xf32> to vector<1xf32>
    %826 = vector.shape_cast %825 : vector<1xf32> to vector<1x1x1xf32>
    %827 = vector.extract %826[0, 0, 0] : f32 from vector<1x1x1xf32>
    %cst_436 = arith.constant 5.120000e+02 : f32
    %828 = arith.divf %827, %cst_436 : f32
    %829 = vector.broadcast %820 : f32 to vector<16x32xf32>
    %830 = arith.subf %815, %829 : vector<16x32xf32>
    %cst_437 = arith.constant 9.99999974E-6 : f32
    %831 = arith.addf %828, %cst_437 : f32
    %832 = math.rsqrt %831 : f32
    %833 = vector.broadcast %832 : f32 to vector<16x32xf32>
    %834 = arith.mulf %830, %833 : vector<16x32xf32>
    %c5_438 = arith.constant 5 : index
    %c0_439 = arith.constant 0 : index
    %c0_440 = arith.constant 0 : index
    %835 = vector.load %arg20[%c5_438, %c0_439, %c0_440] : memref<6x1x32xf32, #tpu.memory_space<vmem>>, vector<1x1x32xf32>
    %836 = vector.shape_cast %835 : vector<1x1x32xf32> to vector<1x32xf32>
    %837 = vector.broadcast %836 : vector<1x32xf32> to vector<16x32xf32>
    %838 = arith.mulf %834, %837 : vector<16x32xf32>
    %c5_441 = arith.constant 5 : index
    %c0_442 = arith.constant 0 : index
    %c0_443 = arith.constant 0 : index
    %839 = vector.load %arg21[%c5_441, %c0_442, %c0_443] : memref<6x1x32xf32, #tpu.memory_space<vmem>>, vector<1x1x32xf32>
    %840 = vector.shape_cast %839 : vector<1x1x32xf32> to vector<1x32xf32>
    %841 = vector.broadcast %840 : vector<1x32xf32> to vector<16x32xf32>
    %842 = arith.addf %838, %841 : vector<16x32xf32>
    %c5_444 = arith.constant 5 : index
    %c0_445 = arith.constant 0 : index
    %c0_446 = arith.constant 0 : index
    %843 = vector.load %arg22[%c5_444, %c0_445, %c0_446] : memref<6x32x16xf32, #tpu.memory_space<vmem>>, vector<1x32x16xf32>
    %844 = vector.shape_cast %843 : vector<1x32x16xf32> to vector<32x16xf32>
    %cst_447 = arith.constant dense<0.000000e+00> : vector<16x16xf32>
    %845 = tpu.matmul %842, %844, %cst_447 {dimension_numbers = #tpu.dot_dimension_numbers<[1], [0], [0], [1], [0, 0, 1, 1], [], []>} : vector<16x32xf32>, vector<32x16xf32>, vector<16x16xf32> -> vector<16x16xf32>
    %846 = arith.addf %727, %845 : vector<16x16xf32>
    %c5_448 = arith.constant 5 : index
    %c0_449 = arith.constant 0 : index
    %c0_450 = arith.constant 0 : index
    %847 = vector.load %arg24[%c5_448, %c0_449, %c0_450] : memref<6x1x16xf32, #tpu.memory_space<vmem>>, vector<1x1x16xf32>
    %848 = vector.shape_cast %847 : vector<1x1x16xf32> to vector<1x16xf32>
    %849 = vector.broadcast %848 : vector<1x16xf32> to vector<16x16xf32>
    %850 = arith.addf %846, %849 : vector<16x16xf32>
    %c5_451 = arith.constant 5 : index
    %c0_452 = arith.constant 0 : index
    %c0_453 = arith.constant 0 : index
    %851 = vector.load %arg23[%c5_451, %c0_452, %c0_453] : memref<6x32x8xf32, #tpu.memory_space<vmem>>, vector<1x32x8xf32>
    %852 = vector.shape_cast %851 : vector<1x32x8xf32> to vector<32x8xf32>
    %cst_454 = arith.constant dense<0.000000e+00> : vector<16x8xf32>
    %853 = tpu.matmul %842, %852, %cst_454 {dimension_numbers = #tpu.dot_dimension_numbers<[1], [0], [0], [1], [0, 0, 1, 1], [], []>} : vector<16x32xf32>, vector<32x8xf32>, vector<16x8xf32> -> vector<16x8xf32>
    %854 = arith.addf %735, %853 : vector<16x8xf32>
    %c5_455 = arith.constant 5 : index
    %c0_456 = arith.constant 0 : index
    %c0_457 = arith.constant 0 : index
    %855 = vector.load %arg25[%c5_455, %c0_456, %c0_457] : memref<6x1x8xf32, #tpu.memory_space<vmem>>, vector<1x1x8xf32>
    %856 = vector.shape_cast %855 : vector<1x1x8xf32> to vector<1x8xf32>
    %857 = vector.broadcast %856 : vector<1x8xf32> to vector<16x8xf32>
    %858 = arith.addf %854, %857 : vector<16x8xf32>
    %c0_458 = arith.constant 0 : index
    %c0_459 = arith.constant 0 : index
    %859 = vector.load %arg32[%c0_458, %c0_459] : memref<16x8xf32, #tpu.memory_space<vmem>>, vector<16x8xf32>
    tpu.vector_store %arg32[%c0_458, %c0_459], %858 {strides = array<i32>} : memref<16x8xf32, #tpu.memory_space<vmem>>, vector<16x8xf32>,
    %c0_460 = arith.constant 0 : index
    %c0_461 = arith.constant 0 : index
    %860 = vector.load %arg26[%c0_460, %c0_461] : memref<16x16xf32, #tpu.memory_space<vmem>>, vector<16x16xf32>
    %cst_462 = arith.constant dense<0.000000e+00> : vector<16x16xf32>
    %861 = tpu.matmul %850, %860, %cst_462 {dimension_numbers = #tpu.dot_dimension_numbers<[1], [0], [0], [1], [0, 0, 1, 1], [], []>} : vector<16x16xf32>, vector<16x16xf32>, vector<16x16xf32> -> vector<16x16xf32>
    %c0_463 = arith.constant 0 : index
    %c0_464 = arith.constant 0 : index
    %862 = vector.load %arg27[%c0_463, %c0_464] : memref<1x16xf32, #tpu.memory_space<vmem>>, vector<1x16xf32>
    %863 = vector.broadcast %862 : vector<1x16xf32> to vector<16x16xf32>
    %864 = arith.addf %861, %863 : vector<16x16xf32>
    %cst_465 = arith.constant 0.000000e+00 : f32
    %865 = vector.broadcast %cst_465 : f32 to vector<16x16xf32>
    %866 = arith.maximumf %864, %865 : vector<16x16xf32>
    %867 = arith.mulf %78, %866 : vector<16x16xf32>
    %c0_466 = arith.constant 0 : index
    %c0_467 = arith.constant 0 : index
    %868 = vector.load %arg28[%c0_466, %c0_467] : memref<16x8xf32, #tpu.memory_space<vmem>>, vector<16x8xf32>
    %cst_468 = arith.constant dense<0.000000e+00> : vector<16x8xf32>
    %869 = tpu.matmul %867, %868, %cst_468 {dimension_numbers = #tpu.dot_dimension_numbers<[1], [0], [0], [1], [0, 0, 1, 1], [], []>} : vector<16x16xf32>, vector<16x8xf32>, vector<16x8xf32> -> vector<16x8xf32>
    %c0_469 = arith.constant 0 : index
    %c0_470 = arith.constant 0 : index
    %870 = vector.load %arg29[%c0_469, %c0_470] : memref<16x8xf32, #tpu.memory_space<vmem>>, vector<16x8xf32>
    %cst_471 = arith.constant dense<0.000000e+00> : vector<16x8xf32>
    %871 = tpu.matmul %867, %870, %cst_471 {dimension_numbers = #tpu.dot_dimension_numbers<[1], [0], [0], [1], [0, 0, 1, 1], [], []>} : vector<16x16xf32>, vector<16x8xf32>, vector<16x8xf32> -> vector<16x8xf32>
    %cst_472 = arith.constant dense<0.000000e+00> : vector<17x8xf32>
    %872 = tpu.matmul %63, %869, %cst_472 {dimension_numbers = #tpu.dot_dimension_numbers<[1], [0], [0], [1], [0, 0, 1, 1], [], []>} : vector<17x16xf32>, vector<16x8xf32>, vector<17x8xf32> -> vector<17x8xf32>
    %cst_473 = arith.constant dense<0.000000e+00> : vector<17x8xf32>
    %873 = tpu.matmul %69, %871, %cst_473 {dimension_numbers = #tpu.dot_dimension_numbers<[1], [0], [0], [1], [0, 0, 1, 1], [], []>} : vector<17x16xf32>, vector<16x8xf32>, vector<17x8xf32> -> vector<17x8xf32>
    %874 = arith.addf %872, %873 : vector<17x8xf32>
    %c0_474 = arith.constant 0 : index
    %c12 = arith.constant 12 : index
    %875 = vector.load %arg30[%c0_474, %c12] : memref<1x13xf32, #tpu.memory_space<vmem>>, vector<1x1xf32>
    %876 = vector.extract %875[0, 0] : f32 from vector<1x1xf32>
    %877 = vector.broadcast %876 : f32 to vector<17x8xf32>
    %878 = arith.addf %874, %877 : vector<17x8xf32>
    %879 = vector.shape_cast %878 : vector<17x8xf32> to vector<1x1x17x8xf32>
    %c0_475 = arith.constant 0 : index
    %c0_476 = arith.constant 0 : index
    %c0_477 = arith.constant 0 : index
    %c0_478 = arith.constant 0 : index
    %880 = vector.load %arg31[%c0_475, %c0_476, %c0_477, %c0_478] : memref<1x1x17x8xf32, #tpu.memory_space<vmem>>, vector<1x1x17x8xf32>
    tpu.vector_store %arg31[%c0_475, %c0_476, %c0_477, %c0_478], %879 {strides = array<i32>} : memref<1x1x17x8xf32, #tpu.memory_space<vmem>>, vector<1x1x17x8xf32>,
    return
  }
  func.func @transform_0(%arg0: i32, %arg1: i32) -> (i32, i32, i32, i32) {
    %c0_i32 = arith.constant 0 : i32
    %c0_i32_0 = arith.constant 0 : i32
    %c0_i32_1 = arith.constant 0 : i32
    return %arg1, %arg0, %c0_i32, %c0_i32_0 : i32, i32, i32, i32
  }
  func.func @transform_1(%arg0: i32, %arg1: i32) -> (i32, i32, i32) {
    %c0_i32 = arith.constant 0 : i32
    %c0_i32_0 = arith.constant 0 : i32
    %c0_i32_1 = arith.constant 0 : i32
    return %arg0, %c0_i32, %c0_i32_0 : i32, i32, i32
  }
  func.func @transform_2(%arg0: i32, %arg1: i32) -> (i32, i32) {
    %c0_i32 = arith.constant 0 : i32
    %c0_i32_0 = arith.constant 0 : i32
    %c0_i32_1 = arith.constant 0 : i32
    return %c0_i32, %c0_i32_0 : i32, i32
  }
  func.func @transform_3(%arg0: i32, %arg1: i32) -> (i32, i32) {
    %c0_i32 = arith.constant 0 : i32
    %c0_i32_0 = arith.constant 0 : i32
    %c0_i32_1 = arith.constant 0 : i32
    return %c0_i32, %c0_i32_0 : i32, i32
  }
  func.func @transform_4(%arg0: i32, %arg1: i32) -> (i32, i32) {
    %c0_i32 = arith.constant 0 : i32
    %c0_i32_0 = arith.constant 0 : i32
    %c0_i32_1 = arith.constant 0 : i32
    return %c0_i32, %c0_i32_0 : i32, i32
  }
  func.func @transform_5(%arg0: i32, %arg1: i32) -> (i32, i32) {
    %c0_i32 = arith.constant 0 : i32
    %c0_i32_0 = arith.constant 0 : i32
    %c0_i32_1 = arith.constant 0 : i32
    return %c0_i32, %c0_i32_0 : i32, i32
  }
  func.func @transform_6(%arg0: i32, %arg1: i32) -> (i32, i32) {
    %c0_i32 = arith.constant 0 : i32
    %c0_i32_0 = arith.constant 0 : i32
    %c0_i32_1 = arith.constant 0 : i32
    return %c0_i32, %c0_i32_0 : i32, i32
  }
  func.func @transform_7(%arg0: i32, %arg1: i32) -> (i32, i32) {
    %c0_i32 = arith.constant 0 : i32
    %c0_i32_0 = arith.constant 0 : i32
    %c0_i32_1 = arith.constant 0 : i32
    return %c0_i32, %c0_i32_0 : i32, i32
  }
  func.func @transform_8(%arg0: i32, %arg1: i32) -> (i32, i32, i32) {
    %c0_i32 = arith.constant 0 : i32
    %c0_i32_0 = arith.constant 0 : i32
    %c0_i32_1 = arith.constant 0 : i32
    %c0_i32_2 = arith.constant 0 : i32
    return %c0_i32, %c0_i32_0, %c0_i32_1 : i32, i32, i32
  }
  func.func @transform_9(%arg0: i32, %arg1: i32) -> (i32, i32, i32) {
    %c0_i32 = arith.constant 0 : i32
    %c0_i32_0 = arith.constant 0 : i32
    %c0_i32_1 = arith.constant 0 : i32
    %c0_i32_2 = arith.constant 0 : i32
    return %c0_i32, %c0_i32_0, %c0_i32_1 : i32, i32, i32
  }
  func.func @transform_10(%arg0: i32, %arg1: i32) -> (i32, i32, i32) {
    %c0_i32 = arith.constant 0 : i32
    %c0_i32_0 = arith.constant 0 : i32
    %c0_i32_1 = arith.constant 0 : i32
    %c0_i32_2 = arith.constant 0 : i32
    return %c0_i32, %c0_i32_0, %c0_i32_1 : i32, i32, i32
  }
  func.func @transform_11(%arg0: i32, %arg1: i32) -> (i32, i32, i32) {
    %c0_i32 = arith.constant 0 : i32
    %c0_i32_0 = arith.constant 0 : i32
    %c0_i32_1 = arith.constant 0 : i32
    %c0_i32_2 = arith.constant 0 : i32
    return %c0_i32, %c0_i32_0, %c0_i32_1 : i32, i32, i32
  }
  func.func @transform_12(%arg0: i32, %arg1: i32) -> (i32, i32, i32) {
    %c0_i32 = arith.constant 0 : i32
    %c0_i32_0 = arith.constant 0 : i32
    %c0_i32_1 = arith.constant 0 : i32
    %c0_i32_2 = arith.constant 0 : i32
    return %c0_i32, %c0_i32_0, %c0_i32_1 : i32, i32, i32
  }
  func.func @transform_13(%arg0: i32, %arg1: i32) -> (i32, i32, i32) {
    %c0_i32 = arith.constant 0 : i32
    %c0_i32_0 = arith.constant 0 : i32
    %c0_i32_1 = arith.constant 0 : i32
    %c0_i32_2 = arith.constant 0 : i32
    return %c0_i32, %c0_i32_0, %c0_i32_1 : i32, i32, i32
  }
  func.func @transform_14(%arg0: i32, %arg1: i32) -> (i32, i32, i32) {
    %c0_i32 = arith.constant 0 : i32
    %c0_i32_0 = arith.constant 0 : i32
    %c0_i32_1 = arith.constant 0 : i32
    %c0_i32_2 = arith.constant 0 : i32
    return %c0_i32, %c0_i32_0, %c0_i32_1 : i32, i32, i32
  }
  func.func @transform_15(%arg0: i32, %arg1: i32) -> (i32, i32, i32) {
    %c0_i32 = arith.constant 0 : i32
    %c0_i32_0 = arith.constant 0 : i32
    %c0_i32_1 = arith.constant 0 : i32
    %c0_i32_2 = arith.constant 0 : i32
    return %c0_i32, %c0_i32_0, %c0_i32_1 : i32, i32, i32
  }
  func.func @transform_16(%arg0: i32, %arg1: i32) -> (i32, i32, i32) {
    %c0_i32 = arith.constant 0 : i32
    %c0_i32_0 = arith.constant 0 : i32
    %c0_i32_1 = arith.constant 0 : i32
    %c0_i32_2 = arith.constant 0 : i32
    return %c0_i32, %c0_i32_0, %c0_i32_1 : i32, i32, i32
  }
  func.func @transform_17(%arg0: i32, %arg1: i32) -> (i32, i32, i32) {
    %c0_i32 = arith.constant 0 : i32
    %c0_i32_0 = arith.constant 0 : i32
    %c0_i32_1 = arith.constant 0 : i32
    %c0_i32_2 = arith.constant 0 : i32
    return %c0_i32, %c0_i32_0, %c0_i32_1 : i32, i32, i32
  }
  func.func @transform_18(%arg0: i32, %arg1: i32) -> (i32, i32, i32) {
    %c0_i32 = arith.constant 0 : i32
    %c0_i32_0 = arith.constant 0 : i32
    %c0_i32_1 = arith.constant 0 : i32
    %c0_i32_2 = arith.constant 0 : i32
    return %c0_i32, %c0_i32_0, %c0_i32_1 : i32, i32, i32
  }
  func.func @transform_19(%arg0: i32, %arg1: i32) -> (i32, i32, i32) {
    %c0_i32 = arith.constant 0 : i32
    %c0_i32_0 = arith.constant 0 : i32
    %c0_i32_1 = arith.constant 0 : i32
    %c0_i32_2 = arith.constant 0 : i32
    return %c0_i32, %c0_i32_0, %c0_i32_1 : i32, i32, i32
  }
  func.func @transform_20(%arg0: i32, %arg1: i32) -> (i32, i32, i32) {
    %c0_i32 = arith.constant 0 : i32
    %c0_i32_0 = arith.constant 0 : i32
    %c0_i32_1 = arith.constant 0 : i32
    %c0_i32_2 = arith.constant 0 : i32
    return %c0_i32, %c0_i32_0, %c0_i32_1 : i32, i32, i32
  }
  func.func @transform_21(%arg0: i32, %arg1: i32) -> (i32, i32, i32) {
    %c0_i32 = arith.constant 0 : i32
    %c0_i32_0 = arith.constant 0 : i32
    %c0_i32_1 = arith.constant 0 : i32
    %c0_i32_2 = arith.constant 0 : i32
    return %c0_i32, %c0_i32_0, %c0_i32_1 : i32, i32, i32
  }
  func.func @transform_22(%arg0: i32, %arg1: i32) -> (i32, i32, i32) {
    %c0_i32 = arith.constant 0 : i32
    %c0_i32_0 = arith.constant 0 : i32
    %c0_i32_1 = arith.constant 0 : i32
    %c0_i32_2 = arith.constant 0 : i32
    return %c0_i32, %c0_i32_0, %c0_i32_1 : i32, i32, i32
  }
  func.func @transform_23(%arg0: i32, %arg1: i32) -> (i32, i32, i32) {
    %c0_i32 = arith.constant 0 : i32
    %c0_i32_0 = arith.constant 0 : i32
    %c0_i32_1 = arith.constant 0 : i32
    %c0_i32_2 = arith.constant 0 : i32
    return %c0_i32, %c0_i32_0, %c0_i32_1 : i32, i32, i32
  }
  func.func @transform_24(%arg0: i32, %arg1: i32) -> (i32, i32) {
    %c0_i32 = arith.constant 0 : i32
    %c0_i32_0 = arith.constant 0 : i32
    %c0_i32_1 = arith.constant 0 : i32
    return %c0_i32, %c0_i32_0 : i32, i32
  }
  func.func @transform_25(%arg0: i32, %arg1: i32) -> (i32, i32) {
    %c0_i32 = arith.constant 0 : i32
    %c0_i32_0 = arith.constant 0 : i32
    %c0_i32_1 = arith.constant 0 : i32
    return %c0_i32, %c0_i32_0 : i32, i32
  }
  func.func @transform_26(%arg0: i32, %arg1: i32) -> (i32, i32) {
    %c0_i32 = arith.constant 0 : i32
    %c0_i32_0 = arith.constant 0 : i32
    %c0_i32_1 = arith.constant 0 : i32
    return %c0_i32, %c0_i32_0 : i32, i32
  }
  func.func @transform_27(%arg0: i32, %arg1: i32) -> (i32, i32) {
    %c0_i32 = arith.constant 0 : i32
    %c0_i32_0 = arith.constant 0 : i32
    %c0_i32_1 = arith.constant 0 : i32
    return %c0_i32, %c0_i32_0 : i32, i32
  }
  func.func @transform_28(%arg0: i32, %arg1: i32) -> (i32, i32) {
    %c0_i32 = arith.constant 0 : i32
    %c0_i32_0 = arith.constant 0 : i32
    %c0_i32_1 = arith.constant 0 : i32
    return %c0_i32, %c0_i32_0 : i32, i32
  }
  func.func @transform_29(%arg0: i32, %arg1: i32) -> (i32, i32, i32, i32) {
    %c0_i32 = arith.constant 0 : i32
    %c0_i32_0 = arith.constant 0 : i32
    %c0_i32_1 = arith.constant 0 : i32
    return %arg1, %arg0, %c0_i32, %c0_i32_0 : i32, i32, i32, i32
  }
}

</mosaic_0001>

<bundles_post_ra>
// kernel: model_forward.7
= control target key start
LH: loop header
LB: loop body
LE: loop exit
PB: predicated region body
PF: predicated region fallthrough
CT: control target
= control target key end

     0   :  { %s452_s21 = smov 0   ;;  %s511_s0 = inlined_call_operand.vmem [shape: f32[2,6,32], index: 0, kind: input, shape index: {}]   ;;  %s512_s1 = inlined_call_operand.vmem [shape: f32[32,32], index: 1, kind: input, shape index: {}]   ;;  %s513_s2 = inlined_call_operand.vmem [shape: f32[1,32], index: 2, kind: input, shape index: {}]   ;;  %s514_s3 = inlined_call_operand.vmem [shape: f32[32,32], index: 3, kind: input, shape index: {}]   ;;  %s515_s4 = inlined_call_operand.vmem [shape: f32[1,32], index: 4, kind: input, shape index: {}]   ;;  %s516_s5 = inlined_call_operand.vmem [shape: f32[1,2], index: 5, kind: input, shape index: {}]   ;;  %s517_s6 = inlined_call_operand.vmem [shape: f32[2,6,32], index: 6, kind: output, shape index: {}]  }
   0x1 LB: > { %s382_s22 = sadd.s32 4294967295, %s414_s21   ;;  %p386_p0 = scmp.ge.s32.totalorder %s414_s21, 1  ;;  %s414_s21 = sphi %s452_s21, %s16_s21  }
   0x2   : > { %p211_p1 = scmp.lt.s32.totalorder %s414_s21, 3 }
   0x4   : > { %p212_p2 = pnand %p386_p0, %p211_p1 }
   0x5   : > { %p239_p3 = scmp.lt.s32.totalorder (!%p212_p2), %s382_s22, 1  ;;  %s416_s9 = smov (!%p212_p2), 127  }
   0x6   : > { %215 = sbr.rel (%p212_p2) target bundleno = 284 (0x11c), region = 44 }
   0xb   : > { %v258_v0 = vld [vmem:[%s512_s1 + $0x18] sm:$0xff]  ;;  %v257_v1 = vld [vmem:[%s512_s1 + $0x10] sm:$0xff]  ;;  %v248_v2 = vld [vmem:[%s516_s5] sm:$0x1]  ;;  %s519_s22 = smov (!%p239_p3, %s382_s22), 1  ;;  %vm263_vm0 = vcmask 261120  }
   0xc   : > { %279 = vmatpush.msra.mxu0 %v258_v0  ;;  %v294_v3 = vld [vmem:[%s514_s3 + $0x18] sm:$0xff]  ;;  %v256_v4 = vld [vmem:[%s512_s1 + $0x8] sm:$0xff]  ;;  %393 = vpush %v248_v2  ;;  %251 = vrot.lane.b32.xlu0 %v248_v2, %s416_s9  ;;  %v255_v5 = vld [vmem:[%s512_s1] sm:$0xff]  ;;  %s387_s12 = sshll.u32 %s519_s22, 3  ;;  %vm327_vm3 = vcmask 259072  }
   0xd   : > { %314 = vmatpush.msra.mxu1 %v294_v3  ;;  %s242_s15 = scalar_lea.vmem %s511_s0, %s387_s12  ;;  %v293_v7 = vld [vmem:[%s514_s3 + $0x10] sm:$0xff]  ;;  %v292_v8 = vld [vmem:[%s514_s3 + $0x8] sm:$0xff]  ;;  %v291_v9 = vld [vmem:[%s514_s3] sm:$0xff]  ;;  %s246_s8 = scalar_lea.vmem %s517_s6, %s387_s12 }
   0xe   : > { %280 = vmatpush.msra.mxu0 %v257_v1  ;;  %v247_v6 = vld [vmem:[%s242_s15] sm:$0x3f] }
   0xf   : > { %315 = vmatpush.msra.mxu1 %v293_v7  ;;  %v406_v11 = vld [vmem:[%s513_s2] ss:$0 sm:$0xff] }
  0x10   : > { %281 = vmatpush.msra.mxu0 %v256_v4  ;;  %v407_v17 = vld [vmem:[%s515_s4] ss:$0 sm:$0xff] }
  0x11   : > { %316 = vmatpush.msra.mxu1 %v292_v8 }
  0x12   : > { %282 = vmatpush.msra.mxu0 %v255_v5 }
  0x13   : > { %389 = vmatmul.msk.f32.vlgmr.msra.gmra.mxu0 %vm263_vm0, %v247_v6  ;;  %317 = vmatpush.msra.mxu1 %v291_v9 }
  0x3d   : > { %s394_s26 = spop %393 }
  0x3e   : > { %v288_v13 = vstv %s394_s26 }
  0x7e   : > { %v252_v10 = vpop.permute.xlu0 %251 }
  0x7f   : > { %395 = vpush %v252_v10 }
  0x90   : > { %v284_v12 = vpop.f32.mrf.mxu0 }
  0x91   : > { %v285_v14 = vadd.f32 %v406_v11, %v284_v12 }
  0x93   : > { %v289_v15 = vmul.f32 %v288_v13, %v285_v14  ;;  %vm287_vm1 = vcmp.ge.f32.partialorder %v285_v14, 0.0 }
  0x95   : > { %v290_v16 = vsel %vm287_vm1, %v285_v14, %v289_v15 }
  0x96   : > { %390 = vmatmul.msk.f32.vlgmr.msra.gmra.mxu1 %vm263_vm0, %v290_v16 }
  0xb0   : > { %s396_s29 = spop %395 }
  0xb1   : > { %v324_v20 = vstv %s396_s29 }
 0x113   : > { %v319_v18 = vpop.f32.mrf.mxu1 }
 0x114   : > { %v320_v19 = vadd.f32 %v407_v17, %v319_v18 }
 0x116   : > { %v322_v21 = vadd.f32 %v320_v19, %v247_v6 }
 0x118   : > { %vm323_vm2 = vcmp.ge.f32.partialorder %v322_v21, 0.0  ;;  %v325_v22 = vmul.f32 %v324_v20, %v322_v21 }
 0x11a   : > { %v326_v23 = vsel %vm323_vm2, %v322_v21, %v325_v22 }
 0x11b   : > { %328 = vst.msk [vmem:[%s246_s8] sm:$0x3f] %vm327_vm3, %v326_v23 }
 0x11c PF: > { %s16_s21 = sadd.s32 1, %s414_s21  }
 0x11d   : > { %p13_p4 = scmp.ge.s32.totalorder %s16_s21, 4  }
 0x11f   :  { %15 = sbr.rel (!%p13_p4) target bundleno = 1 (0x1), region = 74 }

// kernel: model_forward.8
= control target key start
LH: loop header
LB: loop body
LE: loop exit
PB: predicated region body
PF: predicated region fallthrough
CT: control target
= control target key end

     0   :  { %12 = vsyncpa [#allocation3], 0  ;;  %s705_s0 = inlined_call_operand.vmem [shape: f32[2,2,32], index: 0, kind: input, shape index: {}]   ;;  %s706_s1 = inlined_call_operand.vmem [shape: f32[32,32], index: 1, kind: input, shape index: {}]   ;;  %s707_s2 = inlined_call_operand.vmem [shape: f32[1,32], index: 2, kind: input, shape index: {}]   ;;  %s708_s3 = inlined_call_operand.vmem [shape: f32[32,10], index: 3, kind: input, shape index: {}]   ;;  %s709_s4 = inlined_call_operand.vmem [shape: f32[1,10], index: 4, kind: input, shape index: {}]   ;;  %s710_s5 = inlined_call_operand.vmem [shape: f32[2,1,32], index: 5, kind: output, shape index: {0}]   ;;  %s711_s6 = inlined_call_operand.hbm [shape: f32[2,1,10], index: 6, kind: output, shape index: {1}]  }
   0x1   :  { %14 = vsyncpa [#allocation3 + $0x1], 0  ;;  %s581_s21 = smov 0   ;;  %s583_s22 = smov 0  }
   0x2   :  { %s585_s23 = smov 0   ;;  %s587_s24 = smov 0  }
   0x3 LB: > { %s602_s25 = sadd.s32 4294967295, %s543_s24   ;;  %s429_s26 = sadd.s32 4294967294, %s543_s24   ;;  %s543_s24 = sphi %s587_s24, %s717_s24   ;;  %s539_s23 = sphi %s585_s23, %s716_s23   ;;  %s535_s22 = sphi %s583_s22, %s715_s22   ;;  %s531_s21 = sphi %s581_s21, %s714_s21  }
   0x4   : > { %s606_s27 = sadd.s32 1, %s543_s24   ;;  %s163_s28 = sadd.s32 1, %s539_s23 }
   0x5   : > { %s160_s29 = ssub.s32 %s543_s24, %s606_s27  ;;  %p173_p0 = scmp.ne.s32.totalorder %s539_s23, %s535_s22 }
   0x6   : > { %p161_p1 = scmp.eq.s32.totalorder %s160_s29, 0  ;;  %p174_p2 = scmp.eq.s32.totalorder %s602_s25, 1 }
   0x7   : > { %p179_p3 = scmp.ne.s32.totalorder %s535_s22, %s531_s21  ;;  %p180_p4 = scmp.eq.s32.totalorder %s429_s26, 1 }
   0x8   : > { %s617_s30 = scalar_select %p161_p1, %s539_s23, %s163_s28  }
   0x9   : > { %p619_p5 = por %p174_p2, %p173_p0  ;;  %p623_p6 = por %p180_p4, %p179_p3 }
   0xa   : > { %p432_p7 = scmp.ge.s32.totalorder %s543_s24, 1  ;;  %p217_p8 = scmp.lt.s32.totalorder %s543_s24, 3 }
   0xc   : > { %p218_p9 = pnand %p432_p7, %p217_p8 }
   0xd   : > { %p248_p10 = scmp.lt.s32.totalorder (!%p218_p9), %s602_s25, 1  ;;  %s351_s9 = scalar_lea.hbm (!%p218_p9), %s711_s6, %s602_s25 }
   0xe   : > { %221 = sbr.rel (%p218_p9) target bundleno = 301 (0x12d), region = 40  ;;  %s355_s14 = sshll.u32 (!%p218_p9), %s351_s9, 4  ;;  %s356_s14 = int_to_ptr.hbm [resolvable:$true] %s355_s14 }
   0xf   : > { %s495_s16 = sshra.s32 (!%p218_p9), %s356_s14, 4  ;;  %s501_s19 = scalar_lea.hbm (!%p218_p9), %s711_s6, 2  ;;  %s496_s16 = int_to_ptr.hbm [resolvable:$true] %s495_s16 }
  0x10   : > { %s497_s17 = scalar_lea.hbm (!%p218_p9), %s496_s16, 1  ;;  %p502_p0 = scmp.lt.s32.totalorder (!%p218_p9), %s496_s16, %s711_s6 }
  0x11   : > { %p498_p11 = scmp.ne.s32.totalorder (!%p218_p9), %s496_s16, %s497_s17  ;;  %p503_p1 = scmp.lt.s32.totalorder (!%p218_p9), %s501_s19, %s497_s17 }
  0x13   : > { %v259_v0 = vld [vmem:[%s706_s1 + $0x18] sm:$0xff]  ;;  %v258_v1 = vld [vmem:[%s706_s1 + $0x10] sm:$0xff]  ;;  %v257_v2 = vld [vmem:[%s706_s1 + $0x8] sm:$0xff]  ;;  %s640_s15 = scalar_select %p248_p10, %s602_s25, 1  ;;  %vm264_vm0 = vcmask 261120   ;;  %v545_v9 = vmov 2.0  }
  0x14   : > { %280 = vmatpush.msra.mxu0 %v259_v0  ;;  %v256_v3 = vld [vmem:[%s706_s1] sm:$0xff]  ;;  %v307_v5 = vld [vmem:[%s708_s3 + $0x18] sm:$0xff]  ;;  %v306_v6 = vld [vmem:[%s708_s3 + $0x10] sm:$0xff]  ;;  %479 = vrcp.f32 %v545_v9  ;;  %vm288_vm1 = vcmask 254976   ;;  %vm332_vm3 = vcmask 253952   ;;  %vm334_vm4 = vcmask 73728   ;;  %p499_p12 = pnand %p498_p11, %p619_p5  ;;  %p504_p2 = por %p503_p1, %p502_p0 }
  0x15   : > { %s433_s18 = sshll.u32 %s640_s15, 1  ;;  %324 = vmatpush.msra.mxu1 %v307_v5  ;;  %v305_v7 = vld [vmem:[%s708_s3 + $0x8] sm:$0xff]  ;;  %v304_v8 = vld [vmem:[%s708_s3] sm:$0xff]  ;;  %s254_s20 = scalar_lea.vmem %s710_s5, %s640_s15 }
  0x16   : > { %281 = vmatpush.msra.mxu0 %v258_v1  ;;  %s251_s26 = scalar_lea.vmem %s705_s0, %s433_s18  ;;  %v478_v11 = vld [vmem:[%s707_s2] ss:$0 sm:$0xff]  ;;  %p500_p13 = pneg %p499_p12 }
  0x17   : > { %v255_v4 = vld [vmem:[%s251_s26] sm:$0x3]  ;;  %325 = vmatpush.msra.mxu1 %v306_v6  ;;  %s246_s26 = sand.u32 1, %s535_s22  }
  0x18   : > { %282 = vmatpush.msra.mxu0 %v257_v2  ;;  %v308_v27 = vld [vmem:[%s709_s4] sm:$0x1]  ;;  %s247_s12 = scalar_lea.vmem [#allocation2], %s246_s26  ;;  %s340_s15 = scalar_lea.sflag [#allocation3], %s246_s26 }
  0x19   : > { %326 = vmatpush.msra.mxu1 %v305_v7  ;;  %s353_s13 = sshll.u32 %s247_s12, 4  ;;  %p505_p3 = pnand %p504_p2, %p500_p13  ;;  %s354_s13 = int_to_ptr.vmem [resolvable:$true] %s353_s13 }
  0x1a   : > { %283 = vmatpush.msra.mxu0 %v256_v3  ;;  %v480_v10 = vpop.eup %479 }
  0x1b   : > { %434 = vmatmul.msk.f32.vlgmr.msra.gmra.mxu0 %vm264_vm0, %v255_v4  ;;  %327 = vmatpush.msra.mxu1 %v304_v8  ;;  %v297_v12 = vmul.f32 2.0, %v480_v10  ;;  %vm301_vm2 = vweird.f32 %v480_v10 }
  0x1d   : > { %v298_v15 = vsub.f32 1.0, %v297_v12 }
  0x1f   : > { %v299_v18 = vmul.f32 %v480_v10, %v298_v15 }
  0x21   : > { %v300_v21 = vadd.f32 %v480_v10, %v299_v18 }
  0x23   : > { %v302_v24 = vsel %vm301_vm2, %v480_v10, %v300_v21 }
  0x98   : > { %v285_v13 = vpop.f32.mrf.mxu0 }
  0x99   : > { %v286_v14 = vadd.f32 %v478_v11, %v285_v13 }
  0x9b   : > { %v289_v16 = vsel %vm288_vm1, %v286_v14, 0.0 }
  0x9c   : > { %v290_v17 = vrot.slane %v289_v16, 4 }
  0x9e   : > { %v291_v19 = vadd.f32 %v290_v17, %v289_v16 }
  0xa0   : > { %v292_v20 = vrot.slane %v291_v19, 2 }
  0xa2   : > { %v293_v22 = vadd.f32 %v292_v20, %v291_v19 }
  0xa4   : > { %v294_v23 = vrot.slane %v293_v22, 1 }
  0xa6   : > { %v295_v25 = vadd.f32 %v294_v23, %v293_v22 }
  0xa8   : > { %v303_v26 = vmul.f32 %v302_v24, %v295_v25 }
  0xaa   : > { %435 = vmatmul.msk.f32.vlgmr.msra.gmra.mxu1 %vm264_vm0, %v303_v26  ;;  %333 = vst.msk [vmem:[%s254_s20] sm:$0x1] %vm332_vm3, %v303_v26 }
 0x127   : > { %v329_v28 = vpop.f32.mrf.mxu1 }
 0x128   : > { %v330_v29 = vadd.f32 %v329_v28, %v308_v27 }
 0x12a   : > { %335 = vst.msk [vmem:[%s247_s12] sm:$0x1] %vm334_vm4, %v330_v29 }
 0x12b   : > { %508 = shalt.err (!%p505_p3)
}
 0x12c   : > { %438 = dma.vmem_to_hbm [thread:$0]  (%p619_p5), %s354_s13, 16, %s356_s14, %s340_s15  }
 0x12d PF: > { %p444_p4 = scmp.ge.s32.totalorder %s543_s24, 2  ;;  %s373_s26 = sand.u32 1, %s531_s21  }
 0x12e   : > { %s374_s29 = scalar_lea.sflag [#allocation3], %s373_s26 }
 0x12f   : > { %p441_p7 = pnand %p444_p4, %p623_p6 }
 0x131   : > { %p442_p8 = pneg %p441_p7 }
 0x133   : > { %526 = dma.done.wait (%p442_p8), %s374_s29, 16  }
 0x134   : > { %528 = vsyncadd (%p442_p8), %s374_s29, 4294967280  ;;  %p17_p9 = scmp.ge.s32.totalorder %s606_s27, 4   ;;  %s714_s21 = smov %s535_s22 }
 0x135   : > { %s715_s22 = smov %s539_s23  ;;  %s716_s23 = smov %s617_s30 }
 0x136   : > { %s717_s24 = smov %s606_s27  ;;  %19 = sbr.rel (!%p17_p9) target bundleno = 3 (0x3), region = 87 }
 0x13b   :  { %379 = vsyncpa [#allocation3], 1 }
 0x13c   :  { %381 = vsyncpa [#allocation3 + $0x1], 1 }

// kernel: model_forward.5
= control target key start
LH: loop header
LB: loop body
LE: loop exit
PB: predicated region body
PF: predicated region fallthrough
CT: control target
= control target key end

     0   :  { %s606_s24 = smov 0   ;;  %s671_s0 = inlined_call_operand.vmem [shape: f32[2,19,16], index: 0, kind: input, shape index: {}]   ;;  %s672_s1 = inlined_call_operand.vmem [shape: f32[16,16], index: 1, kind: input, shape index: {}]   ;;  %s673_s2 = inlined_call_operand.vmem [shape: f32[1,16], index: 2, kind: input, shape index: {}]   ;;  %s674_s3 = inlined_call_operand.vmem [shape: f32[1,16], index: 3, kind: input, shape index: {}]   ;;  %s675_s4 = inlined_call_operand.vmem [shape: f32[1,16], index: 4, kind: input, shape index: {}]   ;;  %s676_s5 = inlined_call_operand.vmem [shape: f32[16,32], index: 5, kind: input, shape index: {}]   ;;  %s677_s6 = inlined_call_operand.vmem [shape: f32[1,32], index: 6, kind: input, shape index: {}]   ;;  %s678_s7 = inlined_call_operand.vmem [shape: f32[2,19,32], index: 7, kind: output, shape index: {}]  }
   0x1 LB: > { %s516_s25 = sadd.s32 4294967295, %s563_s24   ;;  %p520_p0 = scmp.ge.s32.totalorder %s563_s24, 1  ;;  %s563_s24 = sphi %s606_s24, %s17_s24  }
   0x2   : > { %p237_p1 = scmp.lt.s32.totalorder %s563_s24, 3 }
   0x4   : > { %p238_p2 = pnand %p520_p0, %p237_p1 }
   0x5   : > { %p269_p3 = scmp.lt.s32.totalorder (!%p238_p2), %s516_s25, 1 }
   0x6   : > { %241 = sbr.rel (%p238_p2) target bundleno = 565 (0x235), region = 48 }
   0xb   : > { %v283_v0 = vld [vmem:[%s672_s1 + $0x8] sm:$0xff]  ;;  %v282_v1 = vld [vmem:[%s672_s1] sm:$0xff]  ;;  %s680_s25 = smov (!%p269_p3, %s516_s25), 1  ;;  %vm288_vm0 = vcmask 130048   ;;  %vm333_vm1 = vcmask 124928   ;;  %v565_v18 = vmov 16.0  }
   0xc   : > { %312 = vmatpush.msra.mxu0 %v283_v0  ;;  %531 = vmatpush.msra.mxu2 %v283_v0  ;;  %s535_s30 = smul.u32 24, %s680_s25  ;;  %v545_v5 = vld [vmem:[%s673_s2] ss:$0 sm:$0xff]  ;;  %549 = vrcp.f32 %v565_v18  ;;  %v416_v40 = vld [vmem:[%s676_s5 + $0x8] sm:$0xff]  ;;  %vm456_vm12 = vcmask 261120   ;;  %vm459_vm13 = vcmask 256000  }
   0xd   : > { %533 = vmatpush.msra.mxu3 %v416_v40  ;;  %444 = vmatpush.msra.mxu1 %v416_v40  ;;  %v415_v41 = vld [vmem:[%s676_s5] sm:$0xff] }
   0xe   : > { %313 = vmatpush.msra.mxu0 %v282_v1  ;;  %532 = vmatpush.msra.mxu2 %v282_v1  ;;  %s273_s10 = scalar_lea.vmem %s671_s0, %s535_s30  ;;  %v546_v59 = vld [vmem:[%s674_s3] ss:$0 sm:$0xff]  ;;  %s278_s27 = scalar_lea.vmem %s678_s7, %s535_s30 }
   0xf   : > { %v279_v2 = vld [vmem:[%s273_s10] sm:$0xff]  ;;  %v280_v3 = vld [vmem:[%s273_s10 + $0x8] sm:$0xff]  ;;  %v281_v4 = vld [vmem:[%s273_s10 + $0x10] sm:$0x7]  ;;  %534 = vmatpush.msra.mxu3 %v415_v41  ;;  %445 = vmatpush.msra.mxu1 %v415_v41 }
  0x10   : > { %523 = vmatmul.msk.f32.vlgmr.msra.gmra.mxu0 %vm288_vm0, %v279_v2  ;;  %524 = vmatmul.msk.f32.vlgmr.msra.gmra.mxu2 %vm288_vm0, %v280_v3  ;;  %v547_v63 = vld [vmem:[%s675_s4] ss:$0 sm:$0xff] }
  0x12   : > { %v550_v19 = vpop.eup %549 }
  0x13   : > { %v338_v20 = vmul.f32 16.0, %v550_v19  ;;  %vm342_vm2 = vweird.f32 %v550_v19 }
  0x15   : > { %v339_v21 = vsub.f32 1.0, %v338_v20 }
  0x17   : > { %v340_v22 = vmul.f32 %v550_v19, %v339_v21 }
  0x18   : > { %525 = vmatmul.msk.f32.gmra.mxu2 %vm288_vm0, %v281_v4 }
  0x19   : > { %v341_v23 = vadd.f32 %v550_v19, %v340_v22 }
  0x1b   : > { %v343_v24 = vsel %vm342_vm2, %v550_v19, %v341_v23  ;;  %v548_v19 = vld [vmem:[%s677_s6] ss:$0 sm:$0xff] }
  0x8d   : > { %v315_v6 = vpop.f32.mrf.mxu0 }
  0x8e   : > { %v316_v7 = vadd.f32 %v545_v5, %v315_v6 }
  0x90   : > { %v324_v8 = vmax.f32 %v316_v7, 0.0 }
  0x92   : > { %v327_v9 = vsel %vm288_vm0, %v324_v8, 0.0 }
  0x93   : > { %v318_v10 = vpop.f32.mrf.mxu2  ;;  %328 = vadd.xlane.f32.xlu1 %v327_v9 }
  0x94   : > { %v319_v11 = vadd.f32 %v545_v5, %v318_v10 }
  0x96   : > { %v325_v12 = vmax.f32 %v319_v11, 0.0 }
  0x98   : > { %v330_v13 = vsel %vm288_vm0, %v325_v12, 0.0 }
  0x99   : > { %331 = vadd.xlane.f32.xlu0 %v330_v13 }
  0x9b   : > { %v321_v14 = vpop.f32.mrf.mxu2 }
  0x9c   : > { %v322_v15 = vadd.f32 %v545_v5, %v321_v14 }
  0x9e   : > { %v326_v16 = vmax.f32 %v322_v15, 0.0 }
  0xa0   : > { %v334_v17 = vsel %vm333_vm1, %v326_v16, 0.0 }
  0xa1   : > { %335 = vadd.xlane.f32.xlu0 %v334_v17 }
 0x106   : > { %v329_v30 = vpop.xlane.xlu1 %328 }
 0x107   : > { %v344_v33 = vmul.f32 %v343_v24, %v329_v30 }
 0x109   : > { %v638_v36 = vsub.f32 %v324_v8, %v344_v33 }
 0x10b   : > { %v350_v38 = vmul.f32 %v638_v36, %v638_v36 }
 0x10c   : > { %v332_v25 = vpop.xlane.xlu0 %331 }
 0x10d   : > { %v345_v26 = vmul.f32 %v343_v24, %v332_v25  ;;  %v353_v39 = vsel %vm288_vm0, %v350_v38, 0.0 }
 0x10f   : > { %v348_v27 = vsub.f32 %v325_v12, %v345_v26 }
 0x111   : > { %v351_v28 = vmul.f32 %v348_v27, %v348_v27 }
 0x113   : > { %v356_v29 = vsel %vm288_vm0, %v351_v28, 0.0 }
 0x114   : > { %v336_v31 = vpop.xlane.xlu0 %335  ;;  %357 = vadd.xlane.f32.xlu1 %v356_v29 }
 0x115   : > { %v346_v32 = vmul.f32 %v343_v24, %v336_v31 }
 0x117   : > { %v349_v34 = vsub.f32 %v326_v16, %v346_v32 }
 0x119   : > { %v352_v35 = vmul.f32 %v349_v34, %v349_v34 }
 0x11b   : > { %v359_v37 = vsel %vm333_vm1, %v352_v35, 0.0 }
 0x11c   : > { %360 = vadd.xlane.f32.xlu2 %v359_v37 }
 0x124   : > { %354 = vadd.xlane.f32.xlu2 %v353_v39 }
 0x187   : > { %v358_v42 = vpop.xlane.xlu1 %357 }
 0x188   : > { %v363_v43 = vmul.f32 %v358_v42, %v343_v24 }
 0x18a   : > { %v366_v44 = vadd.f32 1e-05, %v363_v43 }
 0x18c   : > { %551 = vrsqrt.f32 %v366_v44  ;;  %vm384_vm4 = vweird.f32 %v366_v44 }
 0x18f   : > { %v361_v45 = vpop.xlane.xlu2 %360 }
 0x190   : > { %v364_v46 = vmul.f32 %v361_v45, %v343_v24 }
 0x192   : > { %v552_v47 = vpop.eup %551  ;;  %v367_v48 = vadd.f32 1e-05, %v364_v46 }
 0x193   : > { %v379_v49 = vmul.f32 %v552_v47, %v366_v44  ;;  %vm385_vm3 = vweird.f32 %v552_v47 }
 0x194   : > { %553 = vrsqrt.f32 %v367_v48  ;;  %vm386_vm5 = vmor %vm384_vm4, %vm385_vm3  ;;  %vm394_vm7 = vweird.f32 %v367_v48 }
 0x195   : > { %v380_v50 = vmul.f32 %v552_v47, %v379_v49 }
 0x197   : > { %v381_v51 = vmul.f32 0.5, %v380_v50  ;;  %v355_v52 = vpop.xlane.xlu2 %354 }
 0x198   : > { %v362_v53 = vmul.f32 %v355_v52, %v343_v24 }
 0x199   : > { %v382_v54 = vsub.f32 1.5, %v381_v51 }
 0x19a   : > { %v554_v55 = vpop.eup %553  ;;  %v365_v56 = vadd.f32 1e-05, %v362_v53 }
 0x19b   : > { %v383_v57 = vmul.f32 %v552_v47, %v382_v54  ;;  %v389_v58 = vmul.f32 %v554_v55, %v367_v48  ;;  %vm395_vm6 = vweird.f32 %v554_v55 }
 0x19c   : > { %555 = vrsqrt.f32 %v365_v56  ;;  %vm396_vm8 = vmor %vm394_vm7, %vm395_vm6  ;;  %vm374_vm10 = vweird.f32 %v365_v56 }
 0x19d   : > { %v387_v60 = vsel %vm386_vm5, %v552_v47, %v383_v57  ;;  %v390_v61 = vmul.f32 %v554_v55, %v389_v58 }
 0x19e   : > { %v399_v62 = vmul.f32 %v387_v60, %v348_v27 }
 0x19f   : > { %v391_v0 = vmul.f32 0.5, %v390_v61 }
 0x1a0   : > { %v406_v1 = vmul.f32 %v546_v59, %v399_v62 }
 0x1a1   : > { %v392_v2 = vsub.f32 1.5, %v391_v0 }
 0x1a2   : > { %v556_v3 = vpop.eup %555  ;;  %v413_v4 = vadd.f32 %v547_v63, %v406_v1 }
 0x1a3   : > { %v393_v5 = vmul.f32 %v554_v55, %v392_v2  ;;  %v369_v6 = vmul.f32 %v556_v3, %v365_v56  ;;  %vm375_vm9 = vweird.f32 %v556_v3 }
 0x1a4   : > { %527 = vmatmul.msk.f32.vlgmr.msra.gmra.mxu3 %vm288_vm0, %v413_v4  ;;  %vm376_vm11 = vmor %vm374_vm10, %vm375_vm9 }
 0x1a5   : > { %v397_v7 = vsel %vm396_vm8, %v554_v55, %v393_v5  ;;  %v370_v8 = vmul.f32 %v556_v3, %v369_v6 }
 0x1a6   : > { %v400_v9 = vmul.f32 %v397_v7, %v349_v34 }
 0x1a7   : > { %v371_v10 = vmul.f32 0.5, %v370_v8 }
 0x1a8   : > { %v407_v11 = vmul.f32 %v546_v59, %v400_v9 }
 0x1a9   : > { %v372_v12 = vsub.f32 1.5, %v371_v10 }
 0x1aa   : > { %v414_v13 = vadd.f32 %v547_v63, %v407_v11 }
 0x1ab   : > { %v373_v14 = vmul.f32 %v556_v3, %v372_v12 }
 0x1ac   : > { %528 = vmatmul.msk.f32.gmra.mxu3 %vm288_vm0, %v414_v13 }
 0x1ad   : > { %v377_v15 = vsel %vm376_vm11, %v556_v3, %v373_v14 }
 0x1ae   : > { %v398_v16 = vmul.f32 %v377_v15, %v638_v36 }
 0x1b0   : > { %v405_v17 = vmul.f32 %v546_v59, %v398_v16 }
 0x1b2   : > { %v412_v18 = vadd.f32 %v547_v63, %v405_v17 }
 0x1b4   : > { %526 = vmatmul.msk.f32.vlgmr.msra.gmra.mxu1 %vm288_vm0, %v412_v18 }
 0x227   : > { %v450_v20 = vpop.f32.mrf.mxu3 }
 0x228   : > { %v451_v21 = vadd.f32 %v548_v19, %v450_v20 }
 0x22a   : > { %458 = vst.msk [vmem:[%s278_s27 + $0x8] sm:$0xff] %vm456_vm12, %v451_v21 }
 0x22f   : > { %v453_v22 = vpop.f32.mrf.mxu3 }
 0x230   : > { %v454_v23 = vadd.f32 %v548_v19, %v453_v22 }
 0x231   : > { %v447_v24 = vpop.f32.mrf.mxu1 }
 0x232   : > { %460 = vst.msk [vmem:[%s278_s27 + $0x10] sm:$0x7] %vm459_vm13, %v454_v23  ;;  %v448_v25 = vadd.f32 %v548_v19, %v447_v24 }
 0x234   : > { %457 = vst.msk [vmem:[%s278_s27] sm:$0xff] %vm456_vm12, %v448_v25 }
 0x235 PF: > { %s17_s24 = sadd.s32 1, %s563_s24  }
 0x236   : > { %p14_p4 = scmp.ge.s32.totalorder %s17_s24, 4  }
 0x238   :  { %16 = sbr.rel (!%p14_p4) target bundleno = 1 (0x1), region = 78 }

// kernel: model_forward.6
= control target key start
LH: loop header
LB: loop body
LE: loop exit
PB: predicated region body
PF: predicated region fallthrough
CT: control target
= control target key end

     0   :  { %s514_s21 = smov 0   ;;  %s579_s0 = inlined_call_operand.vmem [shape: f32[2,19,32], index: 0, kind: input, shape index: {}]   ;;  %s580_s1 = inlined_call_operand.vmem [shape: f32[32,32], index: 1, kind: input, shape index: {}]   ;;  %s581_s2 = inlined_call_operand.vmem [shape: f32[1,32], index: 2, kind: input, shape index: {}]   ;;  %s582_s3 = inlined_call_operand.vmem [shape: f32[32,32], index: 3, kind: input, shape index: {}]   ;;  %s583_s4 = inlined_call_operand.vmem [shape: f32[1,32], index: 4, kind: input, shape index: {}]   ;;  %s584_s5 = inlined_call_operand.vmem [shape: f32[1,2], index: 5, kind: input, shape index: {}]   ;;  %s585_s6 = inlined_call_operand.vmem [shape: f32[2,19,32], index: 6, kind: output, shape index: {}]  }
   0x1 LB: > { %s431_s22 = sadd.s32 4294967295, %s476_s21   ;;  %p435_p0 = scmp.ge.s32.totalorder %s476_s21, 1  ;;  %s476_s21 = sphi %s514_s21, %s16_s21  }
   0x2   : > { %p212_p1 = scmp.lt.s32.totalorder %s476_s21, 3 }
   0x4   : > { %p213_p2 = pnand %p435_p0, %p212_p1 }
   0x5   : > { %p242_p3 = scmp.lt.s32.totalorder (!%p213_p2), %s431_s22, 1  ;;  %s478_s9 = smov (!%p213_p2), 127  }
   0x6   : > { %216 = sbr.rel (%p213_p2) target bundleno = 304 (0x130), region = 44 }
   0xb   : > { %v265_v0 = vld [vmem:[%s580_s1 + $0x18] sm:$0xff]  ;;  %v264_v1 = vld [vmem:[%s580_s1 + $0x10] sm:$0xff]  ;;  %v255_v2 = vld [vmem:[%s584_s5] sm:$0x1]  ;;  %s587_s22 = smov (!%p242_p3, %s431_s22), 1  ;;  %vm270_vm0 = vcmask 261120  }
   0xc   : > { %446 = vmatpush.msra.mxu2 %v265_v0  ;;  %292 = vmatpush.msra.mxu0 %v265_v0  ;;  %v319_v3 = vld [vmem:[%s582_s3 + $0x18] sm:$0xff]  ;;  %v263_v4 = vld [vmem:[%s580_s1 + $0x8] sm:$0xff]  ;;  %455 = vpush %v255_v2  ;;  %v262_v5 = vld [vmem:[%s580_s1] sm:$0xff]  ;;  %s454_s12 = smul.u32 24, %s587_s22  ;;  %vm374_vm7 = vcmask 256000  }
   0xd   : > { %258 = vrot.lane.b32.xlu0 %v255_v2, %s478_s9  ;;  %345 = vmatpush.msra.mxu1 %v319_v3  ;;  %v318_v9 = vld [vmem:[%s582_s3 + $0x10] sm:$0xff]  ;;  %v317_v10 = vld [vmem:[%s582_s3 + $0x8] sm:$0xff]  ;;  %v316_v11 = vld [vmem:[%s582_s3] sm:$0xff] }
   0xe   : > { %447 = vmatpush.msra.mxu2 %v264_v1  ;;  %293 = vmatpush.msra.mxu0 %v264_v1  ;;  %s246_s15 = scalar_lea.vmem %s579_s0, %s454_s12  ;;  %v468_v13 = vld [vmem:[%s581_s2] ss:$0 sm:$0xff]  ;;  %s251_s8 = scalar_lea.vmem %s585_s6, %s454_s12 }
   0xf   : > { %450 = vmatpush.msra.mxu3 %v319_v3  ;;  %v253_v6 = vld [vmem:[%s246_s15 + $0x8] sm:$0xff]  ;;  %v252_v7 = vld [vmem:[%s246_s15] sm:$0xff]  ;;  %v254_v8 = vld [vmem:[%s246_s15 + $0x10] sm:$0x7]  ;;  %346 = vmatpush.msra.mxu1 %v318_v9 }
  0x10   : > { %448 = vmatpush.msra.mxu2 %v263_v4  ;;  %294 = vmatpush.msra.mxu0 %v263_v4  ;;  %v469_v27 = vld [vmem:[%s583_s4] ss:$0 sm:$0xff] }
  0x11   : > { %451 = vmatpush.msra.mxu3 %v318_v9  ;;  %347 = vmatpush.msra.mxu1 %v317_v10 }
  0x12   : > { %449 = vmatpush.msra.mxu2 %v262_v5  ;;  %295 = vmatpush.msra.mxu0 %v262_v5 }
  0x13   : > { %439 = vmatmul.msk.f32.vlgmr.msra.gmra.mxu2 %vm270_vm0, %v253_v6  ;;  %438 = vmatmul.msk.f32.vlgmr.msra.gmra.mxu0 %vm270_vm0, %v252_v7 }
  0x14   : > { %452 = vmatpush.msra.mxu3 %v317_v10  ;;  %348 = vmatpush.msra.mxu1 %v316_v11 }
  0x16   : > { %453 = vmatpush.msra.mxu3 %v316_v11 }
  0x1b   : > { %440 = vmatmul.msk.f32.gmra.mxu2 %vm270_vm0, %v254_v8 }
  0x3d   : > { %s456_s26 = spop %455 }
  0x3e   : > { %v309_v15 = vstv %s456_s26 }
  0x7f   : > { %v259_v12 = vpop.permute.xlu0 %258 }
  0x80   : > { %457 = vpush %v259_v12 }
  0x90   : > { %v297_v14 = vpop.f32.mrf.mxu0 }
  0x91   : > { %v298_v16 = vadd.f32 %v468_v13, %v297_v14 }
  0x93   : > { %v310_v17 = vmul.f32 %v309_v15, %v298_v16  ;;  %vm306_vm1 = vcmp.ge.f32.partialorder %v298_v16, 0.0 }
  0x95   : > { %v313_v18 = vsel %vm306_vm1, %v298_v16, %v310_v17 }
  0x96   : > { %v300_v19 = vpop.f32.mrf.mxu2  ;;  %441 = vmatmul.msk.f32.vlgmr.msra.gmra.mxu1 %vm270_vm0, %v313_v18 }
  0x97   : > { %v301_v20 = vadd.f32 %v468_v13, %v300_v19 }
  0x99   : > { %v311_v21 = vmul.f32 %v309_v15, %v301_v20  ;;  %vm307_vm2 = vcmp.ge.f32.partialorder %v301_v20, 0.0 }
  0x9b   : > { %v314_v22 = vsel %vm307_vm2, %v301_v20, %v311_v21 }
  0x9c   : > { %442 = vmatmul.msk.f32.vlgmr.msra.gmra.mxu3 %vm270_vm0, %v314_v22 }
  0x9e   : > { %v303_v23 = vpop.f32.mrf.mxu2 }
  0x9f   : > { %v304_v24 = vadd.f32 %v468_v13, %v303_v23 }
  0xa1   : > { %v312_v25 = vmul.f32 %v309_v15, %v304_v24  ;;  %vm308_vm3 = vcmp.ge.f32.partialorder %v304_v24, 0.0 }
  0xa3   : > { %v315_v26 = vsel %vm308_vm3, %v304_v24, %v312_v25 }
  0xa4   : > { %443 = vmatmul.msk.f32.gmra.mxu3 %vm270_vm0, %v315_v26 }
  0xb1   : > { %s458_s29 = spop %457 }
  0xb2   : > { %v365_v30 = vstv %s458_s29 }
 0x113   : > { %v350_v28 = vpop.f32.mrf.mxu1 }
 0x114   : > { %v351_v29 = vadd.f32 %v469_v27, %v350_v28 }
 0x116   : > { %v359_v31 = vadd.f32 %v351_v29, %v252_v7 }
 0x118   : > { %vm362_vm4 = vcmp.ge.f32.partialorder %v359_v31, 0.0  ;;  %v366_v32 = vmul.f32 %v365_v30, %v359_v31 }
 0x11a   : > { %v369_v33 = vsel %vm362_vm4, %v359_v31, %v366_v32 }
 0x11b   : > { %372 = vst.msk [vmem:[%s251_s8] sm:$0xff] %vm270_vm0, %v369_v33 }
 0x11f   : > { %v353_v34 = vpop.f32.mrf.mxu3 }
 0x120   : > { %v354_v35 = vadd.f32 %v469_v27, %v353_v34 }
 0x122   : > { %v360_v36 = vadd.f32 %v354_v35, %v253_v6 }
 0x124   : > { %vm363_vm5 = vcmp.ge.f32.partialorder %v360_v36, 0.0  ;;  %v367_v37 = vmul.f32 %v365_v30, %v360_v36 }
 0x126   : > { %v370_v38 = vsel %vm363_vm5, %v360_v36, %v367_v37 }
 0x127   : > { %373 = vst.msk [vmem:[%s251_s8 + $0x8] sm:$0xff] %vm270_vm0, %v370_v38  ;;  %v356_v39 = vpop.f32.mrf.mxu3 }
 0x128   : > { %v357_v40 = vadd.f32 %v469_v27, %v356_v39 }
 0x12a   : > { %v361_v41 = vadd.f32 %v357_v40, %v254_v8 }
 0x12c   : > { %vm364_vm6 = vcmp.ge.f32.partialorder %v361_v41, 0.0  ;;  %v368_v42 = vmul.f32 %v365_v30, %v361_v41 }
 0x12e   : > { %v371_v43 = vsel %vm364_vm6, %v361_v41, %v368_v42 }
 0x12f   : > { %375 = vst.msk [vmem:[%s251_s8 + $0x10] sm:$0x7] %vm374_vm7, %v371_v43 }
 0x130 PF: > { %s16_s21 = sadd.s32 1, %s476_s21  }
 0x131   : > { %p13_p4 = scmp.ge.s32.totalorder %s16_s21, 4  }
 0x133   :  { %15 = sbr.rel (!%p13_p4) target bundleno = 1 (0x1), region = 74 }

// kernel: model_forward.9
= control target key start
LH: loop header
LB: loop body
LE: loop exit
PB: predicated region body
PF: predicated region fallthrough
CT: control target
= control target key end

     0   :  { %s4298_s6 = smov 1   ;;  %s4299_s10 = smov 2   ;;  %s5093_s0 = inlined_call_operand.smem [shape: u32[30], index: -1, kind: input, shape index: {}] }
   0x1   :  { %s4351_s5 = sld [smem:[%s5093_s0]]   ;;  %s4300_s14 = smov 3  }
   0x2   :  { %s4356_s9 = sld [smem:[%s5093_s0 + %s4298_s6]]   ;;  %s4301_s18 = smov 4  }
   0x3   :  { %s4361_s13 = sld [smem:[%s5093_s0 + %s4299_s10]]   ;;  %s4302_s22 = smov 5  }
   0x4   :  { %s4366_s17 = sld [smem:[%s5093_s0 + %s4300_s14]]   ;;  %s4303_s26 = smov 6  }
   0x5   :  { %s4371_s21 = sld [smem:[%s5093_s0 + %s4301_s18]]   ;;  %s4304_s30 = smov 7  }
   0x6   :  { %s4376_s25 = sld [smem:[%s5093_s0 + %s4302_s22]]   ;;  %s4305_s4 = smov 8  }
   0x7   :  { %5111 = sst [smem:[#allocation3_spill]] %s4351_s5  ;;  %s4306_s10 = smov 9  }
   0x8   :  { %s4381_s29 = sld [smem:[%s5093_s0 + %s4303_s26]]   ;;  %s4307_s15 = smov 10  }
   0x9   :  { %s4386_s3 = sld [smem:[%s5093_s0 + %s4304_s30]]   ;;  %s4308_s20 = smov 11  }
   0xa   :  { %s4391_s8 = sld [smem:[%s5093_s0 + %s4305_s4]]   ;;  %s4309_s26 = smov 12  }
   0xb   :  { %s4396_s14 = sld [smem:[%s5093_s0 + %s4306_s10]]   ;;  %s4310_s1 = smov 13  }
   0xc   :  { %s4401_s19 = sld [smem:[%s5093_s0 + %s4307_s15]]   ;;  %s4311_s7 = smov 14  }
   0xd   :  { %s4406_s24 = sld [smem:[%s5093_s0 + %s4308_s20]]   ;;  %s4312_s15 = smov 15  }
   0xe   :  { %s4411_s30 = sld [smem:[%s5093_s0 + %s4309_s26]]   ;;  %s4313_s22 = smov 16  }
   0xf   :  { %5112 = sst [smem:[#allocation4_spill]] %s4386_s3  ;;  %s4314_s28 = smov 17  }
  0x10   :  { %s4416_s6 = sld [smem:[%s5093_s0 + %s4310_s1]]   ;;  %s4500_s10 = smov 0  }
  0x11   :  { %s4421_s12 = sld [smem:[%s5093_s0 + %s4311_s7]]   ;;  %s4315_s7 = smov 18  }
  0x12   :  { %s4426_s20 = sld [smem:[%s5093_s0 + %s4312_s15]]   ;;  %s4316_s15 = smov 19  }
  0x13   :  { %s4431_s27 = sld [smem:[%s5093_s0 + %s4313_s22]]   ;;  %s4317_s22 = smov 20  }
  0x14   :  { %s4436_s4 = sld [smem:[%s5093_s0 + %s4314_s28]]   ;;  %s4318_s28 = smov 21  }
  0x15   :  { %s4502_s11 = smov 0   ;;  %s4506_s16 = smov 0  }
  0x17   :  { %5113 = sst [smem:[#allocation5_spill]] %s4421_s12 }
  0x18   :  { %5114 = sst [smem:[#allocation6_spill]] %s4426_s20 }
  0x19   :  { %5115 = sst [smem:[#allocation7_spill]] %s4431_s27 }
  0x1a   :  { %5116 = sst [smem:[#allocation8_spill]] %s4436_s4 }
  0x1b   :  { %s4441_s12 = sld [smem:[%s5093_s0 + %s4315_s7]]   ;;  %s4319_s7 = smov 22  }
  0x1c   :  { %s4446_s20 = sld [smem:[%s5093_s0 + %s4316_s15]]   ;;  %s4320_s15 = smov 23  }
  0x1d   :  { %s4451_s27 = sld [smem:[%s5093_s0 + %s4317_s22]]   ;;  %s4321_s22 = smov 24  }
  0x1e   :  { %s4456_s4 = sld [smem:[%s5093_s0 + %s4318_s28]]   ;;  %s4322_s28 = smov 25  }
  0x21   :  { %5117 = sst [smem:[#allocation9_spill]] %s4441_s12 }
  0x22   :  { %5118 = sst [smem:[#allocation10_spill]] %s4446_s20 }
  0x23   :  { %5119 = sst [smem:[#allocation11_spill]] %s4451_s27 }
  0x24   :  { %5120 = sst [smem:[#allocation12_spill]] %s4456_s4 }
  0x25   :  { %s4461_s12 = sld [smem:[%s5093_s0 + %s4319_s7]]   ;;  %s4323_s7 = smov 26  }
  0x26   :  { %s4466_s20 = sld [smem:[%s5093_s0 + %s4320_s15]]   ;;  %s4324_s15 = smov 27  }
  0x27   :  { %s4471_s27 = sld [smem:[%s5093_s0 + %s4321_s22]]   ;;  %s4325_s22 = smov 28  }
  0x28   :  { %s4476_s4 = sld [smem:[%s5093_s0 + %s4322_s28]]   ;;  %s4326_s28 = smov 29  }
  0x2b   :  { %5121 = sst [smem:[#allocation13_spill]] %s4461_s12 }
  0x2c   :  { %5122 = sst [smem:[#allocation14_spill]] %s4466_s20 }
  0x2d   :  { %5123 = sst [smem:[#allocation15_spill]] %s4471_s27 }
  0x2e   :  { %5124 = sst [smem:[#allocation16_spill]] %s4476_s4 }
  0x2f   :  { %s4481_s12 = sld [smem:[%s5093_s0 + %s4323_s7]]   ;;  %s4498_s7 = smov 0  }
  0x30   :  { %s4486_s20 = sld [smem:[%s5093_s0 + %s4324_s15]]   ;;  %s4504_s15 = smov 0  }
  0x31   :  { %s4491_s27 = sld [smem:[%s5093_s0 + %s4325_s22]]  }
  0x32   :  { %s4496_s4 = sld [smem:[%s5093_s0 + %s4326_s28]]  }
  0x36   :  { %5125 = sst [smem:[#allocation17_spill]] %s4486_s20 }
  0x38   :  { %5126 = sst [smem:[#allocation18_spill]] %s4496_s4 }
  0x39 LB: > { %5127 = sst [smem:[#allocation19_spill]] %s4288_s11  ;;  %s78_s0 = sadd.s32 1, %s4288_s11  ;;  %s4296_s16 = sphi %s4506_s16, %s69_s16   ;;  %s4292_s15 = sphi %s4504_s15, %s5160_s15   ;;  %s4288_s11 = sphi %s4502_s11, %s5159_s11   ;;  %s4284_s10 = sphi %s4500_s10, %s5158_s10   ;;  %s4280_s7 = sphi %s4498_s7, %s5157_s7  }
  0x3a   : > { %5128 = sst [smem:[#allocation20_spill]] %s4292_s15  ;;  %s81_s18 = sadd.s32 1, %s4292_s15 }
  0x3b   : > { %5129 = sst [smem:[#allocation21_spill]] %s4296_s16  ;;  %p79_p0 = scmp.ge.s32.totalorder %s78_s0, 2 }
  0x3c   : > { %p3773_p1 = scmp.ge.s32.totalorder %s4296_s16, 1  ;;  %p845_p2 = scmp.lt.s32.totalorder %s4296_s16, 5 }
  0x3d   : > { %s5162_s0 = smov (%p79_p0, %s78_s0), 0  ;;  %s5164_s18 = smov (!%p79_p0, %s81_s18), %s4292_s15 }
  0x3e   : > { %5130 = sst [smem:[#allocation22_spill]] %s5162_s0  ;;  %p846_p3 = pnand %p3773_p1, %p845_p2 }
  0x3f   : > { %p83_p4 = scmp.ge.s32.totalorder %s5164_s18, 2  ;;  %s5132_s5 = sld [smem:[#allocation3_spill]] (!%p846_p3) }
  0x40   : > { %849 = sbr.rel (%p846_p3) target bundleno = 8197 (0x2005), region = 136  ;;  %s5133_s4 = sld [smem:[#allocation18_spill]] (!%p846_p3) }
  0x41   : > { %s5166_s18 = smov (%p83_p4, %s5164_s18), 0  ;;  %p932_p5 = scmp.lt.s32.totalorder (!%p846_p3), %s4280_s7, 1 }
  0x42   : > { %5131 = sst [smem:[#allocation23_spill]] %s5166_s18  ;;  %p934_p6 = scmp.lt.s32.totalorder (!%p846_p3), %s4284_s10, 1 }
  0x43   : > { %p3778_p7 = scmp.ne.s32.totalorder (!%p846_p3), %s4280_s7, 0 }
  0x45   : > { %s933_s22 = scalar_select %p932_p5, %s4280_s7, 1 }
  0x46   : > { %s5168_s10 = smov (!%p934_p6, %s4284_s10), 1 }
  0x47   : > { %s3775_s23 = sshll.u32 %s933_s22, 2  ;;  %s3966_s26 = smul.u32 6, %s933_s22 }
  0x48   : > { %s3774_s28 = sshll.u32 %s5168_s10, 1  ;;  %s4533_s1 = scalar_lea.vmem %s4356_s9, %s5168_s10 }
  0x49   : > { %s938_s2 = sadd.s32 %s3775_s23, %s3774_s28  ;;  %s3965_s0 = smul.u32 3, %s5168_s10 }
  0x4a   : > { %s3776_s15 = sshll.u32 %s938_s2, 3  ;;  %956 = sbr.rel (%p3778_p7) target bundleno = 82 (0x52), region = 140 }
  0x4b   : > { %s940_s11 = scalar_lea.vmem %s5132_s5, %s3776_s15  ;;  %s950_s18 = sadd.s32 %s3966_s26, %s3965_s0 }
  0x4c   : > { %s3777_s16 = sshll.u32 %s950_s18, 3 }
  0x4d   : > { %s4537_s20 = scalar_lea.vmem %s5133_s4, %s3777_s16 }
  0x4f   : > { %vm957_vm0 = vcmask 64512   ;;  %v4327_v0 = vmov 0.0  }
  0x50   : > { %958 = vst.msk [vmem:[#allocation2] sm:$0xff] %vm957_vm0, %v4327_v0 }
  0x51   : > { %959 = vst.msk [vmem:[#allocation2 + $0x8] sm:$0xff] %vm957_vm0, %v4327_v0 }
  0x52 PF: > { %v1032_v1 = vld [vmem:[%s4361_s13 + $0x8] sm:$0xff]  ;;  %v1031_v2 = vld [vmem:[%s4361_s13] sm:$0xff]  ;;  %vm1037_vm1 = vcmask 130048   ;;  %v4328_v14 = vmov 16.0   ;;  %vm1173_vm3 = vcmask 64512   ;;  %v1241_v38 = vld [vmem:[%s4401_s19 + $0x18] sm:$0xff] }
  0x53   : > { %1058 = vmatpush.msra.mxu0 %v1032_v1  ;;  %v1029_v3 = vld [vmem:[%s940_s11] sm:$0xff]  ;;  %v1030_v4 = vld [vmem:[%s940_s11 + $0x8] sm:$0xff]  ;;  %4223 = vrcp.f32 %v4328_v14  ;;  %v1240_v1 = vld [vmem:[%s4401_s19 + $0x10] sm:$0xff]  ;;  %s5134_s3 = sld [smem:[#allocation4_spill]]  ;;  %vm1242_vm10 = vcmask 261120   ;;  %s4329_s10 = smov 127  }
  0x54   : > { %v4152_v5 = vld [vmem:[%s4366_s17] ss:$0 sm:$0xff]  ;;  %v1133_v31 = vld [vmem:[%s4381_s29 + $0x8] sm:$0xff]  ;;  %s5135_s23 = sld [smem:[#allocation6_spill]] }
  0x55   : > { %1059 = vmatpush.msra.mxu0 %v1031_v2  ;;  %1158 = vmatpush.msra.mxu1 %v1133_v31  ;;  %v1132_v32 = vld [vmem:[%s4381_s29] sm:$0xff]  ;;  %v1171_v0 = vld [vmem:[%s4391_s8 + $0x8] sm:$0xff]  ;;  %s5136_s28 = sld [smem:[#allocation5_spill]] }
  0x56   : > { %3782 = vmatmul.msk.f32.vlgmr.msra.gmra.mxu0 %vm1037_vm1, %v1029_v3  ;;  %v1172_v36 = vld [vmem:[%s4396_s14] sm:$0xff]  ;;  %1223 = vmatpush.msra.mxu3 %v1171_v0  ;;  %v1239_v3 = vld [vmem:[%s4401_s19 + $0x8] sm:$0xff]  ;;  %s5137_s2 = sld [smem:[#allocation7_spill]] }
  0x57   : > { %1159 = vmatpush.msra.mxu1 %v1132_v32  ;;  %3964 = vmatpush.msra.mxu2 %v1172_v36  ;;  %v4153_v50 = vld [vmem:[%s4371_s21] ss:$0 sm:$0xff] }
  0x58   : > { %v4560_v37 = vld [vmem:[#allocation2 + $0x8] sm:$0xff]  ;;  %1195 = vmatpush.msrb.mxu0 %v1172_v36  ;;  %v4154_v54 = vld [vmem:[%s4376_s25] ss:$0 sm:$0xff]  ;;  %v4330_v36 = vmov 512.0  }
  0x59   : > { %v4224_v15 = vpop.eup %4223  ;;  %3787 = vmatmul.msk.f32.vlgmr.msra.gmra.mxu2 %vm1173_vm3, %v4560_v37  ;;  %v1170_v2 = vld [vmem:[%s4391_s8] sm:$0xff] }
  0x5a   : > { %v1076_v16 = vmul.f32 16.0, %v4224_v15  ;;  %vm1080_vm2 = vweird.f32 %v4224_v15  ;;  %1258 = vmatpush.msrb.mxu2 %v1241_v38  ;;  %1224 = vmatpush.msra.mxu3 %v1170_v2 }
  0x5c   : > { %v1077_v17 = vsub.f32 1.0, %v1076_v16  ;;  %1259 = vmatpush.msrb.mxu2 %v1240_v1 }
  0x5e   : > { %3783 = vmatmul.msk.f32.gmra.mxu0 %vm1037_vm1, %v1030_v4  ;;  %v1078_v18 = vmul.f32 %v4224_v15, %v1077_v17  ;;  %1260 = vmatpush.msrb.mxu2 %v1239_v3  ;;  %v1238_v4 = vld [vmem:[%s4401_s19] sm:$0xff] }
  0x5f   : > { %v4156_v17 = vld [vmem:[%s4406_s24] ss:$0 sm:$0xff] }
  0x60   : > { %v1079_v19 = vadd.f32 %v4224_v15, %v1078_v18  ;;  %1261 = vmatpush.msrb.mxu2 %v1238_v4 }
  0x62   : > { %v1081_v20 = vsel %vm1080_vm2, %v4224_v15, %v1079_v19 }
  0xd3   : > { %v1061_v6 = vpop.f32.mrf.mxu0 }
  0xd4   : > { %v1062_v7 = vadd.f32 %v4152_v5, %v1061_v6  ;;  %v4576_v6 = vld [vmem:[#allocation2] sm:$0xff] }
  0xd5   : > { %3786 = vmatmul.msk.f32.vlgmr.msrb.gmra.mxu0 %vm1173_vm3, %v4576_v6 }
  0xd6   : > { %v4545_v8 = vmax.f32 %v1062_v7, 0.0  ;;  %v4581_v7 = vld [vmem:[%s4491_s27] sm:$0x1] }
  0xd7   : > { %3967 = vpush %v4581_v7 }
  0xd8   : > { %v1069_v9 = vsel %vm1037_vm1, %v4545_v8, 0.0 }
  0xd9   : > { %1070 = vadd.xlane.f32.xlu0 %v1069_v9  ;;  %v4155_v9 = vld [vmem:[%s5134_s3] ss:$0 sm:$0xff] }
  0xdb   : > { %v1064_v10 = vpop.f32.mrf.mxu0 }
  0xdc   : > { %v1065_v11 = vadd.f32 %v4152_v5, %v1064_v10  ;;  %v1169_v5 = vld [vmem:[%s4533_s1] sm:$0x1]  ;;  %v1200_v15 = vpop.f32.mrf.mxu2 }
  0xdd   : > { %3790 = vmatmul.msk.f32.vlgmr.msrb.gmra.mxu2 %vm1242_vm10, %v1169_v5 }
  0xde   : > { %v4549_v12 = vmax.f32 %v1065_v11, 0.0 }
  0xe0   : > { %v1072_v13 = vsel %vm1037_vm1, %v4549_v12, 0.0 }
  0xe1   : > { %1073 = vadd.xlane.f32.xlu0 %v1072_v13 }
  0xf5   : > { %1404 = vrot.lane.b32.xlu0 %v4581_v7, %s4329_s10 }
 0x108   : > { %s3968_s7 = spop %3967 }
 0x14c   : > { %v1071_v21 = vpop.xlane.xlu0 %1070 }
 0x14d   : > { %v1082_v22 = vmul.f32 %v1081_v20, %v1071_v21 }
 0x14f   : > { %v1084_v23 = vsub.f32 %v4545_v8, %v1082_v22 }
 0x151   : > { %v1086_v24 = vmul.f32 %v1084_v23, %v1084_v23 }
 0x152   : > { %v1197_v16 = vpop.f32.mrf.mxu0 }
 0x153   : > { %v1088_v25 = vsel %vm1037_vm1, %v1086_v24, 0.0  ;;  %v1273_v24 = vstv %s3968_s7  ;;  %s5138_s7 = sld [smem:[#allocation8_spill]] }
 0x154   : > { %1089 = vadd.xlane.f32.xlu1 %v1088_v25  ;;  %v1074_v26 = vpop.xlane.xlu0 %1073 }
 0x155   : > { %v1083_v27 = vmul.f32 %v1081_v20, %v1074_v26 }
 0x157   : > { %v1085_v28 = vsub.f32 %v4549_v12, %v1083_v27 }
 0x159   : > { %v1087_v29 = vmul.f32 %v1085_v28, %v1085_v28 }
 0x15b   : > { %v1091_v30 = vsel %vm1037_vm1, %v1087_v29, 0.0 }
 0x15c   : > { %1092 = vadd.xlane.f32.xlu1 %v1091_v30 }
 0x160   : > { %v1263_v19 = vpop.f32.mrf.mxu2 }
 0x161   : > { %v1266_v22 = vperm.slane %v1263_v19, 0 }
 0x1c7   : > { %v1090_v33 = vpop.xlane.xlu1 %1089 }
 0x1c8   : > { %v1094_v34 = vmul.f32 %v1090_v33, %v1081_v20 }
 0x1ca   : > { %v1096_v35 = vadd.f32 1e-05, %v1094_v34 }
 0x1cc   : > { %4225 = vrsqrt.f32 %v1096_v35  ;;  %vm1104_vm5 = vweird.f32 %v1096_v35 }
 0x1cf   : > { %v1093_v39 = vpop.xlane.xlu1 %1092 }
 0x1d0   : > { %v1095_v40 = vmul.f32 %v1093_v39, %v1081_v20 }
 0x1d2   : > { %v4226_v41 = vpop.eup %4225  ;;  %v1097_v42 = vadd.f32 1e-05, %v1095_v40 }
 0x1d3   : > { %v1099_v43 = vmul.f32 %v4226_v41, %v1096_v35  ;;  %vm1105_vm4 = vweird.f32 %v4226_v41 }
 0x1d4   : > { %4227 = vrsqrt.f32 %v1097_v42  ;;  %vm1106_vm6 = vmor %vm1104_vm5, %vm1105_vm4  ;;  %vm1114_vm8 = vweird.f32 %v1097_v42 }
 0x1d5   : > { %v1100_v44 = vmul.f32 %v4226_v41, %v1099_v43  ;;  %4229 = vrcp.f32 %v4330_v36 }
 0x1d7   : > { %v1101_v45 = vmul.f32 0.5, %v1100_v44 }
 0x1d9   : > { %v1102_v46 = vsub.f32 1.5, %v1101_v45 }
 0x1da   : > { %v4228_v47 = vpop.eup %4227 }
 0x1db   : > { %v1103_v48 = vmul.f32 %v4226_v41, %v1102_v46  ;;  %v1109_v49 = vmul.f32 %v4228_v47, %v1097_v42  ;;  %vm1115_vm7 = vweird.f32 %v4228_v47  ;;  %v4230_v38 = vpop.eup %4229 }
 0x1dc   : > { %vm1116_vm9 = vmor %vm1114_vm8, %vm1115_vm7  ;;  %v1291_v39 = vmul.f32 512.0, %v4230_v38  ;;  %vm1295_vm13 = vweird.f32 %v4230_v38 }
 0x1dd   : > { %v1107_v51 = vsel %vm1106_vm6, %v4226_v41, %v1103_v48  ;;  %v1110_v52 = vmul.f32 %v4228_v47, %v1109_v49 }
 0x1de   : > { %v1118_v53 = vmul.f32 %v1107_v51, %v1084_v23  ;;  %v1292_v40 = vsub.f32 1.0, %v1291_v39 }
 0x1df   : > { %v1111_v55 = vmul.f32 0.5, %v1110_v52 }
 0x1e0   : > { %v1124_v56 = vmul.f32 %v4153_v50, %v1118_v53  ;;  %v1293_v44 = vmul.f32 %v4230_v38, %v1292_v40 }
 0x1e1   : > { %v1112_v57 = vsub.f32 1.5, %v1111_v55 }
 0x1e2   : > { %v1130_v58 = vadd.f32 %v4154_v54, %v1124_v56 }
 0x1e3   : > { %v1113_v59 = vmul.f32 %v4228_v47, %v1112_v57 }
 0x1e4   : > { %3784 = vmatmul.msk.f32.vlgmr.msra.gmra.mxu1 %vm1037_vm1, %v1130_v58 }
 0x1e5   : > { %v1117_v60 = vsel %vm1116_vm9, %v4228_v47, %v1113_v59  ;;  %v1294_v47 = vadd.f32 %v4230_v38, %v1293_v44 }
 0x1e6   : > { %v1119_v61 = vmul.f32 %v1117_v60, %v1085_v28 }
 0x1e8   : > { %v1125_v62 = vmul.f32 %v4153_v50, %v1119_v61  ;;  %v1296_v50 = vsel %vm1295_vm13, %v4230_v38, %v1294_v47  ;;  %v4161_v38 = vld [vmem:[%s5137_s2] ss:$0 sm:$0xff] }
 0x1ea   : > { %v1131_v63 = vadd.f32 %v4154_v54, %v1125_v62 }
 0x1ec   : > { %3785 = vmatmul.msk.f32.gmra.mxu1 %vm1037_vm1, %v1131_v63 }
 0x261   : > { %v1161_v10 = vpop.f32.mrf.mxu1 }
 0x262   : > { %v4585_v11 = vadd.f32 %v4155_v9, %v1161_v10 }
 0x264   : > { %3788 = vmatmul.msk.f32.vlgmr.msra.gmra.mxu3 %vm1037_vm1, %v4585_v11 }
 0x269   : > { %v1164_v13 = vpop.f32.mrf.mxu1 }
 0x26a   : > { %v4589_v14 = vadd.f32 %v4155_v9, %v1164_v13 }
 0x26c   : > { %3789 = vmatmul.msk.f32.gmra.mxu3 %vm1037_vm1, %v4589_v14 }
 0x2e7   : > { %v1226_v18 = vpop.f32.mrf.mxu3 }
 0x2e8   : > { %v1227_v20 = vadd.f32 %v1226_v18, %v1197_v16 }
 0x2ea   : > { %v1236_v21 = vadd.f32 %v4156_v17, %v1227_v20  ;;  %v4157_v20 = vld [vmem:[%s4411_s30] ss:$0 sm:$0xff] }
 0x2ec   : > { %v1267_v23 = vadd.f32 %v1266_v22, %v1236_v21 }
 0x2ee   : > { %v1274_v27 = vmul.f32 %v1273_v24, %v1267_v23  ;;  %vm1271_vm11 = vcmp.ge.f32.partialorder %v1267_v23, 0.0 }
 0x2ef   : > { %v1229_v25 = vpop.f32.mrf.mxu3 }
 0x2f0   : > { %v1230_v26 = vadd.f32 %v1229_v25, %v1200_v15  ;;  %v1276_v31 = vsel %vm1271_vm11, %v1267_v23, %v1274_v27  ;;  %v1405_v15 = vpop.permute.xlu0 %1404 }
 0x2f1   : > { %v1278_v33 = vsel %vm1242_vm10, %v1276_v31, 0.0 }
 0x2f2   : > { %v1237_v28 = vadd.f32 %v4156_v17, %v1230_v26  ;;  %v960_v17 = vlaneseq }
 0x2f4   : > { %v1268_v29 = vadd.f32 %v1266_v22, %v1237_v28  ;;  %v4604_v18 = vshrl.u32 %v960_v17, 7 }
 0x2f6   : > { %vm1272_vm12 = vcmp.ge.f32.partialorder %v1268_v29, 0.0  ;;  %v1275_v30 = vmul.f32 %v1273_v24, %v1268_v29  ;;  %v4607_v19 = vadd.s32 8, %v4604_v18  ;;  %v4158_v24 = vld [vmem:[%s4416_s6] ss:$0 sm:$0xff]  ;;  %v4612_v25 = vadd.s32 4294967295, %v4604_v18 }
 0x2f7   : > { %vm1355_vm5 = vcmp.lt.s32.totalorder %v4604_v18, 1  ;;  %vm1366_vm6 = vcmp.lt.s32.totalorder %v4604_v18, 7 }
 0x2f8   : > { %v1277_v32 = vsel %vm1272_vm12, %v1268_v29, %v1275_v30  ;;  %v4615_v26 = vadd.s32 1, %v4607_v19  ;;  %vm981_vm2 = vcmp.ge.s32.totalorder %v4612_v25, 0 }
 0x2f9   : > { %v1279_v34 = vsel %vm1242_vm10, %v1277_v32, 0.0 }
 0x2fa   : > { %v1280_v35 = vadd.f32 %v1279_v34, %v1278_v33  ;;  %vm992_vm4 = vcmp.lt.s32.totalorder %v4615_v26, 16 }
 0x2fc   : > { %1281 = vadd.xlane.f32.xlu2 %v1280_v35 }
 0x36f   : > { %v1282_v41 = vpop.xlane.xlu2 %1281 }
 0x370   : > { %v1283_v42 = vrot.slane %v1282_v41, 4 }
 0x372   : > { %v1284_v43 = vadd.f32 %v1283_v42, %v1282_v41 }
 0x374   : > { %v1285_v45 = vrot.slane %v1284_v43, 2 }
 0x376   : > { %v1286_v46 = vadd.f32 %v1285_v45, %v1284_v43 }
 0x378   : > { %v1287_v48 = vrot.slane %v1286_v46, 1 }
 0x37a   : > { %v1288_v49 = vadd.f32 %v1287_v48, %v1286_v46 }
 0x37c   : > { %3969 = vpush %v1288_v49 }
 0x37d   : > { %3971 = vpush %v1296_v50 }
 0x3ad   : > { %s3970_s11 = spop %3969 }
 0x3ae   : > { %s4597_s15 = spop %3971 }
 0x3af   : > { %s1298_s16 = smul.f32 %s4597_s15, %s3970_s11 }
 0x3b1   : > { %v1299_v51 = vstv %s1298_s16 }
 0x3b2   : > { %v1300_v52 = vsub.f32 %v1276_v31, %v1299_v51  ;;  %v1301_v53 = vsub.f32 %v1277_v32, %v1299_v51  ;;  %v4159_v31 = vld [vmem:[%s5135_s23] ss:$0 sm:$0xff] }
 0x3b3   : > { %v4160_v32 = vld [vmem:[%s5136_s28] ss:$0 sm:$0xff] }
 0x3b4   : > { %v1302_v54 = vmul.f32 %v1300_v52, %v1300_v52  ;;  %v1303_v55 = vmul.f32 %v1301_v53, %v1301_v53  ;;  %v4162_v51 = vld [vmem:[%s5138_s7] ss:$0 sm:$0xff] }
 0x3b6   : > { %v1304_v56 = vsel %vm1242_vm10, %v1302_v54, 0.0  ;;  %v1305_v57 = vsel %vm1242_vm10, %v1303_v55, 0.0 }
 0x3b7   : > { %v1306_v58 = vadd.f32 %v1305_v57, %v1304_v56 }
 0x3b9   : > { %1307 = vadd.xlane.f32.xlu2 %v1306_v58 }
 0x42c   : > { %v1308_v59 = vpop.xlane.xlu2 %1307 }
 0x42d   : > { %v1309_v60 = vrot.slane %v1308_v59, 4 }
 0x42f   : > { %v1310_v61 = vadd.f32 %v1309_v60, %v1308_v59 }
 0x431   : > { %v1311_v62 = vrot.slane %v1310_v61, 2 }
 0x433   : > { %v1312_v63 = vadd.f32 %v1311_v62, %v1310_v61 }
 0x435   : > { %v1313_v0 = vrot.slane %v1312_v63, 1 }
 0x437   : > { %v1314_v1 = vadd.f32 %v1313_v0, %v1312_v63 }
 0x439   : > { %3973 = vpush %v1314_v1 }
 0x46a   : > { %s3974_s0 = spop %3973 }
 0x46b   : > { %s1324_s18 = smul.f32 %s3974_s0, %s4597_s15  ;;  %s5139_s0 = smov %s5138_s7 }
 0x46d   : > { %s1325_s22 = sadd.f32 1e-05, %s1324_s18  ;;  %s4331_s18 = smov 126  }
 0x46f   : > { %v1326_v2 = vstv %s1325_s22 }
 0x470   : > { %4231 = vrsqrt.f32 %v1326_v2  ;;  %vm1333_vm15 = vweird.f32 %v1326_v2 }
 0x476   : > { %v4232_v3 = vpop.eup %4231 }
 0x477   : > { %v1328_v4 = vmul.f32 %v4232_v3, %v1326_v2  ;;  %vm1334_vm14 = vweird.f32 %v4232_v3 }
 0x478   : > { %vm1335_vm0 = vmor %vm1333_vm15, %vm1334_vm14 }
 0x479   : > { %v1329_v5 = vmul.f32 %v4232_v3, %v1328_v4 }
 0x47b   : > { %v1330_v9 = vmul.f32 0.5, %v1329_v5 }
 0x47d   : > { %v1331_v10 = vsub.f32 1.5, %v1330_v9 }
 0x47f   : > { %v1332_v13 = vmul.f32 %v4232_v3, %v1331_v10 }
 0x481   : > { %v1336_v16 = vsel %vm1335_vm0, %v4232_v3, %v1332_v13 }
 0x482   : > { %3975 = vpush %v1336_v16 }
 0x483   : > { %3977 = vpush %v1405_v15 }
 0x4b3   : > { %s3976_s26 = spop %3975 }
 0x4b4   : > { %v1338_v21 = vstv %s3976_s26  ;;  %s3978_s10 = spop %3977  ;;  %s5140_s26 = sld [smem:[#allocation11_spill]] }
 0x4b5   : > { %v1339_v22 = vmul.f32 %v1338_v21, %v1300_v52  ;;  %v1340_v23 = vmul.f32 %v1338_v21, %v1301_v53  ;;  %v1410_v56 = vstv %s3978_s10  ;;  %s5141_s10 = sld [smem:[#allocation12_spill]] }
 0x4b7   : > { %v1345_v27 = vmul.f32 %v4157_v20, %v1339_v22  ;;  %v1346_v28 = vmul.f32 %v4157_v20, %v1340_v23 }
 0x4b9   : > { %v1351_v29 = vadd.f32 %v4158_v24, %v1345_v27  ;;  %v1352_v30 = vadd.f32 %v4158_v24, %v1346_v28 }
 0x4bb   : > { %v1353_v33 = vrot.slane %v1351_v29, 7  ;;  %v1354_v34 = vrot.slane %v1352_v30, 7  ;;  %v1364_v35 = vrot.slane %v1351_v29, 1  ;;  %v1365_v36 = vrot.slane %v1352_v30, 1  ;;  %s5142_s3 = smov %s5141_s10 }
 0x4bc   : > { %v1386_v39 = vmul.f32 %v4159_v31, %v1352_v30  ;;  %v1385_v47 = vmul.f32 %v4159_v31, %v1351_v29 }
 0x4bd   : > { %v1356_v40 = vsel %vm1355_vm5, %v1353_v33, %v1354_v34  ;;  %v1357_v41 = vsel %vm1355_vm5, %v1354_v34, %v1353_v33  ;;  %v1368_v42 = vsel %vm1366_vm6, %v1365_v36, %v1364_v35  ;;  %v1367_v44 = vsel %vm1366_vm6, %v1364_v35, %v1365_v36 }
 0x4be   : > { %v1362_v43 = vsel %vm981_vm2, %v1357_v41, 0.0  ;;  %v1374_v45 = vsel %vm992_vm4, %v1368_v42, 0.0  ;;  %v1380_v46 = vmul.f32 %v4160_v32, %v1356_v40  ;;  %v1393_v53 = vmul.f32 %v4161_v38, %v1367_v44  ;;  %v1493_v44 = vld [vmem:[%s5140_s26 + $0x18] sm:$0xff] }
 0x4bf   : > { %v1379_v48 = vmul.f32 %v4160_v32, %v1362_v43  ;;  %v1394_v49 = vmul.f32 %v4161_v38, %v1374_v45  ;;  %v1534_v45 = vld [vmem:[%s5141_s10 + $0x18] sm:$0xff]  ;;  %1512 = vmatpush.msra.mxu0 %v1493_v44  ;;  %s5146_s10 = sld [smem:[#allocation13_spill]] }
 0x4c0   : > { %v1388_v50 = vadd.f32 %v1386_v39, %v1380_v46  ;;  %1547 = vmatpush.msrb.mxu1 %v1534_v45  ;;  %v1492_v46 = vld [vmem:[%s5140_s26 + $0x10] sm:$0xff] }
 0x4c1   : > { %v1387_v52 = vadd.f32 %v1385_v47, %v1379_v48  ;;  %v1533_v47 = vld [vmem:[%s5142_s3 + $0x10] sm:$0xff]  ;;  %1513 = vmatpush.msra.mxu0 %v1492_v46  ;;  %v1491_v48 = vld [vmem:[%s5140_s26 + $0x8] sm:$0xff] }
 0x4c2   : > { %v1396_v54 = vadd.f32 %v1394_v49, %v1388_v50  ;;  %1548 = vmatpush.msrb.mxu1 %v1533_v47  ;;  %v1532_v49 = vld [vmem:[%s5142_s3 + $0x8] sm:$0xff]  ;;  %v1490_v50 = vld [vmem:[%s5140_s26] sm:$0xff] }
 0x4c3   : > { %v1395_v55 = vadd.f32 %v1393_v53, %v1387_v52  ;;  %1514 = vmatpush.msra.mxu0 %v1491_v48 }
 0x4c4   : > { %v1402_v57 = vadd.f32 %v4162_v51, %v1396_v54  ;;  %1549 = vmatpush.msrb.mxu1 %v1532_v49 }
 0x4c5   : > { %v1401_v58 = vadd.f32 %v4162_v51, %v1395_v55  ;;  %v1531_v51 = vld [vmem:[%s5142_s3] sm:$0xff]  ;;  %1515 = vmatpush.msra.mxu0 %v1490_v50  ;;  %s5147_s4 = smov %s5146_s10 }
 0x4c6   : > { %v1412_v59 = vmul.f32 %v1410_v56, %v1402_v57  ;;  %vm1409_vm7 = vcmp.ge.f32.partialorder %v1402_v57, 0.0  ;;  %1550 = vmatpush.msrb.mxu1 %v1531_v51 }
 0x4c7   : > { %v1411_v60 = vmul.f32 %v1410_v56, %v1401_v58  ;;  %vm1408_vm8 = vcmp.ge.f32.partialorder %v1401_v58, 0.0 }
 0x4c8   : > { %v1414_v61 = vsel %vm1409_vm7, %v1402_v57, %v1412_v59 }
 0x4c9   : > { %v1413_v62 = vsel %vm1408_vm8, %v1401_v58, %v1411_v60  ;;  %v1416_v63 = vsel %vm1242_vm10, %v1414_v61, 0.0 }
 0x4ca   : > { %v1415_v0 = vsel %vm1242_vm10, %v1413_v62, 0.0 }
 0x4cb   : > { %v1417_v1 = vadd.f32 %v1416_v63, %v1415_v0  ;;  %v3795_v63 = vld [vmem:[%s4391_s8 + $0x10] sm:$0xff] }
 0x4cd   : > { %1418 = vadd.xlane.f32.xlu1 %v1417_v1  ;;  %v4165_v1 = vld [vmem:[%s5146_s10] ss:$0 sm:$0xff] }
 0x4e6   : > { %1636 = vrot.lane.b32.xlu1 %v4581_v7, %s4331_s18 }
 0x540   : > { %v1419_v2 = vpop.xlane.xlu1 %1418 }
 0x541   : > { %v1420_v3 = vrot.slane %v1419_v2, 4 }
 0x543   : > { %v1421_v4 = vadd.f32 %v1420_v3, %v1419_v2 }
 0x545   : > { %v1422_v5 = vrot.slane %v1421_v4, 2 }
 0x547   : > { %v1423_v9 = vadd.f32 %v1422_v5, %v1421_v4 }
 0x549   : > { %v1424_v10 = vrot.slane %v1423_v9, 1 }
 0x54b   : > { %v1425_v13 = vadd.f32 %v1424_v10, %v1423_v9 }
 0x54d   : > { %3979 = vpush %v1425_v13 }
 0x558   : > { %v1637_v0 = vpop.permute.xlu1 %1636 }
 0x57e   : > { %s3980_s11 = spop %3979 }
 0x57f   : > { %s1435_s16 = smul.f32 %s3980_s11, %s4597_s15 }
 0x581   : > { %v1436_v15 = vstv %s1435_s16  ;;  %s5143_s16 = sld [smem:[#allocation9_spill]] }
 0x582   : > { %v1437_v16 = vsub.f32 %v1413_v62, %v1436_v15  ;;  %v1438_v20 = vsub.f32 %v1414_v61, %v1436_v15  ;;  %v3796_v61 = vld [vmem:[%s4391_s8 + $0x18] sm:$0xff]  ;;  %v3797_v62 = vld [vmem:[%s4396_s14 + $0x8] sm:$0xff] }
 0x583   : > { %1620 = vmatpush.msra.mxu2 %v3796_v61  ;;  %1592 = vmatpush.msrb.mxu3 %v3797_v62 }
 0x584   : > { %v1439_v21 = vmul.f32 %v1437_v16, %v1437_v16  ;;  %v1440_v22 = vmul.f32 %v1438_v20, %v1438_v20 }
 0x585   : > { %1621 = vmatpush.msra.mxu2 %v3795_v63 }
 0x586   : > { %v1441_v23 = vsel %vm1242_vm10, %v1439_v21, 0.0  ;;  %v1442_v24 = vsel %vm1242_vm10, %v1440_v22, 0.0 }
 0x587   : > { %v1443_v27 = vadd.f32 %v1442_v24, %v1441_v23  ;;  %s5144_s18 = smov %s5143_s16  ;;  %v4163_v52 = vld [vmem:[%s5143_s16] ss:$0 sm:$0xff] }
 0x589   : > { %1444 = vadd.xlane.f32.xlu2 %v1443_v27  ;;  %v4167_v27 = vld [vmem:[%s4406_s24 + $0x1] ss:$0 sm:$0xff] }
 0x5fc   : > { %v1445_v28 = vpop.xlane.xlu2 %1444 }
 0x5fd   : > { %v1446_v29 = vrot.slane %v1445_v28, 4 }
 0x5ff   : > { %v1447_v30 = vadd.f32 %v1446_v29, %v1445_v28 }
 0x601   : > { %v1448_v31 = vrot.slane %v1447_v30, 2 }
 0x603   : > { %v1449_v32 = vadd.f32 %v1448_v31, %v1447_v30 }
 0x605   : > { %v1450_v33 = vrot.slane %v1449_v32, 1 }
 0x607   : > { %v1451_v34 = vadd.f32 %v1450_v33, %v1449_v32 }
 0x609   : > { %3981 = vpush %v1451_v34 }
 0x63a   : > { %s3982_s22 = spop %3981 }
 0x63b   : > { %s1461_s7 = smul.f32 %s3982_s22, %s4597_s15  ;;  %s5145_s22 = sld [smem:[#allocation10_spill]] }
 0x63d   : > { %s1462_s11 = sadd.f32 1e-05, %s1461_s7 }
 0x63f   : > { %v1463_v35 = vstv %s1462_s11  ;;  %s5148_s11 = sld [smem:[#allocation14_spill]] }
 0x640   : > { %4233 = vrsqrt.f32 %v1463_v35  ;;  %vm1470_vm11 = vweird.f32 %v1463_v35 }
 0x641   : > { %v4164_v55 = vld [vmem:[%s5145_s22] ss:$0 sm:$0xff] }
 0x645   : > { %s5149_s5 = smov %s5148_s11  ;;  %v4166_v2 = vld [vmem:[%s5148_s11] ss:$0 sm:$0xff] }
 0x646   : > { %v4234_v36 = vpop.eup %4233 }
 0x647   : > { %v1465_v38 = vmul.f32 %v4234_v36, %v1463_v35  ;;  %vm1471_vm9 = vweird.f32 %v4234_v36 }
 0x648   : > { %vm1472_vm12 = vmor %vm1470_vm11, %vm1471_vm9  ;;  %vm1726_vm11 = vcmp.lt.s32.totalorder %v4604_v18, 2 }
 0x649   : > { %v1466_v39 = vmul.f32 %v4234_v36, %v1465_v38 }
 0x64b   : > { %v1467_v40 = vmul.f32 0.5, %v1466_v39 }
 0x64d   : > { %v1468_v41 = vsub.f32 1.5, %v1467_v40 }
 0x64f   : > { %v1469_v42 = vmul.f32 %v4234_v36, %v1468_v41 }
 0x651   : > { %v1473_v43 = vsel %vm1472_vm12, %v4234_v36, %v1469_v42  ;;  %vm1737_vm12 = vcmp.lt.s32.totalorder %v4604_v18, 6 }
 0x652   : > { %3983 = vpush %v1473_v43 }
 0x653   : > { %3985 = vpush %v1637_v0 }
 0x683   : > { %s3984_s7 = spop %3983 }
 0x684   : > { %v1475_v53 = vstv %s3984_s7  ;;  %s3986_s16 = spop %3985  ;;  %s4332_s7 = smov 125  }
 0x685   : > { %v1476_v54 = vmul.f32 %v1475_v53, %v1437_v16  ;;  %v1477_v57 = vmul.f32 %v1475_v53, %v1438_v20  ;;  %v1642_v29 = vstv %s3986_s16  ;;  %1778 = vrot.lane.b32.xlu0 %v4581_v7, %s4332_s7 }
 0x687   : > { %v1482_v56 = vmul.f32 %v4163_v52, %v1476_v54  ;;  %v1483_v59 = vmul.f32 %v4163_v52, %v1477_v57 }
 0x689   : > { %v1488_v58 = vadd.f32 %v4164_v55, %v1482_v56  ;;  %v1489_v60 = vadd.f32 %v4164_v55, %v1483_v59 }
 0x68b   : > { %3791 = vmatmul.msk.f32.vlgmr.msra.gmra.mxu0 %vm1242_vm10, %v1488_v58  ;;  %3793 = vmatmul.msk.f32.vlgmr.msrb.gmra.mxu1 %vm1242_vm10, %v1488_v58 }
 0x693   : > { %3792 = vmatmul.msk.f32.gmra.mxu0 %vm1242_vm10, %v1489_v60  ;;  %3794 = vmatmul.msk.f32.gmra.mxu1 %vm1242_vm10, %v1489_v60 }
 0x708   : > { %v1517_v3 = vpop.f32.mrf.mxu0  ;;  %v1552_v4 = vpop.f32.mrf.mxu1 }
 0x709   : > { %v1523_v5 = vadd.f32 %v1517_v3, %v4585_v11  ;;  %v1558_v9 = vadd.f32 %v1552_v4, %v4576_v6 }
 0x70b   : > { %v4665_v10 = vadd.f32 %v4165_v1, %v1523_v5  ;;  %v4667_v13 = vadd.f32 %v4166_v2, %v1558_v9  ;;  %v1779_v5 = vpop.permute.xlu0 %1778 }
 0x70d   : > { %3798 = vmatmul.msk.f32.vlgmr.msrb.gmra.mxu3 %vm1173_vm3, %v4667_v13  ;;  %3800 = vmatmul.msk.f32.vlgmr.msra.gmra.mxu2 %vm1037_vm1, %v4665_v10 }
 0x710   : > { %v1520_v15 = vpop.f32.mrf.mxu0  ;;  %v1555_v16 = vpop.f32.mrf.mxu1 }
 0x711   : > { %v1524_v20 = vadd.f32 %v1520_v15, %v4589_v14  ;;  %v1559_v21 = vadd.f32 %v1555_v16, %v4560_v37  ;;  %v4168_v15 = vld [vmem:[%s4411_s30 + $0x1] ss:$0 sm:$0xff] }
 0x713   : > { %v4675_v11 = vadd.f32 %v4165_v1, %v1524_v20  ;;  %v4677_v6 = vadd.f32 %v4166_v2, %v1559_v21 }
 0x715   : > { %3799 = vmatmul.msk.f32.gmra.mxu3 %vm1173_vm3, %v4677_v6  ;;  %3801 = vmatmul.msk.f32.gmra.mxu2 %vm1037_vm1, %v4675_v11 }
 0x790   : > { %v1594_v22 = vpop.f32.mrf.mxu3  ;;  %v1623_v23 = vpop.f32.mrf.mxu2 }
 0x791   : > { %v1624_v24 = vadd.f32 %v1623_v23, %v1594_v22  ;;  %v4169_v22 = vld [vmem:[%s4416_s6 + $0x1] ss:$0 sm:$0xff]  ;;  %v4694_v23 = vadd.s32 4294967294, %v4604_v18 }
 0x793   : > { %v1634_v28 = vadd.f32 %v4167_v27, %v1624_v24  ;;  %v4697_v24 = vadd.s32 2, %v4607_v19  ;;  %vm973_vm8 = vcmp.ge.s32.totalorder %v4694_v23, 0 }
 0x795   : > { %v1643_v37 = vmul.f32 %v1642_v29, %v1634_v28  ;;  %vm1640_vm13 = vcmp.ge.f32.partialorder %v1634_v28, 0.0  ;;  %vm1000_vm9 = vcmp.lt.s32.totalorder %v4697_v24, 16 }
 0x797   : > { %v1645_v34 = vsel %vm1640_vm13, %v1634_v28, %v1643_v37  ;;  %v4171_v37 = vld [vmem:[%s5136_s28 + $0x1] ss:$0 sm:$0xff] }
 0x798   : > { %v1597_v14 = vpop.f32.mrf.mxu3  ;;  %v1626_v30 = vpop.f32.mrf.mxu2  ;;  %v1647_v36 = vsel %vm1242_vm10, %v1645_v34, 0.0 }
 0x799   : > { %v1627_v31 = vadd.f32 %v1626_v30, %v1597_v14  ;;  %v4170_v30 = vld [vmem:[%s5135_s23 + $0x1] ss:$0 sm:$0xff] }
 0x79b   : > { %v1635_v32 = vadd.f32 %v4167_v27, %v1627_v31 }
 0x79d   : > { %v1644_v33 = vmul.f32 %v1642_v29, %v1635_v32  ;;  %vm1641_vm14 = vcmp.ge.f32.partialorder %v1635_v32, 0.0 }
 0x79f   : > { %v1646_v35 = vsel %vm1641_vm14, %v1635_v32, %v1644_v33 }
 0x7a0   : > { %v1648_v38 = vsel %vm1242_vm10, %v1646_v35, 0.0 }
 0x7a1   : > { %v1649_v39 = vadd.f32 %v1648_v38, %v1647_v36 }
 0x7a3   : > { %1650 = vadd.xlane.f32.xlu2 %v1649_v39 }
 0x816   : > { %v1651_v40 = vpop.xlane.xlu2 %1650 }
 0x817   : > { %v1652_v41 = vrot.slane %v1651_v40, 4 }
 0x819   : > { %v1653_v42 = vadd.f32 %v1652_v41, %v1651_v40 }
 0x81b   : > { %v1654_v43 = vrot.slane %v1653_v42, 2 }
 0x81d   : > { %v1655_v44 = vadd.f32 %v1654_v43, %v1653_v42 }
 0x81f   : > { %v1656_v45 = vrot.slane %v1655_v44, 1 }
 0x821   : > { %v1657_v46 = vadd.f32 %v1656_v45, %v1655_v44 }
 0x823   : > { %3987 = vpush %v1657_v46 }
 0x854   : > { %s3988_s10 = spop %3987 }
 0x855   : > { %s1667_s11 = smul.f32 %s3988_s10, %s4597_s15 }
 0x857   : > { %v1668_v47 = vstv %s1667_s11 }
 0x858   : > { %v1669_v48 = vsub.f32 %v1645_v34, %v1668_v47  ;;  %v1670_v49 = vsub.f32 %v1646_v35, %v1668_v47  ;;  %v4172_v35 = vld [vmem:[%s5137_s2 + $0x1] ss:$0 sm:$0xff] }
 0x85a   : > { %v1671_v50 = vmul.f32 %v1669_v48, %v1669_v48  ;;  %v1672_v51 = vmul.f32 %v1670_v49, %v1670_v49 }
 0x85c   : > { %v1673_v52 = vsel %vm1242_vm10, %v1671_v50, 0.0  ;;  %v1674_v53 = vsel %vm1242_vm10, %v1672_v51, 0.0 }
 0x85d   : > { %v1675_v54 = vadd.f32 %v1674_v53, %v1673_v52 }
 0x85f   : > { %1676 = vadd.xlane.f32.xlu2 %v1675_v54 }
 0x8d2   : > { %v1677_v55 = vpop.xlane.xlu2 %1676 }
 0x8d3   : > { %v1678_v56 = vrot.slane %v1677_v55, 4 }
 0x8d5   : > { %v1679_v57 = vadd.f32 %v1678_v56, %v1677_v55 }
 0x8d7   : > { %v1680_v58 = vrot.slane %v1679_v57, 2 }
 0x8d9   : > { %v1681_v59 = vadd.f32 %v1680_v58, %v1679_v57 }
 0x8db   : > { %v1682_v60 = vrot.slane %v1681_v59, 1 }
 0x8dd   : > { %v1683_v61 = vadd.f32 %v1682_v60, %v1681_v59 }
 0x8df   : > { %3989 = vpush %v1683_v61 }
 0x910   : > { %s3990_s16 = spop %3989 }
 0x911   : > { %s1693_s7 = smul.f32 %s3990_s16, %s4597_s15 }
 0x913   : > { %s1694_s10 = sadd.f32 1e-05, %s1693_s7 }
 0x915   : > { %v1695_v62 = vstv %s1694_s10 }
 0x916   : > { %4235 = vrsqrt.f32 %v1695_v62  ;;  %vm1702_vm0 = vweird.f32 %v1695_v62 }
 0x91c   : > { %v4236_v63 = vpop.eup %4235 }
 0x91d   : > { %v1697_v0 = vmul.f32 %v4236_v63, %v1695_v62  ;;  %vm1703_vm15 = vweird.f32 %v4236_v63 }
 0x91e   : > { %vm1704_vm7 = vmor %vm1702_vm0, %vm1703_vm15 }
 0x91f   : > { %v1698_v1 = vmul.f32 %v4236_v63, %v1697_v0 }
 0x921   : > { %v1699_v2 = vmul.f32 0.5, %v1698_v1 }
 0x923   : > { %v1700_v3 = vsub.f32 1.5, %v1699_v2 }
 0x925   : > { %v1701_v4 = vmul.f32 %v4236_v63, %v1700_v3 }
 0x927   : > { %v1705_v9 = vsel %vm1704_vm7, %v4236_v63, %v1701_v4 }
 0x928   : > { %3991 = vpush %v1705_v9 }
 0x929   : > { %3993 = vpush %v1779_v5 }
 0x959   : > { %s3992_s11 = spop %3991 }
 0x95a   : > { %v1707_v16 = vstv %s3992_s11  ;;  %s3994_s16 = spop %3993  ;;  %s4333_s11 = smov 124  }
 0x95b   : > { %v1708_v20 = vmul.f32 %v1707_v16, %v1669_v48  ;;  %v1709_v21 = vmul.f32 %v1707_v16, %v1670_v49  ;;  %v4173_v49 = vld [vmem:[%s5139_s0 + $0x1] ss:$0 sm:$0xff]  ;;  %v1784_v54 = vstv %s3994_s16 }
 0x95d   : > { %v1715_v27 = vmul.f32 %v4168_v15, %v1708_v20  ;;  %v1716_v28 = vmul.f32 %v4168_v15, %v1709_v21 }
 0x95f   : > { %v1722_v29 = vadd.f32 %v4169_v22, %v1715_v27  ;;  %v1723_v14 = vadd.f32 %v4169_v22, %v1716_v28 }
 0x961   : > { %v1724_v31 = vrot.slane %v1722_v29, 6  ;;  %v1725_v32 = vrot.slane %v1723_v14, 6  ;;  %v1735_v33 = vrot.slane %v1722_v29, 2  ;;  %v1736_v34 = vrot.slane %v1723_v14, 2 }
 0x962   : > { %v1759_v36 = vmul.f32 %v4170_v30, %v1723_v14  ;;  %v1758_v45 = vmul.f32 %v4170_v30, %v1722_v29 }
 0x963   : > { %v1727_v38 = vsel %vm1726_vm11, %v1724_v31, %v1725_v32  ;;  %v1728_v39 = vsel %vm1726_vm11, %v1725_v32, %v1724_v31  ;;  %v1739_v40 = vsel %vm1737_vm12, %v1736_v34, %v1735_v33  ;;  %v1738_v42 = vsel %vm1737_vm12, %v1735_v33, %v1736_v34 }
 0x964   : > { %v1733_v41 = vsel %vm973_vm8, %v1728_v39, 0.0  ;;  %v1745_v43 = vsel %vm1000_vm9, %v1739_v40, 0.0  ;;  %v1752_v44 = vmul.f32 %v4171_v37, %v1727_v38  ;;  %v1767_v51 = vmul.f32 %v4172_v35, %v1738_v42 }
 0x965   : > { %v1751_v46 = vmul.f32 %v4171_v37, %v1733_v41  ;;  %v1768_v47 = vmul.f32 %v4172_v35, %v1745_v43 }
 0x966   : > { %v1761_v48 = vadd.f32 %v1759_v36, %v1752_v44  ;;  %v3814_v44 = vld [vmem:[%s5140_s26 + $0x38] sm:$0xff] }
 0x967   : > { %v1760_v50 = vadd.f32 %v1758_v45, %v1751_v46  ;;  %v3821_v45 = vld [vmem:[%s5142_s3 + $0x38] sm:$0xff]  ;;  %1889 = vmatpush.msrb.mxu0 %v3814_v44  ;;  %v3813_v46 = vld [vmem:[%s5140_s26 + $0x30] sm:$0xff] }
 0x968   : > { %v1770_v52 = vadd.f32 %v1768_v47, %v1761_v48  ;;  %1926 = vmatpush.msra.mxu1 %v3821_v45  ;;  %v3820_v47 = vld [vmem:[%s5142_s3 + $0x30] sm:$0xff]  ;;  %v3812_v48 = vld [vmem:[%s5140_s26 + $0x28] sm:$0xff] }
 0x969   : > { %v1769_v53 = vadd.f32 %v1767_v51, %v1760_v50  ;;  %1890 = vmatpush.msrb.mxu0 %v3813_v46  ;;  %v3811_v50 = vld [vmem:[%s5140_s26 + $0x20] sm:$0xff] }
 0x96a   : > { %v1777_v55 = vadd.f32 %v4173_v49, %v1770_v52  ;;  %1927 = vmatpush.msra.mxu1 %v3820_v47  ;;  %v3818_v51 = vld [vmem:[%s5142_s3 + $0x20] sm:$0xff] }
 0x96b   : > { %v1776_v56 = vadd.f32 %v4173_v49, %v1769_v53  ;;  %v3819_v49 = vld [vmem:[%s5142_s3 + $0x28] sm:$0xff]  ;;  %1891 = vmatpush.msrb.mxu0 %v3812_v48  ;;  %v4174_v52 = vld [vmem:[%s5144_s18 + $0x1] ss:$0 sm:$0xff] }
 0x96c   : > { %v1786_v57 = vmul.f32 %v1784_v54, %v1777_v55  ;;  %vm1783_vm13 = vcmp.ge.f32.partialorder %v1777_v55, 0.0  ;;  %1928 = vmatpush.msra.mxu1 %v3819_v49 }
 0x96d   : > { %v1785_v58 = vmul.f32 %v1784_v54, %v1776_v56  ;;  %vm1782_vm14 = vcmp.ge.f32.partialorder %v1776_v56, 0.0  ;;  %1892 = vmatpush.msrb.mxu0 %v3811_v50 }
 0x96e   : > { %v1788_v59 = vsel %vm1783_vm13, %v1777_v55, %v1786_v57  ;;  %1929 = vmatpush.msra.mxu1 %v3818_v51  ;;  %v4175_v55 = vld [vmem:[%s5145_s22 + $0x1] ss:$0 sm:$0xff] }
 0x96f   : > { %v1787_v60 = vsel %vm1782_vm14, %v1776_v56, %v1785_v58  ;;  %v1790_v61 = vsel %vm1242_vm10, %v1788_v59, 0.0 }
 0x970   : > { %v1789_v62 = vsel %vm1242_vm10, %v1787_v60, 0.0 }
 0x971   : > { %v1791_v63 = vadd.f32 %v1790_v61, %v1789_v62  ;;  %v3826_v61 = vld [vmem:[%s4391_s8 + $0x28] sm:$0xff]  ;;  %v3827_v62 = vld [vmem:[%s4396_s14 + $0x10] sm:$0xff] }
 0x972   : > { %2000 = vmatpush.msrb.mxu2 %v3826_v61  ;;  %1972 = vmatpush.msra.mxu3 %v3827_v62 }
 0x973   : > { %1792 = vadd.xlane.f32.xlu2 %v1791_v63  ;;  %v3825_v63 = vld [vmem:[%s4391_s8 + $0x20] sm:$0xff] }
 0x974   : > { %2001 = vmatpush.msrb.mxu2 %v3825_v63 }
 0x98b   : > { %2016 = vrot.lane.b32.xlu2 %v4581_v7, %s4333_s11 }
 0x9e6   : > { %v1793_v0 = vpop.xlane.xlu2 %1792 }
 0x9e7   : > { %v1794_v1 = vrot.slane %v1793_v0, 4 }
 0x9e9   : > { %v1795_v2 = vadd.f32 %v1794_v1, %v1793_v0  ;;  %v4176_v1 = vld [vmem:[%s5147_s4 + $0x1] ss:$0 sm:$0xff] }
 0x9eb   : > { %v1796_v3 = vrot.slane %v1795_v2, 2 }
 0x9ed   : > { %v1797_v4 = vadd.f32 %v1796_v3, %v1795_v2  ;;  %v4177_v2 = vld [vmem:[%s5149_s5 + $0x1] ss:$0 sm:$0xff] }
 0x9ee   : > { %v2017_v0 = vpop.permute.xlu2 %2016 }
 0x9ef   : > { %v1798_v5 = vrot.slane %v1797_v4, 1 }
 0x9f1   : > { %v1799_v9 = vadd.f32 %v1798_v5, %v1797_v4 }
 0x9f3   : > { %3995 = vpush %v1799_v9 }
 0xa24   : > { %s3996_s7 = spop %3995 }
 0xa25   : > { %s1809_s10 = smul.f32 %s3996_s7, %s4597_s15 }
 0xa27   : > { %v1810_v15 = vstv %s1809_s10 }
 0xa28   : > { %v1811_v16 = vsub.f32 %v1787_v60, %v1810_v15  ;;  %v1812_v20 = vsub.f32 %v1788_v59, %v1810_v15 }
 0xa2a   : > { %v1813_v21 = vmul.f32 %v1811_v16, %v1811_v16  ;;  %v1814_v22 = vmul.f32 %v1812_v20, %v1812_v20 }
 0xa2c   : > { %v1815_v27 = vsel %vm1242_vm10, %v1813_v21, 0.0  ;;  %v1816_v28 = vsel %vm1242_vm10, %v1814_v22, 0.0 }
 0xa2d   : > { %v1817_v29 = vadd.f32 %v1816_v28, %v1815_v27 }
 0xa2f   : > { %1818 = vadd.xlane.f32.xlu0 %v1817_v29 }
 0xaa2   : > { %v1819_v14 = vpop.xlane.xlu0 %1818 }
 0xaa3   : > { %v1820_v30 = vrot.slane %v1819_v14, 4 }
 0xaa5   : > { %v1821_v37 = vadd.f32 %v1820_v30, %v1819_v14  ;;  %v4178_v30 = vld [vmem:[%s4406_s24 + $0x2] ss:$0 sm:$0xff] }
 0xaa7   : > { %v1822_v31 = vrot.slane %v1821_v37, 2 }
 0xaa9   : > { %v1823_v32 = vadd.f32 %v1822_v31, %v1821_v37 }
 0xaab   : > { %v1824_v33 = vrot.slane %v1823_v32, 1 }
 0xaad   : > { %v1825_v34 = vadd.f32 %v1824_v33, %v1823_v32 }
 0xaaf   : > { %3997 = vpush %v1825_v34 }
 0xae0   : > { %s3998_s16 = spop %3997 }
 0xae1   : > { %s1835_s7 = smul.f32 %s3998_s16, %s4597_s15 }
 0xae3   : > { %s1836_s10 = sadd.f32 1e-05, %s1835_s7  ;;  %s4334_s7 = smov 123  }
 0xae4   : > { %2153 = vrot.lane.b32.xlu0 %v4581_v7, %s4334_s7 }
 0xae5   : > { %v1837_v35 = vstv %s1836_s10 }
 0xae6   : > { %4237 = vrsqrt.f32 %v1837_v35  ;;  %vm1844_vm0 = vweird.f32 %v1837_v35 }
 0xaec   : > { %v4238_v36 = vpop.eup %4237 }
 0xaed   : > { %v1839_v38 = vmul.f32 %v4238_v36, %v1837_v35  ;;  %vm1845_vm15 = vweird.f32 %v4238_v36 }
 0xaee   : > { %vm1846_vm7 = vmor %vm1844_vm0, %vm1845_vm15 }
 0xaef   : > { %v1840_v39 = vmul.f32 %v4238_v36, %v1839_v38 }
 0xaf1   : > { %v1841_v40 = vmul.f32 0.5, %v1840_v39 }
 0xaf3   : > { %v1842_v41 = vsub.f32 1.5, %v1841_v40 }
 0xaf5   : > { %v1843_v42 = vmul.f32 %v4238_v36, %v1842_v41 }
 0xaf7   : > { %v1847_v43 = vsel %vm1846_vm7, %v4238_v36, %v1843_v42 }
 0xaf8   : > { %3999 = vpush %v1847_v43 }
 0xaf9   : > { %4001 = vpush %v2017_v0 }
 0xb29   : > { %s4000_s11 = spop %3999 }
 0xb2a   : > { %v1849_v53 = vstv %s4000_s11  ;;  %s4002_s16 = spop %4001 }
 0xb2b   : > { %v1850_v54 = vmul.f32 %v1849_v53, %v1811_v16  ;;  %v1851_v57 = vmul.f32 %v1849_v53, %v1812_v20  ;;  %v2022_v31 = vstv %s4002_s16 }
 0xb2d   : > { %v1857_v56 = vmul.f32 %v4174_v52, %v1850_v54  ;;  %v1858_v59 = vmul.f32 %v4174_v52, %v1851_v57 }
 0xb2f   : > { %v1864_v58 = vadd.f32 %v4175_v55, %v1857_v56  ;;  %v1865_v60 = vadd.f32 %v4175_v55, %v1858_v59 }
 0xb31   : > { %3815 = vmatmul.msk.f32.vlgmr.msrb.gmra.mxu0 %vm1242_vm10, %v1864_v58  ;;  %3822 = vmatmul.msk.f32.vlgmr.msra.gmra.mxu1 %vm1242_vm10, %v1864_v58 }
 0xb39   : > { %3816 = vmatmul.msk.f32.gmra.mxu0 %vm1242_vm10, %v1865_v60  ;;  %3823 = vmatmul.msk.f32.gmra.mxu1 %vm1242_vm10, %v1865_v60 }
 0xbae   : > { %v1894_v3 = vpop.f32.mrf.mxu0  ;;  %v1931_v4 = vpop.f32.mrf.mxu1 }
 0xbaf   : > { %v1900_v5 = vadd.f32 %v1894_v3, %v4665_v10  ;;  %v1937_v9 = vadd.f32 %v1931_v4, %v4667_v13 }
 0xbb1   : > { %v4747_v15 = vadd.f32 %v4176_v1, %v1900_v5  ;;  %v4749_v16 = vadd.f32 %v4177_v2, %v1937_v9  ;;  %v2154_v9 = vpop.permute.xlu0 %2153 }
 0xbb3   : > { %3828 = vmatmul.msk.f32.vlgmr.msra.gmra.mxu3 %vm1173_vm3, %v4749_v16  ;;  %3830 = vmatmul.msk.f32.vlgmr.msrb.gmra.mxu2 %vm1037_vm1, %v4747_v15 }
 0xbb6   : > { %v1897_v20 = vpop.f32.mrf.mxu0  ;;  %v1934_v21 = vpop.f32.mrf.mxu1 }
 0xbb7   : > { %v1901_v22 = vadd.f32 %v1897_v20, %v4675_v11  ;;  %v1938_v27 = vadd.f32 %v1934_v21, %v4677_v6  ;;  %v4179_v21 = vld [vmem:[%s4411_s30 + $0x2] ss:$0 sm:$0xff] }
 0xbb9   : > { %v4757_v10 = vadd.f32 %v4176_v1, %v1901_v22  ;;  %v4759_v13 = vadd.f32 %v4177_v2, %v1938_v27 }
 0xbbb   : > { %3829 = vmatmul.msk.f32.gmra.mxu3 %vm1173_vm3, %v4759_v13  ;;  %3831 = vmatmul.msk.f32.gmra.mxu2 %vm1037_vm1, %v4757_v10 }
 0xc36   : > { %v1974_v28 = vpop.f32.mrf.mxu3  ;;  %v2003_v29 = vpop.f32.mrf.mxu2 }
 0xc37   : > { %v2004_v14 = vadd.f32 %v2003_v29, %v1974_v28  ;;  %v4180_v29 = vld [vmem:[%s4416_s6 + $0x2] ss:$0 sm:$0xff] }
 0xc39   : > { %v2014_v37 = vadd.f32 %v4178_v30, %v2004_v14  ;;  %v4776_v14 = vadd.s32 4294967292, %v4604_v18 }
 0xc3b   : > { %v2023_v6 = vmul.f32 %v2022_v31, %v2014_v37  ;;  %vm2020_vm13 = vcmp.ge.f32.partialorder %v2014_v37, 0.0 }
 0xc3d   : > { %v2025_v36 = vsel %vm2020_vm13, %v2014_v37, %v2023_v6  ;;  %vm2106_vm13 = vcmp.lt.s32.totalorder %v4604_v18, 4  ;;  %v4181_v6 = vld [vmem:[%s5136_s28 + $0x2] ss:$0 sm:$0xff] }
 0xc3e   : > { %v1977_v11 = vpop.f32.mrf.mxu3  ;;  %v2006_v32 = vpop.f32.mrf.mxu2  ;;  %v2027_v39 = vsel %vm1242_vm10, %v2025_v36, 0.0 }
 0xc3f   : > { %v2007_v33 = vadd.f32 %v2006_v32, %v1977_v11 }
 0xc41   : > { %v2015_v34 = vadd.f32 %v4178_v30, %v2007_v33  ;;  %v4182_v33 = vld [vmem:[%s5135_s23 + $0x2] ss:$0 sm:$0xff] }
 0xc43   : > { %v2024_v35 = vmul.f32 %v2022_v31, %v2015_v34  ;;  %vm2021_vm14 = vcmp.ge.f32.partialorder %v2015_v34, 0.0  ;;  %v4779_v31 = vadd.s32 4, %v4607_v19 }
 0xc45   : > { %v2026_v38 = vsel %vm2021_vm14, %v2015_v34, %v2024_v35  ;;  %vm965_vm14 = vcmp.ge.s32.totalorder %v4776_v14, 0 }
 0xc46   : > { %v2028_v40 = vsel %vm1242_vm10, %v2026_v38, 0.0 }
 0xc47   : > { %v2029_v41 = vadd.f32 %v2028_v40, %v2027_v39 }
 0xc49   : > { %2030 = vadd.xlane.f32.xlu1 %v2029_v41 }
 0xcbc   : > { %v2031_v42 = vpop.xlane.xlu1 %2030 }
 0xcbd   : > { %v2032_v43 = vrot.slane %v2031_v42, 4 }
 0xcbf   : > { %v2033_v44 = vadd.f32 %v2032_v43, %v2031_v42 }
 0xcc1   : > { %v2034_v45 = vrot.slane %v2033_v44, 2 }
 0xcc3   : > { %v2035_v46 = vadd.f32 %v2034_v45, %v2033_v44 }
 0xcc5   : > { %v2036_v47 = vrot.slane %v2035_v46, 1 }
 0xcc7   : > { %v2037_v48 = vadd.f32 %v2036_v47, %v2035_v46 }
 0xcc9   : > { %4003 = vpush %v2037_v48  ;;  %v4184_v48 = vld [vmem:[%s5139_s0 + $0x2] ss:$0 sm:$0xff] }
 0xcfa   : > { %s4004_s10 = spop %4003 }
 0xcfb   : > { %s2047_s11 = smul.f32 %s4004_s10, %s4597_s15 }
 0xcfd   : > { %v2048_v49 = vstv %s2047_s11 }
 0xcfe   : > { %v2049_v50 = vsub.f32 %v2025_v36, %v2048_v49  ;;  %v2050_v51 = vsub.f32 %v2026_v38, %v2048_v49  ;;  %v4183_v36 = vld [vmem:[%s5137_s2 + $0x2] ss:$0 sm:$0xff] }
 0xd00   : > { %v2051_v52 = vmul.f32 %v2049_v50, %v2049_v50  ;;  %v2052_v53 = vmul.f32 %v2050_v51, %v2050_v51 }
 0xd02   : > { %v2053_v54 = vsel %vm1242_vm10, %v2051_v52, 0.0  ;;  %v2054_v7 = vsel %vm1242_vm10, %v2052_v53, 0.0 }
 0xd03   : > { %v2055_v55 = vadd.f32 %v2054_v7, %v2053_v54 }
 0xd05   : > { %2056 = vadd.xlane.f32.xlu2 %v2055_v55 }
 0xd78   : > { %v2057_v56 = vpop.xlane.xlu2 %2056 }
 0xd79   : > { %v2058_v57 = vrot.slane %v2057_v56, 4 }
 0xd7b   : > { %v2059_v58 = vadd.f32 %v2058_v57, %v2057_v56 }
 0xd7d   : > { %v2060_v59 = vrot.slane %v2059_v58, 2 }
 0xd7f   : > { %v2061_v60 = vadd.f32 %v2060_v59, %v2059_v58 }
 0xd81   : > { %v2062_v61 = vrot.slane %v2061_v60, 1 }
 0xd83   : > { %v2063_v62 = vadd.f32 %v2062_v61, %v2061_v60 }
 0xd85   : > { %4005 = vpush %v2063_v62 }
 0xdb6   : > { %s4006_s16 = spop %4005 }
 0xdb7   : > { %s2073_s7 = smul.f32 %s4006_s16, %s4597_s15 }
 0xdb9   : > { %s2074_s10 = sadd.f32 1e-05, %s2073_s7 }
 0xdbb   : > { %v2075_v63 = vstv %s2074_s10 }
 0xdbc   : > { %4239 = vrsqrt.f32 %v2075_v63  ;;  %vm2082_vm0 = vweird.f32 %v2075_v63 }
 0xdc2   : > { %v4240_v0 = vpop.eup %4239 }
 0xdc3   : > { %v2077_v1 = vmul.f32 %v4240_v0, %v2075_v63  ;;  %vm2083_vm15 = vweird.f32 %v4240_v0 }
 0xdc4   : > { %vm2084_vm7 = vmor %vm2082_vm0, %vm2083_vm15  ;;  %vm5109_vm15 = vcmp.lt.s32.totalorder %v4779_v31, 16 }
 0xdc5   : > { %v2078_v2 = vmul.f32 %v4240_v0, %v2077_v1 }
 0xdc7   : > { %v2079_v3 = vmul.f32 0.5, %v2078_v2 }
 0xdc9   : > { %v2080_v4 = vsub.f32 1.5, %v2079_v3 }
 0xdcb   : > { %v2081_v5 = vmul.f32 %v4240_v0, %v2080_v4 }
 0xdcd   : > { %v2085_v20 = vsel %vm2084_vm7, %v4240_v0, %v2081_v5 }
 0xdce   : > { %4007 = vpush %v2085_v20 }
 0xdcf   : > { %4009 = vpush %v2154_v9 }
 0xdff   : > { %s4008_s11 = spop %4007 }
 0xe00   : > { %v2087_v22 = vstv %s4008_s11  ;;  %s4010_s16 = spop %4009  ;;  %s4335_s11 = smov 122  }
 0xe01   : > { %v2088_v27 = vmul.f32 %v2087_v22, %v2049_v50  ;;  %v2089_v28 = vmul.f32 %v2087_v22, %v2050_v51  ;;  %v2159_v53 = vstv %s4010_s16 }
 0xe03   : > { %v2095_v30 = vmul.f32 %v4179_v21, %v2088_v27  ;;  %v2096_v37 = vmul.f32 %v4179_v21, %v2089_v28 }
 0xe05   : > { %v2102_v11 = vadd.f32 %v4180_v29, %v2095_v30  ;;  %v2103_v32 = vadd.f32 %v4180_v29, %v2096_v37 }
 0xe07   : > { %v2104_v34 = vrot.slane %v2102_v11, 4  ;;  %v2105_v35 = vrot.slane %v2103_v32, 4  ;;  %v2134_v42 = vmul.f32 %v4182_v33, %v2103_v32  ;;  %v2133_v45 = vmul.f32 %v4182_v33, %v2102_v11 }
 0xe09   : > { %v2107_v38 = vsel %vm2106_vm13, %v2104_v34, %v2105_v35  ;;  %v2108_v39 = vsel %vm2106_vm13, %v2105_v35, %v2104_v34  ;;  %v4802_v35 = vld [vmem:[%s4491_s27] sm:$0x1] }
 0xe0a   : > { %v2113_v40 = vsel %vm965_vm14, %v2108_v39, 0.0  ;;  %v2127_v41 = vmul.f32 %v4181_v6, %v2107_v38  ;;  %v2120_v43 = vsel %vm5109_vm15, %v2108_v39, 0.0  ;;  %v2142_v50 = vmul.f32 %v4183_v36, %v2107_v38  ;;  %2419 = vrot.lane.b32.xlu0 %v4802_v35, %s4335_s11 }
 0xe0b   : > { %v2126_v44 = vmul.f32 %v4181_v6, %v2113_v40  ;;  %v2143_v46 = vmul.f32 %v4183_v36, %v2120_v43 }
 0xe0c   : > { %v2136_v47 = vadd.f32 %v2134_v42, %v2127_v41 }
 0xe0d   : > { %v2135_v49 = vadd.f32 %v2133_v45, %v2126_v44  ;;  %v3844_v45 = vld [vmem:[%s5140_s26 + $0x58] sm:$0xff] }
 0xe0e   : > { %v2145_v51 = vadd.f32 %v2143_v46, %v2136_v47  ;;  %v3851_v46 = vld [vmem:[%s5142_s3 + $0x58] sm:$0xff]  ;;  %2264 = vmatpush.msra.mxu0 %v3844_v45  ;;  %v3843_v47 = vld [vmem:[%s5140_s26 + $0x50] sm:$0xff] }
 0xe0f   : > { %v2144_v52 = vadd.f32 %v2142_v50, %v2135_v49  ;;  %2301 = vmatpush.msrb.mxu1 %v3851_v46  ;;  %v3842_v49 = vld [vmem:[%s5140_s26 + $0x48] sm:$0xff] }
 0xe10   : > { %v2152_v54 = vadd.f32 %v4184_v48, %v2145_v51  ;;  %2265 = vmatpush.msra.mxu0 %v3843_v47  ;;  %v3849_v50 = vld [vmem:[%s5142_s3 + $0x48] sm:$0xff]  ;;  %v3841_v51 = vld [vmem:[%s5140_s26 + $0x40] sm:$0xff] }
 0xe11   : > { %v2151_v7 = vadd.f32 %v4184_v48, %v2144_v52  ;;  %v3850_v48 = vld [vmem:[%s5142_s3 + $0x50] sm:$0xff]  ;;  %v3848_v52 = vld [vmem:[%s5142_s3 + $0x40] sm:$0xff] }
 0xe12   : > { %v2161_v55 = vmul.f32 %v2159_v53, %v2152_v54  ;;  %vm2158_vm0 = vcmp.ge.f32.partialorder %v2152_v54, 0.0  ;;  %2302 = vmatpush.msrb.mxu1 %v3850_v48  ;;  %2266 = vmatpush.msra.mxu0 %v3842_v49 }
 0xe13   : > { %v2160_v56 = vmul.f32 %v2159_v53, %v2151_v7  ;;  %vm2157_vm7 = vcmp.ge.f32.partialorder %v2151_v7, 0.0  ;;  %v4185_v53 = vld [vmem:[%s5144_s18 + $0x2] ss:$0 sm:$0xff] }
 0xe14   : > { %v2163_v57 = vsel %vm2158_vm0, %v2152_v54, %v2161_v55  ;;  %2303 = vmatpush.msrb.mxu1 %v3849_v50  ;;  %2267 = vmatpush.msra.mxu0 %v3841_v51  ;;  %v4186_v55 = vld [vmem:[%s5145_s22 + $0x2] ss:$0 sm:$0xff] }
 0xe15   : > { %v2162_v58 = vsel %vm2157_vm7, %v2151_v7, %v2160_v56  ;;  %v2165_v59 = vsel %vm1242_vm10, %v2163_v57, 0.0 }
 0xe16   : > { %v2164_v60 = vsel %vm1242_vm10, %v2162_v58, 0.0  ;;  %2304 = vmatpush.msrb.mxu1 %v3848_v52 }
 0xe17   : > { %v2166_v61 = vadd.f32 %v2165_v59, %v2164_v60 }
 0xe19   : > { %2167 = vadd.xlane.f32.xlu1 %v2166_v61  ;;  %v3856_v61 = vld [vmem:[%s4391_s8 + $0x38] sm:$0xff] }
 0xe1a   : > { %2375 = vmatpush.msra.mxu2 %v3856_v61 }
 0xe8c   : > { %v2168_v62 = vpop.xlane.xlu1 %2167 }
 0xe8d   : > { %v2169_v63 = vrot.slane %v2168_v62, 4 }
 0xe8f   : > { %v2170_v0 = vadd.f32 %v2169_v63, %v2168_v62  ;;  %v3857_v62 = vld [vmem:[%s4396_s14 + $0x18] sm:$0xff]  ;;  %v3855_v63 = vld [vmem:[%s4391_s8 + $0x30] sm:$0xff] }
 0xe90   : > { %2347 = vmatpush.msrb.mxu3 %v3857_v62  ;;  %2376 = vmatpush.msra.mxu2 %v3855_v63 }
 0xe91   : > { %v2171_v1 = vrot.slane %v2170_v0, 2 }
 0xe93   : > { %v2172_v2 = vadd.f32 %v2171_v1, %v2170_v0  ;;  %v3866_v0 = vld [vmem:[%s4401_s19 + $0x38] sm:$0xff]  ;;  %v3865_v1 = vld [vmem:[%s4401_s19 + $0x30] sm:$0xff] }
 0xe94   : > { %2408 = vmatpush.msrb.mxu0 %v3866_v0 }
 0xe95   : > { %v2173_v3 = vrot.slane %v2172_v2, 1 }
 0xe96   : > { %2409 = vmatpush.msrb.mxu0 %v3865_v1 }
 0xe97   : > { %v2174_v4 = vadd.f32 %v2173_v3, %v2172_v2  ;;  %v3864_v2 = vld [vmem:[%s4401_s19 + $0x28] sm:$0xff]  ;;  %v3863_v3 = vld [vmem:[%s4401_s19 + $0x20] sm:$0xff] }
 0xe98   : > { %2410 = vmatpush.msrb.mxu0 %v3864_v2 }
 0xe99   : > { %4011 = vpush %v2174_v4  ;;  %v2420_v4 = vpop.permute.xlu0 %2419 }
 0xe9a   : > { %2411 = vmatpush.msrb.mxu0 %v3863_v3 }
 0xeca   : > { %s4012_s7 = spop %4011 }
 0xecb   : > { %s2184_s10 = smul.f32 %s4012_s7, %s4597_s15 }
 0xecd   : > { %v2185_v5 = vstv %s2184_s10 }
 0xece   : > { %v2186_v9 = vsub.f32 %v2162_v58, %v2185_v5  ;;  %v2187_v20 = vsub.f32 %v2163_v57, %v2185_v5  ;;  %v4256_v5 = vld [vmem:[%s4533_s1] sm:$0x1] }
 0xed0   : > { %v2188_v21 = vmul.f32 %v2186_v9, %v2186_v9  ;;  %v2189_v22 = vmul.f32 %v2187_v20, %v2187_v20 }
 0xed2   : > { %v2190_v27 = vsel %vm1242_vm10, %v2188_v21, 0.0  ;;  %v2191_v28 = vsel %vm1242_vm10, %v2189_v22, 0.0 }
 0xed3   : > { %v2192_v29 = vadd.f32 %v2191_v28, %v2190_v27 }
 0xed5   : > { %2193 = vadd.xlane.f32.xlu1 %v2192_v29 }
 0xf48   : > { %v2194_v30 = vpop.xlane.xlu1 %2193 }
 0xf49   : > { %v2195_v37 = vrot.slane %v2194_v30, 4 }
 0xf4b   : > { %v2196_v11 = vadd.f32 %v2195_v37, %v2194_v30 }
 0xf4d   : > { %v2197_v32 = vrot.slane %v2196_v11, 2 }
 0xf4f   : > { %v2198_v6 = vadd.f32 %v2197_v32, %v2196_v11 }
 0xf51   : > { %v2199_v33 = vrot.slane %v2198_v6, 1 }
 0xf53   : > { %v2200_v34 = vadd.f32 %v2199_v33, %v2198_v6 }
 0xf55   : > { %4013 = vpush %v2200_v34 }
 0xf86   : > { %s4014_s16 = spop %4013 }
 0xf87   : > { %s2210_s7 = smul.f32 %s4014_s16, %s4597_s15  ;;  %s4336_s16 = smov 121  }
 0xf88   : > { %2551 = vrot.lane.b32.xlu0 %v4802_v35, %s4336_s16 }
 0xf89   : > { %s2211_s10 = sadd.f32 1e-05, %s2210_s7 }
 0xf8b   : > { %v2212_v36 = vstv %s2211_s10 }
 0xf8c   : > { %4241 = vrsqrt.f32 %v2212_v36  ;;  %vm2219_vm7 = vweird.f32 %v2212_v36 }
 0xf92   : > { %v4242_v38 = vpop.eup %4241 }
 0xf93   : > { %v2214_v39 = vmul.f32 %v4242_v38, %v2212_v36  ;;  %vm2220_vm0 = vweird.f32 %v4242_v38 }
 0xf94   : > { %vm2221_vm15 = vmor %vm2219_vm7, %vm2220_vm0 }
 0xf95   : > { %v2215_v40 = vmul.f32 %v4242_v38, %v2214_v39 }
 0xf97   : > { %v2216_v41 = vmul.f32 0.5, %v2215_v40 }
 0xf99   : > { %v2217_v42 = vsub.f32 1.5, %v2216_v41 }
 0xf9b   : > { %v2218_v43 = vmul.f32 %v4242_v38, %v2217_v42 }
 0xf9d   : > { %v2222_v44 = vsel %vm2221_vm15, %v4242_v38, %v2218_v43 }
 0xf9e   : > { %4015 = vpush %v2222_v44 }
 0xf9f   : > { %4017 = vpush %v2420_v4 }
 0xfcf   : > { %s4016_s11 = spop %4015 }
 0xfd0   : > { %v2224_v54 = vstv %s4016_s11  ;;  %s4018_s1 = spop %4017 }
 0xfd1   : > { %v2225_v7 = vmul.f32 %v2224_v54, %v2186_v9  ;;  %v2226_v57 = vmul.f32 %v2224_v54, %v2187_v20  ;;  %v4187_v9 = vld [vmem:[%s5147_s4 + $0x2] ss:$0 sm:$0xff] }
 0xfd2   : > { %v4188_v20 = vld [vmem:[%s5149_s5 + $0x2] ss:$0 sm:$0xff] }
 0xfd3   : > { %v2232_v56 = vmul.f32 %v4185_v53, %v2225_v7  ;;  %v2233_v59 = vmul.f32 %v4185_v53, %v2226_v57 }
 0xfd5   : > { %v2239_v58 = vadd.f32 %v4186_v55, %v2232_v56  ;;  %v2240_v60 = vadd.f32 %v4186_v55, %v2233_v59 }
 0xfd7   : > { %3845 = vmatmul.msk.f32.vlgmr.msra.gmra.mxu0 %vm1242_vm10, %v2239_v58  ;;  %3852 = vmatmul.msk.f32.vlgmr.msrb.gmra.mxu1 %vm1242_vm10, %v2239_v58 }
 0xfdf   : > { %3846 = vmatmul.msk.f32.gmra.mxu0 %vm1242_vm10, %v2240_v60  ;;  %3853 = vmatmul.msk.f32.gmra.mxu1 %vm1242_vm10, %v2240_v60 }
 0xfe7   : > { %3867 = vmatmul.msk.f32.vlgmr.msrb.gmra.mxu0 %vm1242_vm10, %v4256_v5 }
0x1054   : > { %v2269_v21 = vpop.f32.mrf.mxu0  ;;  %v2306_v22 = vpop.f32.mrf.mxu1 }
0x1055   : > { %v2275_v27 = vadd.f32 %v2269_v21, %v4747_v15  ;;  %v2312_v28 = vadd.f32 %v2306_v22, %v4749_v16  ;;  %v4189_v16 = vld [vmem:[%s4406_s24 + $0x3] ss:$0 sm:$0xff] }
0x1057   : > { %v4833_v29 = vadd.f32 %v4187_v9, %v2275_v27  ;;  %v4835_v30 = vadd.f32 %v4188_v20, %v2312_v28 }
0x1059   : > { %3858 = vmatmul.msk.f32.vlgmr.msrb.gmra.mxu3 %vm1173_vm3, %v4835_v30  ;;  %3860 = vmatmul.msk.f32.vlgmr.msra.gmra.mxu2 %vm1037_vm1, %v4833_v29 }
0x105c   : > { %v2272_v37 = vpop.f32.mrf.mxu0  ;;  %v2309_v11 = vpop.f32.mrf.mxu1 }
0x105d   : > { %v2276_v32 = vadd.f32 %v2272_v37, %v4757_v10  ;;  %v2313_v6 = vadd.f32 %v2309_v11, %v4759_v13  ;;  %v2425_v13 = vstv %s4018_s1 }
0x105f   : > { %v4843_v33 = vadd.f32 %v4187_v9, %v2276_v32  ;;  %v4845_v15 = vadd.f32 %v4188_v20, %v2313_v6 }
0x1061   : > { %3859 = vmatmul.msk.f32.gmra.mxu3 %vm1173_vm3, %v4845_v15  ;;  %3861 = vmatmul.msk.f32.gmra.mxu2 %vm1037_vm1, %v4843_v33 }
0x1064   : > { %v2413_v34 = vpop.f32.mrf.mxu0 }
0x1065   : > { %v2416_v41 = vperm.slane %v2413_v34, 0 }
0x10dc   : > { %v2349_v36 = vpop.f32.mrf.mxu3  ;;  %v2378_v38 = vpop.f32.mrf.mxu2 }
0x10dd   : > { %v2379_v39 = vadd.f32 %v2378_v38, %v2349_v36  ;;  %v2552_v36 = vpop.permute.xlu0 %2551 }
0x10df   : > { %v2389_v40 = vadd.f32 %v4189_v16, %v2379_v39  ;;  %v4190_v39 = vld [vmem:[%s4411_s30 + $0x3] ss:$0 sm:$0xff] }
0x10e1   : > { %v2417_v10 = vadd.f32 %v2416_v41, %v2389_v40 }
0x10e3   : > { %v2426_v45 = vmul.f32 %v2425_v13, %v2417_v10  ;;  %vm2423_vm15 = vcmp.ge.f32.partialorder %v2417_v10, 0.0 }
0x10e4   : > { %v2352_v42 = vpop.f32.mrf.mxu3  ;;  %v2381_v43 = vpop.f32.mrf.mxu2 }
0x10e5   : > { %v2382_v44 = vadd.f32 %v2381_v43, %v2352_v42  ;;  %v2428_v49 = vsel %vm2423_vm15, %v2417_v10, %v2426_v45 }
0x10e6   : > { %v2430_v51 = vsel %vm1242_vm10, %v2428_v49, 0.0 }
0x10e7   : > { %v2390_v46 = vadd.f32 %v4189_v16, %v2382_v44 }
0x10e9   : > { %v2418_v47 = vadd.f32 %v2416_v41, %v2390_v46  ;;  %v4192_v46 = vld [vmem:[%s5135_s23 + $0x3] ss:$0 sm:$0xff] }
0x10eb   : > { %vm2424_vm0 = vcmp.ge.f32.partialorder %v2418_v47, 0.0  ;;  %v2427_v48 = vmul.f32 %v2425_v13, %v2418_v47  ;;  %v4191_v13 = vld [vmem:[%s4416_s6 + $0x3] ss:$0 sm:$0xff] }
0x10ed   : > { %v2429_v50 = vsel %vm2424_vm0, %v2418_v47, %v2427_v48  ;;  %v4193_v47 = vld [vmem:[%s5136_s28 + $0x3] ss:$0 sm:$0xff] }
0x10ee   : > { %v2431_v52 = vsel %vm1242_vm10, %v2429_v50, 0.0 }
0x10ef   : > { %v2432_v53 = vadd.f32 %v2431_v52, %v2430_v51  ;;  %v4194_v52 = vld [vmem:[%s5137_s2 + $0x3] ss:$0 sm:$0xff] }
0x10f1   : > { %2433 = vadd.xlane.f32.xlu1 %v2432_v53 }
0x1164   : > { %v2434_v54 = vpop.xlane.xlu1 %2433 }
0x1165   : > { %v2435_v7 = vrot.slane %v2434_v54, 4 }
0x1167   : > { %v2436_v55 = vadd.f32 %v2435_v7, %v2434_v54 }
0x1169   : > { %v2437_v56 = vrot.slane %v2436_v55, 2 }
0x116b   : > { %v2438_v57 = vadd.f32 %v2437_v56, %v2436_v55 }
0x116d   : > { %v2439_v58 = vrot.slane %v2438_v57, 1 }
0x116f   : > { %v2440_v59 = vadd.f32 %v2439_v58, %v2438_v57 }
0x1171   : > { %4019 = vpush %v2440_v59 }
0x11a2   : > { %s4020_s7 = spop %4019 }
0x11a3   : > { %s2450_s10 = smul.f32 %s4020_s7, %s4597_s15 }
0x11a5   : > { %v2451_v60 = vstv %s2450_s10 }
0x11a6   : > { %v2452_v61 = vsub.f32 %v2428_v49, %v2451_v60  ;;  %v2453_v62 = vsub.f32 %v2429_v50, %v2451_v60 }
0x11a8   : > { %v2454_v63 = vmul.f32 %v2452_v61, %v2452_v61  ;;  %v2455_v0 = vmul.f32 %v2453_v62, %v2453_v62 }
0x11aa   : > { %v2456_v1 = vsel %vm1242_vm10, %v2454_v63, 0.0  ;;  %v2457_v2 = vsel %vm1242_vm10, %v2455_v0, 0.0  ;;  %v4195_v0 = vld [vmem:[%s5139_s0 + $0x3] ss:$0 sm:$0xff] }
0x11ab   : > { %v2458_v3 = vadd.f32 %v2457_v2, %v2456_v1 }
0x11ad   : > { %2459 = vadd.xlane.f32.xlu2 %v2458_v3 }
0x1220   : > { %v2460_v4 = vpop.xlane.xlu2 %2459 }
0x1221   : > { %v2461_v5 = vrot.slane %v2460_v4, 4 }
0x1223   : > { %v2462_v9 = vadd.f32 %v2461_v5, %v2460_v4 }
0x1225   : > { %v2463_v20 = vrot.slane %v2462_v9, 2 }
0x1227   : > { %v2464_v21 = vadd.f32 %v2463_v20, %v2462_v9 }
0x1229   : > { %v2465_v22 = vrot.slane %v2464_v21, 1 }
0x122b   : > { %v2466_v27 = vadd.f32 %v2465_v22, %v2464_v21 }
0x122d   : > { %4021 = vpush %v2466_v27 }
0x125e   : > { %s4022_s11 = spop %4021 }
0x125f   : > { %s2476_s1 = smul.f32 %s4022_s11, %s4597_s15 }
0x1261   : > { %s2477_s16 = sadd.f32 1e-05, %s2476_s1 }
0x1263   : > { %v2478_v28 = vstv %s2477_s16  ;;  %s4337_s16 = smov 120  }
0x1264   : > { %4243 = vrsqrt.f32 %v2478_v28  ;;  %vm2485_vm15 = vweird.f32 %v2478_v28  ;;  %2789 = vrot.lane.b32.xlu0 %v4802_v35, %s4337_s16 }
0x126a   : > { %v4244_v37 = vpop.eup %4243 }
0x126b   : > { %v2480_v11 = vmul.f32 %v4244_v37, %v2478_v28  ;;  %vm2486_vm7 = vweird.f32 %v4244_v37 }
0x126c   : > { %vm2487_vm0 = vmor %vm2485_vm15, %vm2486_vm7 }
0x126d   : > { %v2481_v32 = vmul.f32 %v4244_v37, %v2480_v11 }
0x126f   : > { %v2482_v6 = vmul.f32 0.5, %v2481_v32 }
0x1271   : > { %v2483_v16 = vsub.f32 1.5, %v2482_v6 }
0x1273   : > { %v2484_v34 = vmul.f32 %v4244_v37, %v2483_v16 }
0x1275   : > { %v2488_v38 = vsel %vm2487_vm0, %v4244_v37, %v2484_v34 }
0x1276   : > { %4023 = vpush %v2488_v38 }
0x1277   : > { %4025 = vpush %v2552_v36 }
0x12a7   : > { %s4024_s7 = spop %4023 }
0x12a8   : > { %v2490_v40 = vstv %s4024_s7  ;;  %s4026_s10 = spop %4025 }
0x12a9   : > { %v2491_v41 = vmul.f32 %v2490_v40, %v2452_v61  ;;  %v2492_v10 = vmul.f32 %v2490_v40, %v2453_v62  ;;  %v2557_v5 = vstv %s4026_s10 }
0x12ab   : > { %v2498_v42 = vmul.f32 %v4190_v39, %v2491_v41  ;;  %v2499_v43 = vmul.f32 %v4190_v39, %v2492_v10 }
0x12ad   : > { %v2505_v44 = vadd.f32 %v4191_v13, %v2498_v42  ;;  %v2506_v45 = vadd.f32 %v4191_v13, %v2499_v43 }
0x12af   : > { %v2507_v48 = vrot.slane %v2505_v44, 7  ;;  %v2508_v49 = vrot.slane %v2506_v45, 7  ;;  %v2513_v50 = vrot.slane %v2505_v44, 1  ;;  %v2514_v51 = vrot.slane %v2506_v45, 1 }
0x12b0   : > { %v2532_v53 = vmul.f32 %v4192_v46, %v2506_v45  ;;  %v2531_v60 = vmul.f32 %v4192_v46, %v2505_v44 }
0x12b1   : > { %v2509_v54 = vsel %vm1355_vm5, %v2507_v48, %v2508_v49  ;;  %v2510_v7 = vsel %vm1355_vm5, %v2508_v49, %v2507_v48  ;;  %v2516_v55 = vsel %vm1366_vm6, %v2514_v51, %v2513_v50  ;;  %v2515_v57 = vsel %vm1366_vm6, %v2513_v50, %v2514_v51 }
0x12b2   : > { %v2511_v56 = vsel %vm981_vm2, %v2510_v7, 0.0  ;;  %v2518_v58 = vsel %vm992_vm4, %v2516_v55, 0.0  ;;  %v2525_v59 = vmul.f32 %v4193_v47, %v2509_v54  ;;  %v2540_v2 = vmul.f32 %v4194_v52, %v2515_v57 }
0x12b3   : > { %v2524_v61 = vmul.f32 %v4193_v47, %v2511_v56  ;;  %v2541_v62 = vmul.f32 %v4194_v52, %v2518_v58 }
0x12b4   : > { %v2534_v63 = vadd.f32 %v2532_v53, %v2525_v59 }
0x12b5   : > { %v2533_v1 = vadd.f32 %v2531_v60, %v2524_v61  ;;  %v3879_v60 = vld [vmem:[%s5140_s26 + $0x78] sm:$0xff] }
0x12b6   : > { %v2543_v3 = vadd.f32 %v2541_v62, %v2534_v63  ;;  %v3886_v61 = vld [vmem:[%s5142_s3 + $0x78] sm:$0xff]  ;;  %2662 = vmatpush.msra.mxu1 %v3879_v60  ;;  %v3878_v62 = vld [vmem:[%s5140_s26 + $0x70] sm:$0xff] }
0x12b7   : > { %v2542_v4 = vadd.f32 %v2540_v2, %v2533_v1  ;;  %2699 = vmatpush.msra.mxu3 %v3886_v61  ;;  %v3885_v63 = vld [vmem:[%s5142_s3 + $0x70] sm:$0xff]  ;;  %v3884_v1 = vld [vmem:[%s5142_s3 + $0x68] sm:$0xff]  ;;  %v3876_v2 = vld [vmem:[%s5140_s26 + $0x60] sm:$0xff] }
0x12b8   : > { %v2550_v9 = vadd.f32 %v4195_v0, %v2543_v3  ;;  %2663 = vmatpush.msra.mxu1 %v3878_v62  ;;  %v3883_v3 = vld [vmem:[%s5142_s3 + $0x60] sm:$0xff] }
0x12b9   : > { %v2549_v20 = vadd.f32 %v4195_v0, %v2542_v4  ;;  %2700 = vmatpush.msra.mxu3 %v3885_v63  ;;  %v3877_v0 = vld [vmem:[%s5140_s26 + $0x68] sm:$0xff]  ;;  %v4196_v4 = vld [vmem:[%s5144_s18 + $0x3] ss:$0 sm:$0xff] }
0x12ba   : > { %v2559_v21 = vmul.f32 %v2557_v5, %v2550_v9  ;;  %vm2556_vm2 = vcmp.ge.f32.partialorder %v2550_v9, 0.0  ;;  %2664 = vmatpush.msra.mxu1 %v3877_v0 }
0x12bb   : > { %v2558_v22 = vmul.f32 %v2557_v5, %v2549_v20  ;;  %vm2555_vm5 = vcmp.ge.f32.partialorder %v2549_v20, 0.0  ;;  %2701 = vmatpush.msra.mxu3 %v3884_v1 }
0x12bc   : > { %v2561_v26 = vsel %vm2556_vm2, %v2550_v9, %v2559_v21  ;;  %2665 = vmatpush.msra.mxu1 %v3876_v2 }
0x12bd   : > { %v2560_v27 = vsel %vm2555_vm5, %v2549_v20, %v2558_v22  ;;  %v2563_v28 = vsel %vm1242_vm10, %v2561_v26, 0.0  ;;  %2702 = vmatpush.msra.mxu3 %v3883_v3  ;;  %v4197_v20 = vld [vmem:[%s5145_s22 + $0x3] ss:$0 sm:$0xff] }
0x12be   : > { %v2562_v37 = vsel %vm1242_vm10, %v2560_v27, 0.0 }
0x12bf   : > { %v2564_v11 = vadd.f32 %v2563_v28, %v2562_v37  ;;  %v3891_v37 = vld [vmem:[%s4391_s8 + $0x48] sm:$0xff] }
0x12c0   : > { %2773 = vmatpush.msra.mxu0 %v3891_v37 }
0x12c1   : > { %2565 = vadd.xlane.f32.xlu1 %v2564_v11  ;;  %v3890_v11 = vld [vmem:[%s4391_s8 + $0x40] sm:$0xff] }
0x12c2   : > { %2774 = vmatpush.msra.mxu0 %v3890_v11 }
0x1334   : > { %v2566_v32 = vpop.xlane.xlu1 %2565 }
0x1335   : > { %v2567_v6 = vrot.slane %v2566_v32, 4 }
0x1337   : > { %v2568_v16 = vadd.f32 %v2567_v6, %v2566_v32  ;;  %v3892_v32 = vld [vmem:[%s4396_s14 + $0x20] sm:$0xff]  ;;  %v2790_v6 = vpop.permute.xlu0 %2789 }
0x1338   : > { %2745 = vmatpush.msrb.mxu2 %v3892_v32 }
0x1339   : > { %v2569_v34 = vrot.slane %v2568_v16, 2 }
0x133b   : > { %v2570_v36 = vadd.f32 %v2569_v34, %v2568_v16  ;;  %v4198_v16 = vld [vmem:[%s5147_s4 + $0x3] ss:$0 sm:$0xff] }
0x133d   : > { %v2571_v38 = vrot.slane %v2570_v36, 1 }
0x133f   : > { %v2572_v39 = vadd.f32 %v2571_v38, %v2570_v36 }
0x1341   : > { %4027 = vpush %v2572_v39  ;;  %v4199_v39 = vld [vmem:[%s5149_s5 + $0x3] ss:$0 sm:$0xff] }
0x1372   : > { %s4028_s11 = spop %4027 }
0x1373   : > { %s2582_s1 = smul.f32 %s4028_s11, %s4597_s15 }
0x1375   : > { %v2583_v40 = vstv %s2582_s1 }
0x1376   : > { %v2584_v41 = vsub.f32 %v2560_v27, %v2583_v40  ;;  %v2585_v10 = vsub.f32 %v2561_v26, %v2583_v40 }
0x1378   : > { %v2586_v13 = vmul.f32 %v2584_v41, %v2584_v41  ;;  %v2587_v42 = vmul.f32 %v2585_v10, %v2585_v10 }
0x137a   : > { %v2588_v43 = vsel %vm1242_vm10, %v2586_v13, 0.0  ;;  %v2589_v44 = vsel %vm1242_vm10, %v2587_v42, 0.0 }
0x137b   : > { %v2590_v45 = vadd.f32 %v2589_v44, %v2588_v43 }
0x137d   : > { %2591 = vadd.xlane.f32.xlu2 %v2590_v45 }
0x13f0   : > { %v2592_v46 = vpop.xlane.xlu2 %2591 }
0x13f1   : > { %v2593_v47 = vrot.slane %v2592_v46, 4 }
0x13f3   : > { %v2594_v48 = vadd.f32 %v2593_v47, %v2592_v46 }
0x13f5   : > { %v2595_v49 = vrot.slane %v2594_v48, 2 }
0x13f7   : > { %v2596_v50 = vadd.f32 %v2595_v49, %v2594_v48 }
0x13f9   : > { %v2597_v51 = vrot.slane %v2596_v50, 1 }
0x13fb   : > { %v2598_v52 = vadd.f32 %v2597_v51, %v2596_v50 }
0x13fd   : > { %4029 = vpush %v2598_v52 }
0x142e   : > { %s4030_s7 = spop %4029 }
0x142f   : > { %s2608_s10 = smul.f32 %s4030_s7, %s4597_s15  ;;  %s4338_s7 = smov 119  }
0x1430   : > { %2921 = vrot.lane.b32.xlu0 %v4802_v35, %s4338_s7 }
0x1431   : > { %s2609_s11 = sadd.f32 1e-05, %s2608_s10 }
0x1433   : > { %v2610_v53 = vstv %s2609_s11 }
0x1434   : > { %4245 = vrsqrt.f32 %v2610_v53  ;;  %vm2617_vm6 = vweird.f32 %v2610_v53 }
0x143a   : > { %v4246_v54 = vpop.eup %4245 }
0x143b   : > { %v2612_v7 = vmul.f32 %v4246_v54, %v2610_v53  ;;  %vm2618_vm4 = vweird.f32 %v4246_v54 }
0x143c   : > { %vm2619_vm7 = vmor %vm2617_vm6, %vm2618_vm4 }
0x143d   : > { %v2613_v55 = vmul.f32 %v4246_v54, %v2612_v7 }
0x143f   : > { %v2614_v56 = vmul.f32 0.5, %v2613_v55 }
0x1441   : > { %v2615_v57 = vsub.f32 1.5, %v2614_v56 }
0x1443   : > { %v2616_v58 = vmul.f32 %v4246_v54, %v2615_v57 }
0x1445   : > { %v2620_v59 = vsel %vm2619_vm7, %v4246_v54, %v2616_v58 }
0x1446   : > { %4031 = vpush %v2620_v59 }
0x1447   : > { %4033 = vpush %v2790_v6 }
0x1477   : > { %s4032_s1 = spop %4031 }
0x1478   : > { %v2622_v5 = vstv %s4032_s1  ;;  %s4034_s16 = spop %4033 }
0x1479   : > { %v2623_v9 = vmul.f32 %v2622_v5, %v2584_v41  ;;  %v2624_v22 = vmul.f32 %v2622_v5, %v2585_v10  ;;  %v2795_v49 = vstv %s4034_s16 }
0x147b   : > { %v2630_v21 = vmul.f32 %v4196_v4, %v2623_v9  ;;  %v2631_v27 = vmul.f32 %v4196_v4, %v2624_v22 }
0x147d   : > { %v2637_v26 = vadd.f32 %v4197_v20, %v2630_v21  ;;  %v2638_v28 = vadd.f32 %v4197_v20, %v2631_v27 }
0x147f   : > { %3880 = vmatmul.msk.f32.vlgmr.msra.gmra.mxu1 %vm1242_vm10, %v2637_v26  ;;  %3887 = vmatmul.msk.f32.vlgmr.msra.gmra.mxu3 %vm1242_vm10, %v2637_v26 }
0x1487   : > { %3881 = vmatmul.msk.f32.gmra.mxu1 %vm1242_vm10, %v2638_v28  ;;  %3888 = vmatmul.msk.f32.gmra.mxu3 %vm1242_vm10, %v2638_v28 }
0x14fc   : > { %v2667_v34 = vpop.f32.mrf.mxu1 }
0x14fd   : > { %v2673_v36 = vadd.f32 %v2667_v34, %v4833_v29 }
0x14ff   : > { %v4903_v38 = vadd.f32 %v4198_v16, %v2673_v36 }
0x1501   : > { %3895 = vmatmul.msk.f32.vlgmr.msra.gmra.mxu0 %vm1037_vm1, %v4903_v38 }
0x1502   : > { %v2704_v40 = vpop.f32.mrf.mxu3 }
0x1503   : > { %v2710_v41 = vadd.f32 %v2704_v40, %v4835_v30 }
0x1504   : > { %v2670_v10 = vpop.f32.mrf.mxu1 }
0x1505   : > { %v4909_v13 = vadd.f32 %v4199_v39, %v2710_v41  ;;  %v2674_v42 = vadd.f32 %v2670_v10, %v4843_v33  ;;  %v4200_v33 = vld [vmem:[%s4406_s24 + $0x4] ss:$0 sm:$0xff] }
0x1507   : > { %v4912_v43 = vadd.f32 %v4198_v16, %v2674_v42  ;;  %3893 = vmatmul.msk.f32.vlgmr.msrb.gmra.mxu2 %vm1173_vm3, %v4909_v13  ;;  %v2922_v42 = vpop.permute.xlu0 %2921 }
0x1509   : > { %3896 = vmatmul.msk.f32.gmra.mxu0 %vm1037_vm1, %v4912_v43 }
0x150a   : > { %v2707_v29 = vpop.f32.mrf.mxu3 }
0x150b   : > { %v2711_v44 = vadd.f32 %v2707_v29, %v4845_v15 }
0x150d   : > { %v4919_v45 = vadd.f32 %v4199_v39, %v2711_v44  ;;  %v4201_v44 = vld [vmem:[%s4411_s30 + $0x4] ss:$0 sm:$0xff] }
0x150f   : > { %3894 = vmatmul.msk.f32.gmra.mxu2 %vm1173_vm3, %v4919_v45 }
0x157e   : > { %v2776_v30 = vpop.f32.mrf.mxu0 }
0x1586   : > { %v2779_v50 = vpop.f32.mrf.mxu0 }
0x158a   : > { %v2747_v46 = vpop.f32.mrf.mxu2 }
0x158b   : > { %v2777_v47 = vadd.f32 %v2776_v30, %v2747_v46 }
0x158d   : > { %v2787_v48 = vadd.f32 %v4200_v33, %v2777_v47 }
0x158f   : > { %v2796_v52 = vmul.f32 %v2795_v49, %v2787_v48  ;;  %vm2793_vm15 = vcmp.ge.f32.partialorder %v2787_v48, 0.0 }
0x1591   : > { %v2798_v15 = vsel %vm2793_vm15, %v2787_v48, %v2796_v52  ;;  %v4203_v52 = vld [vmem:[%s5135_s23 + $0x4] ss:$0 sm:$0xff] }
0x1592   : > { %v2750_v51 = vpop.f32.mrf.mxu2  ;;  %v2800_v56 = vsel %vm1242_vm10, %v2798_v15, 0.0 }
0x1593   : > { %v2780_v53 = vadd.f32 %v2779_v50, %v2750_v51 }
0x1595   : > { %v2788_v54 = vadd.f32 %v4200_v33, %v2780_v53  ;;  %v4202_v33 = vld [vmem:[%s4416_s6 + $0x4] ss:$0 sm:$0xff] }
0x1596   : > { %v4204_v53 = vld [vmem:[%s5136_s28 + $0x4] ss:$0 sm:$0xff] }
0x1597   : > { %v2797_v7 = vmul.f32 %v2795_v49, %v2788_v54  ;;  %vm2794_vm0 = vcmp.ge.f32.partialorder %v2788_v54, 0.0 }
0x1599   : > { %v2799_v55 = vsel %vm2794_vm0, %v2788_v54, %v2797_v7 }
0x159a   : > { %v2801_v57 = vsel %vm1242_vm10, %v2799_v55, 0.0 }
0x159b   : > { %v2802_v58 = vadd.f32 %v2801_v57, %v2800_v56  ;;  %v4205_v56 = vld [vmem:[%s5137_s2 + $0x4] ss:$0 sm:$0xff] }
0x159d   : > { %2803 = vadd.xlane.f32.xlu1 %v2802_v58 }
0x1610   : > { %v2804_v59 = vpop.xlane.xlu1 %2803 }
0x1611   : > { %v2805_v60 = vrot.slane %v2804_v59, 4 }
0x1613   : > { %v2806_v61 = vadd.f32 %v2805_v60, %v2804_v59 }
0x1615   : > { %v2807_v62 = vrot.slane %v2806_v61, 2 }
0x1617   : > { %v2808_v63 = vadd.f32 %v2807_v62, %v2806_v61 }
0x1619   : > { %v2809_v0 = vrot.slane %v2808_v63, 1 }
0x161b   : > { %v2810_v1 = vadd.f32 %v2809_v0, %v2808_v63 }
0x161d   : > { %4035 = vpush %v2810_v1 }
0x164e   : > { %s4036_s10 = spop %4035 }
0x164f   : > { %s2820_s11 = smul.f32 %s4036_s10, %s4597_s15 }
0x1651   : > { %v2821_v2 = vstv %s2820_s11 }
0x1652   : > { %v2822_v3 = vsub.f32 %v2798_v15, %v2821_v2  ;;  %v2823_v4 = vsub.f32 %v2799_v55, %v2821_v2 }
0x1654   : > { %v2824_v5 = vmul.f32 %v2822_v3, %v2822_v3  ;;  %v2825_v9 = vmul.f32 %v2823_v4, %v2823_v4 }
0x1656   : > { %v2826_v20 = vsel %vm1242_vm10, %v2824_v5, 0.0  ;;  %v2827_v21 = vsel %vm1242_vm10, %v2825_v9, 0.0  ;;  %v4206_v5 = vld [vmem:[%s5139_s0 + $0x4] ss:$0 sm:$0xff] }
0x1657   : > { %v2828_v22 = vadd.f32 %v2827_v21, %v2826_v20 }
0x1659   : > { %2829 = vadd.xlane.f32.xlu2 %v2828_v22 }
0x16cc   : > { %v2830_v26 = vpop.xlane.xlu2 %2829 }
0x16cd   : > { %v2831_v27 = vrot.slane %v2830_v26, 4 }
0x16cf   : > { %v2832_v28 = vadd.f32 %v2831_v27, %v2830_v26 }
0x16d1   : > { %v2833_v37 = vrot.slane %v2832_v28, 2 }
0x16d3   : > { %v2834_v11 = vadd.f32 %v2833_v37, %v2832_v28 }
0x16d5   : > { %v2835_v32 = vrot.slane %v2834_v11, 1 }
0x16d7   : > { %v2836_v6 = vadd.f32 %v2835_v32, %v2834_v11 }
0x16d9   : > { %4037 = vpush %v2836_v6 }
0x170a   : > { %s4038_s1 = spop %4037 }
0x170b   : > { %s2846_s16 = smul.f32 %s4038_s1, %s4597_s15 }
0x170d   : > { %s2847_s7 = sadd.f32 1e-05, %s2846_s16 }
0x170f   : > { %v2848_v16 = vstv %s2847_s7  ;;  %s4339_s7 = smov 118  }
0x1710   : > { %4247 = vrsqrt.f32 %v2848_v16  ;;  %vm2855_vm5 = vweird.f32 %v2848_v16  ;;  %3159 = vrot.lane.b32.xlu0 %v4802_v35, %s4339_s7 }
0x1716   : > { %v4248_v34 = vpop.eup %4247 }
0x1717   : > { %v2850_v36 = vmul.f32 %v4248_v34, %v2848_v16  ;;  %vm2856_vm2 = vweird.f32 %v4248_v34 }
0x1718   : > { %vm2857_vm4 = vmor %vm2855_vm5, %vm2856_vm2 }
0x1719   : > { %v2851_v39 = vmul.f32 %v4248_v34, %v2850_v36 }
0x171b   : > { %v2852_v40 = vmul.f32 0.5, %v2851_v39 }
0x171d   : > { %v2853_v41 = vsub.f32 1.5, %v2852_v40 }
0x171f   : > { %v2854_v10 = vmul.f32 %v4248_v34, %v2853_v41 }
0x1721   : > { %v2858_v29 = vsel %vm2857_vm4, %v4248_v34, %v2854_v10  ;;  %vm5150_vm4 = vcmp.lt.s32.totalorder %v4779_v31, 16 }
0x1722   : > { %4039 = vpush %v2858_v29 }
0x1723   : > { %4041 = vpush %v2922_v42 }
0x1753   : > { %s4040_s10 = spop %4039 }
0x1754   : > { %v2860_v30 = vstv %s4040_s10  ;;  %s4042_s11 = spop %4041 }
0x1755   : > { %v2861_v46 = vmul.f32 %v2860_v30, %v2822_v3  ;;  %v2862_v47 = vmul.f32 %v2860_v30, %v2823_v4  ;;  %v2927_v26 = vstv %s4042_s11 }
0x1757   : > { %v2868_v48 = vmul.f32 %v4201_v44, %v2861_v46  ;;  %v2869_v49 = vmul.f32 %v4201_v44, %v2862_v47 }
0x1759   : > { %v2875_v50 = vadd.f32 %v4202_v33, %v2868_v48  ;;  %v2876_v51 = vadd.f32 %v4202_v33, %v2869_v49 }
0x175b   : > { %v2877_v54 = vrot.slane %v2875_v50, 6  ;;  %v2878_v7 = vrot.slane %v2876_v51, 6  ;;  %v2883_v15 = vrot.slane %v2875_v50, 2  ;;  %v2884_v55 = vrot.slane %v2876_v51, 2 }
0x175c   : > { %v2902_v57 = vmul.f32 %v4203_v52, %v2876_v51  ;;  %v2901_v1 = vmul.f32 %v4203_v52, %v2875_v50 }
0x175d   : > { %v2879_v58 = vsel %vm1726_vm11, %v2877_v54, %v2878_v7  ;;  %v2880_v59 = vsel %vm1726_vm11, %v2878_v7, %v2877_v54  ;;  %v2886_v60 = vsel %vm1737_vm12, %v2884_v55, %v2883_v15  ;;  %v2885_v62 = vsel %vm1737_vm12, %v2883_v15, %v2884_v55 }
0x175e   : > { %v2881_v61 = vsel %vm973_vm8, %v2880_v59, 0.0  ;;  %v2888_v63 = vsel %vm1000_vm9, %v2886_v60, 0.0  ;;  %v2895_v0 = vmul.f32 %v4204_v53, %v2879_v58  ;;  %v2910_v20 = vmul.f32 %v4205_v56, %v2885_v62  ;;  %v3909_v62 = vld [vmem:[%s5140_s26 + $0x98] sm:$0xff] }
0x175f   : > { %v2894_v2 = vmul.f32 %v4204_v53, %v2881_v61  ;;  %v2911_v3 = vmul.f32 %v4205_v56, %v2888_v63  ;;  %v3916_v63 = vld [vmem:[%s5142_s3 + $0x98] sm:$0xff]  ;;  %3032 = vmatpush.msrb.mxu1 %v3909_v62 }
0x1760   : > { %v2904_v4 = vadd.f32 %v2902_v57, %v2895_v0  ;;  %3069 = vmatpush.msrb.mxu3 %v3916_v63  ;;  %v3908_v0 = vld [vmem:[%s5140_s26 + $0x90] sm:$0xff] }
0x1761   : > { %v2903_v9 = vadd.f32 %v2901_v1, %v2894_v2  ;;  %v3915_v1 = vld [vmem:[%s5142_s3 + $0x90] sm:$0xff]  ;;  %3033 = vmatpush.msrb.mxu1 %v3908_v0  ;;  %v3907_v2 = vld [vmem:[%s5140_s26 + $0x88] sm:$0xff] }
0x1762   : > { %v2913_v21 = vadd.f32 %v2911_v3, %v2904_v4  ;;  %3070 = vmatpush.msrb.mxu3 %v3915_v1  ;;  %v3914_v3 = vld [vmem:[%s5142_s3 + $0x88] sm:$0xff]  ;;  %v3906_v4 = vld [vmem:[%s5140_s26 + $0x80] sm:$0xff] }
0x1763   : > { %v2912_v22 = vadd.f32 %v2910_v20, %v2903_v9  ;;  %3034 = vmatpush.msrb.mxu1 %v3907_v2  ;;  %v4207_v9 = vld [vmem:[%s5144_s18 + $0x4] ss:$0 sm:$0xff] }
0x1764   : > { %v2920_v23 = vadd.f32 %v4206_v5, %v2913_v21  ;;  %3071 = vmatpush.msrb.mxu3 %v3914_v3 }
0x1765   : > { %v2919_v27 = vadd.f32 %v4206_v5, %v2912_v22  ;;  %v3913_v5 = vld [vmem:[%s5142_s3 + $0x80] sm:$0xff]  ;;  %3035 = vmatpush.msrb.mxu1 %v3906_v4 }
0x1766   : > { %v2929_v28 = vmul.f32 %v2927_v26, %v2920_v23  ;;  %vm2926_vm8 = vcmp.ge.f32.partialorder %v2920_v23, 0.0  ;;  %3072 = vmatpush.msrb.mxu3 %v3913_v5  ;;  %v4208_v22 = vld [vmem:[%s5145_s22 + $0x4] ss:$0 sm:$0xff] }
0x1767   : > { %v2928_v37 = vmul.f32 %v2927_v26, %v2919_v27  ;;  %vm2925_vm11 = vcmp.ge.f32.partialorder %v2919_v27, 0.0 }
0x1768   : > { %v2931_v24 = vsel %vm2926_vm8, %v2920_v23, %v2929_v28 }
0x1769   : > { %v2930_v11 = vsel %vm2925_vm11, %v2919_v27, %v2928_v37  ;;  %v2933_v32 = vsel %vm1242_vm10, %v2931_v24, 0.0 }
0x176a   : > { %v2932_v6 = vsel %vm1242_vm10, %v2930_v11, 0.0 }
0x176b   : > { %v2934_v16 = vadd.f32 %v2933_v32, %v2932_v6  ;;  %v3922_v32 = vld [vmem:[%s4396_s14 + $0x28] sm:$0xff] }
0x176c   : > { %3115 = vmatpush.msra.mxu2 %v3922_v32 }
0x176d   : > { %2935 = vadd.xlane.f32.xlu1 %v2934_v16  ;;  %v4209_v16 = vld [vmem:[%s5147_s4 + $0x4] ss:$0 sm:$0xff] }
0x1782   : > { %v3160_v6 = vpop.permute.xlu0 %3159 }
0x17e0   : > { %v2936_v34 = vpop.xlane.xlu1 %2935 }
0x17e1   : > { %v2937_v36 = vrot.slane %v2936_v34, 4 }
0x17e3   : > { %v2938_v39 = vadd.f32 %v2937_v36, %v2936_v34 }
0x17e5   : > { %v2939_v40 = vrot.slane %v2938_v39, 2 }
0x17e7   : > { %v2940_v41 = vadd.f32 %v2939_v40, %v2938_v39  ;;  %v4210_v40 = vld [vmem:[%s5149_s5 + $0x4] ss:$0 sm:$0xff] }
0x17e9   : > { %v2941_v10 = vrot.slane %v2940_v41, 1 }
0x17eb   : > { %v2942_v42 = vadd.f32 %v2941_v10, %v2940_v41 }
0x17ed   : > { %4043 = vpush %v2942_v42 }
0x181e   : > { %s4044_s1 = spop %4043 }
0x181f   : > { %s2952_s16 = smul.f32 %s4044_s1, %s4597_s15 }
0x1821   : > { %v2953_v29 = vstv %s2952_s16 }
0x1822   : > { %v2954_v44 = vsub.f32 %v2930_v11, %v2953_v29  ;;  %v2955_v30 = vsub.f32 %v2931_v24, %v2953_v29  ;;  %v3921_v24 = vld [vmem:[%s4391_s8 + $0x58] sm:$0xff]  ;;  %v3920_v11 = vld [vmem:[%s4391_s8 + $0x50] sm:$0xff] }
0x1823   : > { %3143 = vmatpush.msrb.mxu0 %v3921_v24 }
0x1824   : > { %v2956_v46 = vmul.f32 %v2954_v44, %v2954_v44  ;;  %v2957_v47 = vmul.f32 %v2955_v30, %v2955_v30 }
0x1825   : > { %3144 = vmatpush.msrb.mxu0 %v3920_v11 }
0x1826   : > { %v2958_v33 = vsel %vm1242_vm10, %v2956_v46, 0.0  ;;  %v2959_v48 = vsel %vm1242_vm10, %v2957_v47, 0.0 }
0x1827   : > { %v2960_v49 = vadd.f32 %v2959_v48, %v2958_v33 }
0x1829   : > { %2961 = vadd.xlane.f32.xlu2 %v2960_v49 }
0x189c   : > { %v2962_v50 = vpop.xlane.xlu2 %2961 }
0x189d   : > { %v2963_v51 = vrot.slane %v2962_v50, 4 }
0x189f   : > { %v2964_v52 = vadd.f32 %v2963_v51, %v2962_v50 }
0x18a1   : > { %v2965_v53 = vrot.slane %v2964_v52, 2 }
0x18a3   : > { %v2966_v54 = vadd.f32 %v2965_v53, %v2964_v52 }
0x18a5   : > { %v2967_v7 = vrot.slane %v2966_v54, 1 }
0x18a7   : > { %v2968_v15 = vadd.f32 %v2967_v7, %v2966_v54 }
0x18a9   : > { %4045 = vpush %v2968_v15 }
0x18da   : > { %s4046_s10 = spop %4045 }
0x18db   : > { %s2978_s11 = smul.f32 %s4046_s10, %s4597_s15  ;;  %s4340_s10 = smov 117  }
0x18dd   : > { %s2979_s1 = sadd.f32 1e-05, %s2978_s11 }
0x18df   : > { %v2980_v55 = vstv %s2979_s1 }
0x18e0   : > { %4249 = vrsqrt.f32 %v2980_v55  ;;  %vm2987_vm12 = vweird.f32 %v2980_v55 }
0x18e6   : > { %v4250_v56 = vpop.eup %4249 }
0x18e7   : > { %v2982_v57 = vmul.f32 %v4250_v56, %v2980_v55  ;;  %vm2988_vm9 = vweird.f32 %v4250_v56 }
0x18e8   : > { %vm2989_vm6 = vmor %vm2987_vm12, %vm2988_vm9 }
0x18e9   : > { %v2983_v58 = vmul.f32 %v4250_v56, %v2982_v57 }
0x18eb   : > { %v2984_v59 = vmul.f32 0.5, %v2983_v58 }
0x18ed   : > { %v2985_v60 = vsub.f32 1.5, %v2984_v59  ;;  %v4257_v59 = vld [vmem:[%s4491_s27] sm:$0x1] }
0x18ee   : > { %3287 = vrot.lane.b32.xlu0 %v4257_v59, %s4340_s10 }
0x18ef   : > { %v2986_v61 = vmul.f32 %v4250_v56, %v2985_v60 }
0x18f1   : > { %v2990_v35 = vsel %vm2989_vm6, %v4250_v56, %v2986_v61 }
0x18f2   : > { %4047 = vpush %v2990_v35 }
0x18f3   : > { %4049 = vpush %v3160_v6 }
0x1923   : > { %s4048_s16 = spop %4047 }
0x1924   : > { %v2992_v20 = vstv %s4048_s16  ;;  %s4050_s7 = spop %4049 }
0x1925   : > { %v2993_v21 = vmul.f32 %v2992_v20, %v2954_v44  ;;  %v2994_v23 = vmul.f32 %v2992_v20, %v2955_v30  ;;  %v3165_v50 = vstv %s4050_s7 }
0x1927   : > { %v3000_v26 = vmul.f32 %v4207_v9, %v2993_v21  ;;  %v3001_v28 = vmul.f32 %v4207_v9, %v2994_v23 }
0x1929   : > { %v3007_v27 = vadd.f32 %v4208_v22, %v3000_v26  ;;  %v3008_v37 = vadd.f32 %v4208_v22, %v3001_v28 }
0x192b   : > { %3910 = vmatmul.msk.f32.vlgmr.msrb.gmra.mxu1 %vm1242_vm10, %v3007_v27  ;;  %3917 = vmatmul.msk.f32.vlgmr.msrb.gmra.mxu3 %vm1242_vm10, %v3007_v27 }
0x1933   : > { %3911 = vmatmul.msk.f32.gmra.mxu1 %vm1242_vm10, %v3008_v37  ;;  %3918 = vmatmul.msk.f32.gmra.mxu3 %vm1242_vm10, %v3008_v37 }
0x19a8   : > { %v3037_v34 = vpop.f32.mrf.mxu1 }
0x19a9   : > { %v3043_v36 = vadd.f32 %v3037_v34, %v4903_v38 }
0x19ab   : > { %v4975_v39 = vadd.f32 %v4209_v16, %v3043_v36 }
0x19ad   : > { %3925 = vmatmul.msk.f32.vlgmr.msrb.gmra.mxu0 %vm1037_vm1, %v4975_v39 }
0x19ae   : > { %v3074_v41 = vpop.f32.mrf.mxu3 }
0x19af   : > { %v3080_v10 = vadd.f32 %v3074_v41, %v4909_v13 }
0x19b0   : > { %v3040_v42 = vpop.f32.mrf.mxu1 }
0x19b1   : > { %v4981_v29 = vadd.f32 %v4210_v40, %v3080_v10  ;;  %v3044_v44 = vadd.f32 %v3040_v42, %v4912_v43  ;;  %v4211_v43 = vld [vmem:[%s4406_s24 + $0x5] ss:$0 sm:$0xff]  ;;  %v3288_v10 = vpop.permute.xlu0 %3287 }
0x19b3   : > { %v4984_v30 = vadd.f32 %v4209_v16, %v3044_v44  ;;  %3923 = vmatmul.msk.f32.vlgmr.msra.gmra.mxu2 %vm1173_vm3, %v4981_v29  ;;  %v4212_v44 = vld [vmem:[%s4411_s30 + $0x5] ss:$0 sm:$0xff] }
0x19b5   : > { %3926 = vmatmul.msk.f32.gmra.mxu0 %vm1037_vm1, %v4984_v30 }
0x19b6   : > { %v3077_v38 = vpop.f32.mrf.mxu3 }
0x19b7   : > { %v3081_v46 = vadd.f32 %v3077_v38, %v4919_v45 }
0x19b9   : > { %v4991_v47 = vadd.f32 %v4210_v40, %v3081_v46 }
0x19bb   : > { %3924 = vmatmul.msk.f32.gmra.mxu2 %vm1173_vm3, %v4991_v47 }
0x1a2a   : > { %v3146_v13 = vpop.f32.mrf.mxu0 }
0x1a32   : > { %v3149_v51 = vpop.f32.mrf.mxu0 }
0x1a36   : > { %v3117_v33 = vpop.f32.mrf.mxu2 }
0x1a37   : > { %v3147_v48 = vadd.f32 %v3146_v13, %v3117_v33  ;;  %v4213_v33 = vld [vmem:[%s4416_s6 + $0x5] ss:$0 sm:$0xff] }
0x1a39   : > { %v3157_v49 = vadd.f32 %v4211_v43, %v3147_v48 }
0x1a3b   : > { %v3166_v53 = vmul.f32 %v3165_v50, %v3157_v49  ;;  %vm3163_vm7 = vcmp.ge.f32.partialorder %v3157_v49, 0.0 }
0x1a3d   : > { %v3168_v15 = vsel %vm3163_vm7, %v3157_v49, %v3166_v53 }
0x1a3e   : > { %v3120_v52 = vpop.f32.mrf.mxu2  ;;  %v3170_v56 = vsel %vm1242_vm10, %v3168_v15, 0.0 }
0x1a3f   : > { %v3150_v54 = vadd.f32 %v3149_v51, %v3120_v52  ;;  %v4214_v51 = vld [vmem:[%s5136_s28 + $0x5] ss:$0 sm:$0xff] }
0x1a40   : > { %v4215_v52 = vld [vmem:[%s5135_s23 + $0x5] ss:$0 sm:$0xff] }
0x1a41   : > { %v3158_v7 = vadd.f32 %v4211_v43, %v3150_v54 }
0x1a43   : > { %v3167_v45 = vmul.f32 %v3165_v50, %v3158_v7  ;;  %vm3164_vm15 = vcmp.ge.f32.partialorder %v3158_v7, 0.0 }
0x1a45   : > { %v3169_v55 = vsel %vm3164_vm15, %v3158_v7, %v3167_v45  ;;  %v4216_v7 = vld [vmem:[%s5137_s2 + $0x5] ss:$0 sm:$0xff] }
0x1a46   : > { %v3171_v57 = vsel %vm1242_vm10, %v3169_v55, 0.0 }
0x1a47   : > { %v3172_v58 = vadd.f32 %v3171_v57, %v3170_v56 }
0x1a49   : > { %3173 = vadd.xlane.f32.xlu1 %v3172_v58 }
0x1abc   : > { %v3174_v60 = vpop.xlane.xlu1 %3173 }
0x1abd   : > { %v3175_v61 = vrot.slane %v3174_v60, 4 }
0x1abf   : > { %v3176_v35 = vadd.f32 %v3175_v61, %v3174_v60 }
0x1ac1   : > { %v3177_v62 = vrot.slane %v3176_v35, 2 }
0x1ac3   : > { %v3178_v63 = vadd.f32 %v3177_v62, %v3176_v35  ;;  %v4217_v62 = vld [vmem:[%s5139_s0 + $0x5] ss:$0 sm:$0xff] }
0x1ac5   : > { %v3179_v0 = vrot.slane %v3178_v63, 1 }
0x1ac7   : > { %v3180_v1 = vadd.f32 %v3179_v0, %v3178_v63 }
0x1ac9   : > { %4051 = vpush %v3180_v1 }
0x1afa   : > { %s4052_s11 = spop %4051 }
0x1afb   : > { %s3190_s1 = smul.f32 %s4052_s11, %s4597_s15 }
0x1afd   : > { %v3191_v2 = vstv %s3190_s1 }
0x1afe   : > { %v3192_v3 = vsub.f32 %v3168_v15, %v3191_v2  ;;  %v3193_v4 = vsub.f32 %v3169_v55, %v3191_v2 }
0x1b00   : > { %v3194_v5 = vmul.f32 %v3192_v3, %v3192_v3  ;;  %v3195_v9 = vmul.f32 %v3193_v4, %v3193_v4 }
0x1b02   : > { %v3196_v20 = vsel %vm1242_vm10, %v3194_v5, 0.0  ;;  %v3197_v21 = vsel %vm1242_vm10, %v3195_v9, 0.0 }
0x1b03   : > { %v3198_v22 = vadd.f32 %v3197_v21, %v3196_v20 }
0x1b05   : > { %3199 = vadd.xlane.f32.xlu2 %v3198_v22 }
0x1b78   : > { %v3200_v26 = vpop.xlane.xlu2 %3199 }
0x1b79   : > { %v3201_v23 = vrot.slane %v3200_v26, 4 }
0x1b7b   : > { %v3202_v27 = vadd.f32 %v3201_v23, %v3200_v26 }
0x1b7d   : > { %v3203_v28 = vrot.slane %v3202_v27, 2 }
0x1b7f   : > { %v3204_v37 = vadd.f32 %v3203_v28, %v3202_v27 }
0x1b81   : > { %v3205_v24 = vrot.slane %v3204_v37, 1 }
0x1b83   : > { %v3206_v11 = vadd.f32 %v3205_v24, %v3204_v37 }
0x1b85   : > { %4053 = vpush %v3206_v11 }
0x1bb6   : > { %s4054_s16 = spop %4053 }
0x1bb7   : > { %s3216_s7 = smul.f32 %s4054_s16, %s4597_s15 }
0x1bb9   : > { %s3217_s10 = sadd.f32 1e-05, %s3216_s7 }
0x1bbb   : > { %v3218_v32 = vstv %s3217_s10 }
0x1bbc   : > { %4251 = vrsqrt.f32 %v3218_v32  ;;  %vm3225_vm2 = vweird.f32 %v3218_v32 }
0x1bc2   : > { %v4252_v6 = vpop.eup %4251 }
0x1bc3   : > { %v3220_v16 = vmul.f32 %v4252_v6, %v3218_v32  ;;  %vm3226_vm0 = vweird.f32 %v4252_v6 }
0x1bc4   : > { %vm3227_vm5 = vmor %vm3225_vm2, %vm3226_vm0  ;;  %vm3634_vm2 = vcmask 57344  }
0x1bc5   : > { %v3221_v34 = vmul.f32 %v4252_v6, %v3220_v16 }
0x1bc7   : > { %v3222_v36 = vmul.f32 0.5, %v3221_v34 }
0x1bc9   : > { %v3223_v40 = vsub.f32 1.5, %v3222_v36 }
0x1bcb   : > { %v3224_v41 = vmul.f32 %v4252_v6, %v3223_v40 }
0x1bcd   : > { %v3228_v42 = vsel %vm3227_vm5, %v4252_v6, %v3224_v41 }
0x1bce   : > { %4055 = vpush %v3228_v42 }
0x1bcf   : > { %4057 = vpush %v3288_v10 }
0x1bff   : > { %s4056_s11 = spop %4055 }
0x1c00   : > { %v3230_v38 = vstv %s4056_s11  ;;  %s4058_s1 = spop %4057 }
0x1c01   : > { %v3231_v46 = vmul.f32 %v3230_v38, %v3192_v3  ;;  %v3232_v13 = vmul.f32 %v3230_v38, %v3193_v4  ;;  %v3293_v3 = vstv %s4058_s1 }
0x1c03   : > { %v3238_v48 = vmul.f32 %v4212_v44, %v3231_v46  ;;  %v3239_v43 = vmul.f32 %v4212_v44, %v3232_v13 }
0x1c05   : > { %v3245_v49 = vadd.f32 %v4213_v33, %v3238_v48  ;;  %v3246_v50 = vadd.f32 %v4213_v33, %v3239_v43 }
0x1c07   : > { %v3247_v53 = vrot.slane %v3245_v49, 4  ;;  %v3248_v54 = vrot.slane %v3246_v50, 4  ;;  %v3268_v57 = vmul.f32 %v4215_v52, %v3246_v50  ;;  %v3267_v60 = vmul.f32 %v4215_v52, %v3245_v49 }
0x1c09   : > { %v3249_v45 = vsel %vm2106_vm13, %v3247_v53, %v3248_v54  ;;  %v3250_v15 = vsel %vm2106_vm13, %v3248_v54, %v3247_v53 }
0x1c0a   : > { %v3251_v55 = vsel %vm965_vm14, %v3250_v15, 0.0  ;;  %v3261_v56 = vmul.f32 %v4214_v51, %v3249_v45  ;;  %v3254_v58 = vsel %vm5150_vm4, %v3250_v15, 0.0  ;;  %v3276_v0 = vmul.f32 %v4216_v7, %v3249_v45  ;;  %v3939_v15 = vld [vmem:[%s5140_s26 + $0xb8] sm:$0xff] }
0x1c0b   : > { %v3260_v59 = vmul.f32 %v4214_v51, %v3251_v55  ;;  %v3277_v61 = vmul.f32 %v4216_v7, %v3254_v58  ;;  %v3946_v55 = vld [vmem:[%s5142_s3 + $0xb8] sm:$0xff]  ;;  %3398 = vmatpush.msra.mxu1 %v3939_v15  ;;  %v3937_v58 = vld [vmem:[%s5140_s26 + $0xa8] sm:$0xff] }
0x1c0c   : > { %v3270_v35 = vadd.f32 %v3268_v57, %v3261_v56  ;;  %3435 = vmatpush.msra.mxu3 %v3946_v55  ;;  %v3938_v56 = vld [vmem:[%s5140_s26 + $0xb0] sm:$0xff] }
0x1c0d   : > { %v3269_v63 = vadd.f32 %v3267_v60, %v3260_v59  ;;  %v3945_v57 = vld [vmem:[%s5142_s3 + $0xb0] sm:$0xff]  ;;  %3399 = vmatpush.msra.mxu1 %v3938_v56  ;;  %v3944_v59 = vld [vmem:[%s5142_s3 + $0xa8] sm:$0xff]  ;;  %v3936_v60 = vld [vmem:[%s5140_s26 + $0xa0] sm:$0xff] }
0x1c0e   : > { %v3279_v1 = vadd.f32 %v3277_v61, %v3270_v35  ;;  %3436 = vmatpush.msra.mxu3 %v3945_v57  ;;  %v3943_v61 = vld [vmem:[%s5142_s3 + $0xa0] sm:$0xff] }
0x1c0f   : > { %v3278_v2 = vadd.f32 %v3276_v0, %v3269_v63  ;;  %3400 = vmatpush.msra.mxu1 %v3937_v58  ;;  %v4218_v35 = vld [vmem:[%s5144_s18 + $0x5] ss:$0 sm:$0xff] }
0x1c10   : > { %v3286_v4 = vadd.f32 %v4217_v62, %v3279_v1  ;;  %3437 = vmatpush.msra.mxu3 %v3944_v59  ;;  %v4219_v0 = vld [vmem:[%s5145_s22 + $0x5] ss:$0 sm:$0xff] }
0x1c11   : > { %v3285_v5 = vadd.f32 %v4217_v62, %v3278_v2  ;;  %3401 = vmatpush.msra.mxu1 %v3936_v60 }
0x1c12   : > { %v3295_v14 = vmul.f32 %v3293_v3, %v3286_v4  ;;  %vm3292_vm13 = vcmp.ge.f32.partialorder %v3286_v4, 0.0  ;;  %3438 = vmatpush.msra.mxu3 %v3943_v61 }
0x1c13   : > { %v3294_v9 = vmul.f32 %v3293_v3, %v3285_v5  ;;  %vm3291_vm14 = vcmp.ge.f32.partialorder %v3285_v5, 0.0 }
0x1c14   : > { %v3297_v31 = vsel %vm3292_vm13, %v3286_v4, %v3295_v14 }
0x1c15   : > { %v3296_v20 = vsel %vm3291_vm14, %v3285_v5, %v3294_v9  ;;  %v3299_v21 = vsel %vm1242_vm10, %v3297_v31, 0.0 }
0x1c16   : > { %v3298_v22 = vsel %vm1242_vm10, %v3296_v20, 0.0 }
0x1c17   : > { %v3300_v26 = vadd.f32 %v3299_v21, %v3298_v22 }
0x1c19   : > { %3301 = vadd.xlane.f32.xlu1 %v3300_v26  ;;  %v4221_v26 = vld [vmem:[%s5149_s5 + $0x5] ss:$0 sm:$0xff] }
0x1c8c   : > { %v3302_v23 = vpop.xlane.xlu1 %3301 }
0x1c8d   : > { %v3303_v27 = vrot.slane %v3302_v23, 4 }
0x1c8f   : > { %v3304_v28 = vadd.f32 %v3303_v27, %v3302_v23 }
0x1c91   : > { %v3305_v37 = vrot.slane %v3304_v28, 2 }
0x1c93   : > { %v3306_v24 = vadd.f32 %v3305_v37, %v3304_v28 }
0x1c95   : > { %v3307_v11 = vrot.slane %v3306_v24, 1 }
0x1c97   : > { %v3308_v32 = vadd.f32 %v3307_v11, %v3306_v24 }
0x1c99   : > { %4059 = vpush %v3308_v32 }
0x1cca   : > { %s4060_s16 = spop %4059 }
0x1ccb   : > { %s3318_s7 = smul.f32 %s4060_s16, %s4597_s15 }
0x1ccd   : > { %v3319_v6 = vstv %s3318_s7  ;;  %s5153_s7 = sld [smem:[#allocation17_spill]] }
0x1cce   : > { %v3320_v16 = vsub.f32 %v3296_v20, %v3319_v6  ;;  %v3321_v34 = vsub.f32 %v3297_v31, %v3319_v6  ;;  %v4220_v31 = vld [vmem:[%s5147_s4 + $0x5] ss:$0 sm:$0xff] }
0x1cd0   : > { %v3322_v36 = vmul.f32 %v3320_v16, %v3320_v16  ;;  %v3323_v40 = vmul.f32 %v3321_v34, %v3321_v34 }
0x1cd2   : > { %v3324_v41 = vsel %vm1242_vm10, %v3322_v36, 0.0  ;;  %v3325_v10 = vsel %vm1242_vm10, %v3323_v40, 0.0 }
0x1cd3   : > { %v3326_v42 = vadd.f32 %v3325_v10, %v3324_v41  ;;  %s5154_s0 = smov %s5153_s7 }
0x1cd4   : > { %v3527_v36 = vld [vmem:[%s5154_s0] sm:$0xff] }
0x1cd5   : > { %3327 = vadd.xlane.f32.xlu2 %v3326_v42 }
0x1d48   : > { %v3328_v44 = vpop.xlane.xlu2 %3327 }
0x1d49   : > { %v3329_v38 = vrot.slane %v3328_v44, 4 }
0x1d4b   : > { %v3330_v46 = vadd.f32 %v3329_v38, %v3328_v44 }
0x1d4d   : > { %v3331_v13 = vrot.slane %v3330_v46, 2 }
0x1d4f   : > { %v3332_v33 = vadd.f32 %v3331_v13, %v3330_v46 }
0x1d51   : > { %v3333_v48 = vrot.slane %v3332_v33, 1 }
0x1d53   : > { %v3334_v43 = vadd.f32 %v3333_v48, %v3332_v33 }
0x1d55   : > { %4061 = vpush %v3334_v43 }
0x1d86   : > { %s4062_s10 = spop %4061 }
0x1d87   : > { %s3344_s11 = smul.f32 %s4062_s10, %s4597_s15  ;;  %s5151_s15 = sld [smem:[#allocation15_spill]] }
0x1d88   : > { %s5155_s10 = sld [smem:[#allocation16_spill]] }
0x1d89   : > { %s3345_s1 = sadd.f32 1e-05, %s3344_s11  ;;  %s4341_s11 = smov 116  }
0x1d8b   : > { %v3346_v49 = vstv %s3345_s1 }
0x1d8c   : > { %4253 = vrsqrt.f32 %v3346_v49  ;;  %vm3353_vm11 = vweird.f32 %v3346_v49 }
0x1d8d   : > { %s5152_s1 = smov %s5151_s15  ;;  %v3458_v14 = vld [vmem:[%s5151_s15 + $0x8] sm:$0xff] }
0x1d8e   : > { %3483 = vmatpush.msrb.mxu2 %v3458_v14  ;;  %v3457_v9 = vld [vmem:[%s5152_s1] sm:$0xff] }
0x1d8f   : > { %v4222_v40 = vld [vmem:[%s5155_s10] ss:$0 sm:$0xff] }
0x1d90   : > { %3484 = vmatpush.msrb.mxu2 %v3457_v9 }
0x1d92   : > { %v4254_v50 = vpop.eup %4253 }
0x1d93   : > { %v3348_v51 = vmul.f32 %v4254_v50, %v3346_v49  ;;  %vm3354_vm8 = vweird.f32 %v4254_v50  ;;  %v1013_v49 = vand.u32 127, %v960_v17  ;;  %v1011_v17 = vadd.s32 16, %v4604_v18 }
0x1d94   : > { %vm3355_vm9 = vmor %vm3353_vm11, %vm3354_vm8 }
0x1d95   : > { %v3349_v52 = vmul.f32 %v4254_v50, %v3348_v51  ;;  %vm1014_vm12 = vcmp.eq.s32.totalorder %v1013_v49, %v4604_v18  ;;  %v4342_v51 = vmov 0.0   ;;  %vm1015_vm7 = vcmp.eq.s32.totalorder %v1013_v49, %v4607_v19 }
0x1d96   : > { %vm1016_vm0 = vcmp.eq.s32.totalorder %v1013_v49, %v1011_v17 }
0x1d97   : > { %v3350_v53 = vmul.f32 0.5, %v3349_v52  ;;  %v1017_v52 = vsel %vm1014_vm12, 1.0, %v4342_v51  ;;  %v1019_v15 = vsel %vm1016_vm0, 1.0, %v4342_v51 }
0x1d99   : > { %v3351_v54 = vsub.f32 1.5, %v3350_v53  ;;  %v3780_v53 = vadd.s32 4294967295, %v4607_v19 }
0x1d9b   : > { %v3352_v7 = vmul.f32 %v4254_v50, %v3351_v54  ;;  %vm1024_vm6 = vcmp.eq.s32.totalorder %v1013_v49, %v3780_v53  ;;  %v1018_v54 = vsel %vm1015_vm7, 1.0, %v4342_v51 }
0x1d9d   : > { %v3356_v45 = vsel %vm3355_vm9, %v4254_v50, %v3352_v7  ;;  %v3781_v7 = vadd.s32 4294967295, %v1011_v17 }
0x1d9e   : > { %4063 = vpush %v3356_v45 }
0x1d9f   : > { %vm1025_vm15 = vcmp.eq.s32.totalorder %v1013_v49, %v3781_v7 }
0x1da0   : > { %v1028_v45 = vsel %vm1025_vm15, 1.0, %v4342_v51 }
0x1dcf   : > { %s4064_s16 = spop %4063 }
0x1dd0   : > { %v3358_v62 = vstv %s4064_s16 }
0x1dd1   : > { %v3359_v63 = vmul.f32 %v3358_v62, %v3320_v16  ;;  %v3360_v2 = vmul.f32 %v3358_v62, %v3321_v34  ;;  %v3497_v16 = vld [vmem:[%s4481_s12 + $0x8] sm:$0xff]  ;;  %v3496_v34 = vld [vmem:[%s4481_s12] sm:$0xff] }
0x1dd2   : > { %3518 = vmatpush.msra.mxu0 %v3497_v16 }
0x1dd3   : > { %v3366_v1 = vmul.f32 %v4218_v35, %v3359_v63  ;;  %v3367_v4 = vmul.f32 %v4218_v35, %v3360_v2 }
0x1dd4   : > { %3519 = vmatpush.msra.mxu0 %v3496_v34 }
0x1dd5   : > { %v3373_v3 = vadd.f32 %v4219_v0, %v3366_v1  ;;  %v3374_v5 = vadd.f32 %v4219_v0, %v3367_v4 }
0x1dd7   : > { %3940 = vmatmul.msk.f32.vlgmr.msra.gmra.mxu1 %vm1242_vm10, %v3373_v3  ;;  %3947 = vmatmul.msk.f32.vlgmr.msra.gmra.mxu3 %vm1242_vm10, %v3373_v3 }
0x1ddf   : > { %3941 = vmatmul.msk.f32.gmra.mxu1 %vm1242_vm10, %v3374_v5  ;;  %3948 = vmatmul.msk.f32.gmra.mxu3 %vm1242_vm10, %v3374_v5  ;;  %vm1023_vm10 = vcmp.eq.s32.totalorder %v1013_v49, %v4612_v25  ;;  %v1027_v25 = vsel %vm1024_vm6, 1.0, %v4342_v51 }
0x1e54   : > { %v3403_v20 = vpop.f32.mrf.mxu1 }
0x1e55   : > { %v3409_v21 = vadd.f32 %v3403_v20, %v4975_v39 }
0x1e57   : > { %v3416_v22 = vadd.f32 %v4220_v31, %v3409_v21 }
0x1e59   : > { %3950 = vmatmul.msk.f32.vlgmr.msrb.gmra.mxu2 %vm1037_vm1, %v3416_v22 }
0x1e5a   : > { %v3440_v23 = vpop.f32.mrf.mxu3 }
0x1e5b   : > { %v3446_v27 = vadd.f32 %v3440_v23, %v4981_v29  ;;  %v3528_v29 = vld [vmem:[%s5153_s7 + $0x8] sm:$0xff] }
0x1e5c   : > { %v3406_v28 = vpop.f32.mrf.mxu1  ;;  %3543 = vmatpush.msrb.mxu1 %v3528_v29 }
0x1e5d   : > { %v3453_v37 = vadd.f32 %v4221_v26, %v3446_v27  ;;  %v3410_v24 = vadd.f32 %v3406_v28, %v4984_v30  ;;  %v3622_v30 = vld [vmem:[%s4491_s27] sm:$0x1] }
0x1e5e   : > { %3544 = vmatpush.msrb.mxu1 %v3527_v36  ;;  %3624 = vrot.lane.b32.xlu0 %v3622_v30, %s4341_s11 }
0x1e5f   : > { %3455 = vst.msk [vmem:[#allocation2] sm:$0xff] %vm1173_vm3, %v3453_v37  ;;  %v3417_v11 = vadd.f32 %v4220_v31, %v3410_v24 }
0x1e61   : > { %3951 = vmatmul.msk.f32.gmra.mxu2 %vm1037_vm1, %v3417_v11 }
0x1e62   : > { %v3443_v39 = vpop.f32.mrf.mxu3 }
0x1e63   : > { %v3447_v32 = vadd.f32 %v3443_v39, %v4991_v47 }
0x1e65   : > { %v3454_v6 = vadd.f32 %v4221_v26, %v3447_v32 }
0x1e67   : > { %3456 = vst.msk [vmem:[#allocation2 + $0x8] sm:$0xff] %vm1173_vm3, %v3454_v6 }
0x1ed0   : > { %v3625_v33 = vpop.permute.xlu0 %3624 }
0x1ed1   : > { %4065 = vpush %v3625_v33 }
0x1edc   : > { %v3486_v41 = vpop.f32.mrf.mxu2 }
0x1edd   : > { %v3487_v10 = vadd.f32 %v4222_v40, %v3486_v41 }
0x1edf   : > { %v3492_v42 = vmax.f32 %v3487_v10, 0.0 }
0x1ee1   : > { %v3494_v47 = vmul.f32 %v3492_v42, %v4545_v8 }
0x1ee3   : > { %3952 = vmatmul.msk.f32.vlgmr.msra.gmra.mxu0 %vm1037_vm1, %v3494_v47  ;;  %3954 = vmatmul.msk.f32.vlgmr.msrb.gmra.mxu1 %vm1037_vm1, %v3494_v47 }
0x1ee4   : > { %v3489_v44 = vpop.f32.mrf.mxu2 }
0x1ee5   : > { %v3490_v38 = vadd.f32 %v4222_v40, %v3489_v44 }
0x1ee7   : > { %v3493_v46 = vmax.f32 %v3490_v38, 0.0 }
0x1ee9   : > { %v3495_v13 = vmul.f32 %v3493_v46, %v4549_v12  ;;  %v1026_v12 = vsel %vm1023_vm10, 1.0, %v4342_v51 }
0x1eeb   : > { %3953 = vmatmul.msk.f32.gmra.mxu0 %vm1037_vm1, %v3495_v13  ;;  %3955 = vmatmul.msk.f32.gmra.mxu1 %vm1037_vm1, %v3495_v13 }
0x1f02   : > { %s4066_s15 = spop %4065 }
0x1f03   : > { %v3628_v55 = vstv %s4066_s15 }
0x1f60   : > { %v3521_v48 = vpop.f32.mrf.mxu0  ;;  %v3546_v43 = vpop.f32.mrf.mxu1 }
0x1f68   : > { %v3524_v8 = vpop.f32.mrf.mxu0  ;;  %v3549_v50 = vpop.f32.mrf.mxu1 }
0x1f69   : > { %3575 = vmatpush.msrb.mxu3 %v3549_v50  ;;  %3610 = vmatpush.msra.mxu2 %v3524_v8 }
0x1f6b   : > { %3576 = vmatpush.msrb.mxu3 %v3546_v43  ;;  %3611 = vmatpush.msra.mxu2 %v3521_v48 }
0x1f6c   : > { %3956 = vmatmul.msk.f32.vlgmr.msrb.gmra.mxu3 %vm1037_vm1, %v1026_v12  ;;  %3959 = vmatmul.msk.f32.vlgmr.msra.gmra.mxu2 %vm1037_vm1, %v1017_v52 }
0x1f74   : > { %3957 = vmatmul.msk.f32.gmra.mxu3 %vm1037_vm1, %v1027_v25  ;;  %3960 = vmatmul.msk.f32.gmra.mxu2 %vm1037_vm1, %v1018_v54 }
0x1f7c   : > { %3958 = vmatmul.msk.f32.gmra.mxu3 %vm1037_vm1, %v1028_v45  ;;  %3961 = vmatmul.msk.f32.gmra.mxu2 %vm1037_vm1, %v1019_v15 }
0x1fef   : > { %v3578_v19 = vpop.f32.mrf.mxu3  ;;  %v3613_v18 = vpop.f32.mrf.mxu2 }
0x1ff0   : > { %v3614_v56 = vadd.f32 %v3613_v18, %v3578_v19 }
0x1ff2   : > { %v3629_v57 = vadd.f32 %v3628_v55, %v3614_v56 }
0x1ff4   : > { %3632 = vst.msk [vmem:[%s4537_s20] sm:$0xff] %vm1173_vm3, %v3629_v57 }
0x1ff7   : > { %v3581_v58 = vpop.f32.mrf.mxu3  ;;  %v3616_v59 = vpop.f32.mrf.mxu2 }
0x1ff8   : > { %v3617_v60 = vadd.f32 %v3616_v59, %v3581_v58 }
0x1ffa   : > { %v3630_v61 = vadd.f32 %v3628_v55, %v3617_v60 }
0x1ffc   : > { %3633 = vst.msk [vmem:[%s4537_s20 + $0x8] sm:$0xff] %vm1173_vm3, %v3630_v61 }
0x1fff   : > { %v3584_v35 = vpop.f32.mrf.mxu3  ;;  %v3619_v62 = vpop.f32.mrf.mxu2 }
0x2000   : > { %v3620_v63 = vadd.f32 %v3619_v62, %v3584_v35 }
0x2002   : > { %v3631_v0 = vadd.f32 %v3628_v55, %v3620_v63 }
0x2004   : > { %3635 = vst.msk [vmem:[%s4537_s20 + $0x10] sm:$0x1] %vm3634_vm2, %v3631_v0 }
0x2005 PF: > { %s5156_s16 = sld [smem:[#allocation21_spill]] }
0x2006   : > { %s5157_s7 = sld [smem:[#allocation19_spill]] }
0x2007   : > { %s5158_s10 = sld [smem:[#allocation20_spill]] }
0x2008   : > { %s5159_s11 = sld [smem:[#allocation22_spill]] }
0x2009   : > { %s5160_s15 = sld [smem:[#allocation23_spill]] }
0x200b   : > { %s69_s16 = sadd.s32 1, %s5156_s16  }
0x200c   : > { %p66_p8 = scmp.ge.s32.totalorder %s69_s16, 6  }
0x200e   :  { %68 = sbr.rel (!%p66_p8) target bundleno = 57 (0x39), region = 278 }

</bundles_post_ra>
